<compile_context>
chip_gen: v7x
topology: tpu7x:2x2x1
jax: 0.10.0
libtpu: 0.0.40
codegen_flags: <defaults>
</compile_context>

<pallas_src>
import numpy as np
import jax
import jax.numpy as jnp
from jax.experimental import pallas as pl
from jax.experimental.pallas import tpu as pltpu

VMEM_SPEC = pl.BlockSpec(memory_space=pltpu.MemorySpace.VMEM)
K = 3      # conv kernel size (both convs)
HP = 128   # lane-padded LSTM hidden size (true H = 100)


# ----------------------------- fused Pallas kernel -----------------------------

def cnn_lstm_fused_kernel(x_ref, w1_ref, cb1_ref, w2_ref, cb2_ref,
                          wx1f_ref, wh1f_ref, gb1f_ref,
                          wx1b_ref, wh1b_ref, gb1b_ref,
                          wx2b_ref, wh2b_ref, gb2b_ref,
                          fc1w_ref, fc1b_ref, fc2w_ref, fc2b_ref,
                          o_ref):
    B, T, _ = x_ref.shape
    C = w1_ref.shape[-1]
    T1 = T - (K - 1)
    T2 = T1 - (K - 1)
    L = T2 // 2
    Hp = wh1f_ref.shape[0]
    f32 = jnp.float32

    # ---- conv1 (im2col, whole batch flattened on sublanes) + folded BN + ReLU ----
    cols = []
    for b in range(B):
        xb = x_ref[b]                                                   # (T, F)
        cols.append(jnp.concatenate([xb[k:k + T1, :] for k in range(K)], axis=1))
    xc1 = jnp.concatenate(cols, axis=0)                                 # (B*T1, K*F)
    y1 = jnp.maximum(jnp.dot(xc1, w1_ref[...], preferred_element_type=f32)
                     + cb1_ref[...], 0.0)                               # (B*T1, C)

    # ---- conv2 (im2col, contraction dim K*C=192) + ReLU ----
    cols = []
    for b in range(B):
        yb = y1[b * T1:(b + 1) * T1, :]                                 # (T1, C)
        cols.append(jnp.concatenate([yb[k:k + T2, :] for k in range(K)], axis=1))
    xc2 = jnp.concatenate(cols, axis=0)                                 # (B*T2, K*C)
    y2 = jnp.maximum(jnp.dot(xc2, w2_ref[...], preferred_element_type=f32)
                     + cb2_ref[...], 0.0)                               # (B*T2, C)

    # ---- MaxPool1d(2): one vectorized pairwise max per batch, then gather the pooled
    # ---- rows directly into the time-major (L*B, C) LSTM input (row = t*B + b) ----
    pair = []
    for b in range(B):
        yb = y2[b * T2:(b + 1) * T2, :]
        pair.append(jnp.maximum(yb[:T2 - 1, :], yb[1:, :]))             # row 2t = max pair t
    seq = jnp.concatenate(
        [jnp.concatenate([pair[b][2 * t:2 * t + 1, :] for b in range(B)], axis=0)
         for t in range(L)], axis=0)                                    # (L*B, C)

    # ---- bidirectional LSTM with concatenated gates [i,f,g,o], lane-padded to Hp ----
    def lstm(xg, wh, reverse):
        # xg: (L*B, 4*Hp) hoisted input projection (+ bias), time-major.
        h = jnp.zeros((B, Hp), f32)
        c = jnp.zeros((B, Hp), f32)
        hs = [None] * L
        order = range(L - 1, -1, -1) if reverse else range(L)
        for t in order:                                  # L is small & static: unrolled
            g = xg[t * B:(t + 1) * B, :] + jnp.dot(h, wh, preferred_element_type=f32)
            i_g = jax.nn.sigmoid(g[:, 0 * Hp:1 * Hp])
            f_g = jax.nn.sigmoid(g[:, 1 * Hp:2 * Hp])
            g_g = jnp.tanh(g[:, 2 * Hp:3 * Hp])
            o_g = jax.nn.sigmoid(g[:, 3 * Hp:4 * Hp])
            c = f_g * c + i_g * g_g
            h = o_g * jnp.tanh(c)
            hs[t] = h
        return hs, h

    xg1f = jnp.dot(seq, wx1f_ref[...], preferred_element_type=f32) + gb1f_ref[...]
    xg1b = jnp.dot(seq, wx1b_ref[...], preferred_element_type=f32) + gb1b_ref[...]
    hf, _ = lstm(xg1f, wh1f_ref[...], reverse=False)
    hb, _ = lstm(xg1b, wh1b_ref[...], reverse=True)

    # layer-2 input: concat(forward, backward) per time step, time-major (L*B, 2*Hp)
    seq2 = jnp.concatenate(
        [jnp.concatenate([hf[t], hb[t]], axis=1) for t in range(L)], axis=0)
    xg2 = jnp.dot(seq2, wx2b_ref[...], preferred_element_type=f32) + gb2b_ref[...]
    # hn[-1] == layer-2 backward final hidden state; forward layer-2 is never needed.
    _, hn_last = lstm(xg2, wh2b_ref[...], reverse=True)                 # (B, Hp)

    # ---- fc head (dropout = identity in eval mode) ----
    h1 = jnp.maximum(jnp.dot(hn_last, fc1w_ref[...], preferred_element_type=f32)
                     + fc1b_ref[...], 0.0)
    o_ref[...] = (jnp.dot(h1, fc2w_ref[...], preferred_element_type=f32)
                  + fc2b_ref[...])


# ----------------------------- wrapper (param prep + call) ---------------------

def cnn_lstm_forward(x, p):
    # x: (B, T, num_features)  (what PyTorch permutes to NCW internally)
    B, T, F = x.shape
    C = p['conv1_w'].shape[-1]            # 64
    H = p['l1f_wh'].shape[-1]             # 100
    ncls = p['fc2_w'].shape[-1]
    f32 = jnp.float32

    # fold BatchNorm (eval) into conv1; lay conv weights out for im2col matmuls
    scale = p['bn_gamma'] * jax.lax.rsqrt(p['bn_var'] + 1e-5)           # (1, C)
    w1col = (p['conv1_w'] * scale[None, :, :]).reshape(K * F, C)
    cb1 = (p['conv1_b'] - p['bn_mean']) * scale + p['bn_beta']          # (1, C)
    w2col = p['conv2_w'].reshape(K * C, C)
    cb2 = p['conv2_b']

    # concatenate LSTM gate weights ([i, f, g, o]) and lane-pad H -> HP (pads stay 0)
    def pack_l1_wx(wx):                       # (4, C, H) -> (C, 4*HP)
        out = jnp.zeros((C, 4 * HP), f32)
        for k in range(4):
            out = out.at[:, k * HP:k * HP + H].set(wx[k])
        return out

    def pack_l2_wx(wx):                       # (4, 2H, H) -> (2*HP, 4*HP)
        out = jnp.zeros((2 * HP, 4 * HP), f32)
        for k in range(4):
            out = out.at[0:H, k * HP:k * HP + H].set(wx[k, 0:H])
            out = out.at[HP:HP + H, k * HP:k * HP + H].set(wx[k, H:2 * H])
        return out

    def pack_wh(wh):                          # (4, H, H) -> (HP, 4*HP)
        out = jnp.zeros((HP, 4 * HP), f32)
        for k in range(4):
            out = out.at[0:H, k * HP:k * HP + H].set(wh[k])
        return out

    def pack_b(b):                            # (4, 1, H) -> (1, 4*HP)
        out = jnp.zeros((1, 4 * HP), f32)
        for k in range(4):
            out = out.at[:, k * HP:k * HP + H].set(b[k])
        return out

    wx1f, wh1f, gb1f = pack_l1_wx(p['l1f_wx']), pack_wh(p['l1f_wh']), pack_b(p['l1f_b'])
    wx1b, wh1b, gb1b = pack_l1_wx(p['l1b_wx']), pack_wh(p['l1b_wh']), pack_b(p['l1b_b'])
    wx2b, wh2b, gb2b = pack_l2_wx(p['l2b_wx']), pack_wh(p['l2b_wh']), pack_b(p['l2b_b'])

    fc1w = jnp.zeros((HP, HP), f32).at[:H, :H].set(p['fc1_w'])
    fc1b = jnp.zeros((1, HP), f32).at[:, :H].set(p['fc1_b'])
    fc2w = jnp.zeros((HP, ncls), f32).at[:H, :].set(p['fc2_w'])
    fc2b = p['fc2_b']

    return pl.pallas_call(
        cnn_lstm_fused_kernel,
        in_specs=[VMEM_SPEC] * 18,
        out_specs=VMEM_SPEC,
        out_shape=jax.ShapeDtypeStruct((B, ncls), f32),
    )(x, w1col, cb1, w2col, cb2,
      wx1f, wh1f, gb1f, wx1b, wh1b, gb1b, wx2b, wh2b, gb2b,
      fc1w, fc1b, fc2w, fc2b)


# ----------------------------- parameters ---------------------------------

def init_params(key, num_features, num_classes=13, c=64, h=100):
    ks = jax.random.split(key, 16)

    def u(k, shape, fan_in):
        s = 1.0 / np.sqrt(fan_in)
        return jax.random.uniform(k, shape, jnp.float32, -s, s)

    p = {}
    p['conv1_w'] = u(ks[0], (3, num_features, c), 3 * num_features)
    p['conv1_b'] = u(ks[1], (1, c), 3 * num_features)
    p['bn_gamma'] = 1.0 + 0.1 * jax.random.normal(ks[2], (1, c), jnp.float32)
    p['bn_beta'] = 0.1 * jax.random.normal(ks[3], (1, c), jnp.float32)
    p['bn_mean'] = 0.1 * jax.random.normal(ks[4], (1, c), jnp.float32)
    p['bn_var'] = jax.random.uniform(ks[5], (1, c), jnp.float32, 0.5, 1.5)
    p['conv2_w'] = u(ks[6], (3, c, c), 3 * c)
    p['conv2_b'] = u(ks[7], (1, c), 3 * c)

    def lstm_params(k, d_in):
        k1, k2, k3 = jax.random.split(k, 3)
        return (u(k1, (4, d_in, h), h), u(k2, (4, h, h), h), u(k3, (4, 1, h), h))

    p['l1f_wx'], p['l1f_wh'], p['l1f_b'] = lstm_params(ks[8], c)
    p['l1b_wx'], p['l1b_wh'], p['l1b_b'] = lstm_params(ks[9], c)
    p['l2b_wx'], p['l2b_wh'], p['l2b_b'] = lstm_params(ks[10], 2 * h)
    p['fc1_w'] = u(ks[11], (h, h), h)
    p['fc1_b'] = u(ks[12], (1, h), h)
    p['fc2_w'] = u(ks[13], (h, num_classes), h)
    p['fc2_b'] = u(ks[14], (1, num_classes), h)
    return p


# ----------------------------- pure-JAX reference -------------------------

def reference_forward(x, p):
    B = x.shape[0]

    def conv1d(inp, w, b):
        t_out = inp.shape[1] - w.shape[0] + 1
        out = sum(jnp.einsum('bti,io->bto', inp[:, k:k + t_out, :], w[k])
                  for k in range(w.shape[0]))
        return out + b[None]

    y = conv1d(x, p['conv1_w'], p['conv1_b'])
    y = ((y - p['bn_mean'][None]) / jnp.sqrt(p['bn_var'][None] + 1e-5)
         * p['bn_gamma'][None] + p['bn_beta'][None])
    y = jnp.maximum(y, 0.0)
    y = jnp.maximum(conv1d(y, p['conv2_w'], p['conv2_b']), 0.0)
    Lp = y.shape[1] // 2
    y = jnp.max(y[:, :2 * Lp].reshape(B, Lp, 2, y.shape[-1]), axis=2)
    seq = jnp.transpose(y, (1, 0, 2))                    # (L, B, 64)

    def lstm_dir(xs, wx, wh, b, reverse):
        H = wh.shape[-1]

        def step(carry, x_t):
            hh, cc = carry
            i = jax.nn.sigmoid(x_t @ wx[0] + hh @ wh[0] + b[0])
            f = jax.nn.sigmoid(x_t @ wx[1] + hh @ wh[1] + b[1])
            g = jnp.tanh(x_t @ wx[2] + hh @ wh[2] + b[2])
            o = jax.nn.sigmoid(x_t @ wx[3] + hh @ wh[3] + b[3])
            cc = f * cc + i * g
            hh = o * jnp.tanh(cc)
            return (hh, cc), hh

        xs_ord = xs[::-1] if reverse else xs
        init = (jnp.zeros((xs.shape[1], H)), jnp.zeros((xs.shape[1], H)))
        (hh, _), hs = jax.lax.scan(step, init, xs_ord)
        hs = hs[::-1] if reverse else hs
        return hs, hh

    hf, _ = lstm_dir(seq, p['l1f_wx'], p['l1f_wh'], p['l1f_b'], False)
    hb, _ = lstm_dir(seq, p['l1b_wx'], p['l1b_wh'], p['l1b_b'], True)
    seq2 = jnp.concatenate([hf, hb], axis=-1)
    _, hn_last = lstm_dir(seq2, p['l2b_wx'], p['l2b_wh'], p['l2b_b'], True)
    h = jnp.maximum(hn_last @ p['fc1_w'] + p['fc1_b'], 0.0)
    return h @ p['fc2_w'] + p['fc2_b']


# ----------------------------- main ----------------------------------------

if __name__ == "__main__":
    B, T, num_features, num_classes = 2, 16, 4, 13
    kx, kp = jax.random.split(jax.random.PRNGKey(0))
    x = jax.random.normal(kx, (B, T, num_features), jnp.float32)
    params = init_params(kp, num_features, num_classes)

    fwd = jax.jit(cnn_lstm_forward)
    out = jax.block_until_ready(fwd(x, params))
    assert out.shape == (B, num_classes), out.shape

    # Reference in full f32 precision; kernel matmuls use default MXU precision
    # (bf16 inputs, f32 accumulation), hence the slightly looser tolerance.
    with jax.default_matmul_precision("highest"):
        ref = reference_forward(x, params)
    np.testing.assert_allclose(np.asarray(out), np.asarray(ref), atol=2e-2, rtol=2e-2)
    print("KERNEL_OK")
</pallas_src>

<mosaic_0001>
module attributes {stable_mosaic.version = 11 : i64} {
  func.func @cnn_lstm_fused_kernel(%arg0: memref<2x16x4xf32, #tpu.memory_space<vmem>>, %arg1: memref<12x64xf32, #tpu.memory_space<vmem>>, %arg2: memref<1x64xf32, #tpu.memory_space<vmem>>, %arg3: memref<192x64xf32, #tpu.memory_space<vmem>>, %arg4: memref<1x64xf32, #tpu.memory_space<vmem>>, %arg5: memref<64x512xf32, #tpu.memory_space<vmem>>, %arg6: memref<128x512xf32, #tpu.memory_space<vmem>>, %arg7: memref<1x512xf32, #tpu.memory_space<vmem>>, %arg8: memref<64x512xf32, #tpu.memory_space<vmem>>, %arg9: memref<128x512xf32, #tpu.memory_space<vmem>>, %arg10: memref<1x512xf32, #tpu.memory_space<vmem>>, %arg11: memref<256x512xf32, #tpu.memory_space<vmem>>, %arg12: memref<128x512xf32, #tpu.memory_space<vmem>>, %arg13: memref<1x512xf32, #tpu.memory_space<vmem>>, %arg14: memref<128x128xf32, #tpu.memory_space<vmem>>, %arg15: memref<1x128xf32, #tpu.memory_space<vmem>>, %arg16: memref<128x13xf32, #tpu.memory_space<vmem>>, %arg17: memref<1x13xf32, #tpu.memory_space<vmem>>, %arg18: memref<2x13xf32, #tpu.memory_space<vmem>>) attributes {dimension_semantics = [], scalar_prefetch = 0 : i64, scratch_operands = 0 : i64, tpu.core_type = #tpu.core_type<tc>} {
    %c0 = arith.constant 0 : index
    %c0_0 = arith.constant 0 : index
    %c0_1 = arith.constant 0 : index
    %0 = vector.load %arg0[%c0, %c0_0, %c0_1] : memref<2x16x4xf32, #tpu.memory_space<vmem>>, vector<1x16x4xf32>
    %1 = vector.shape_cast %0 : vector<1x16x4xf32> to vector<16x4xf32>
    %2 = vector.extract_strided_slice %1 {offsets = [0, 0], sizes = [14, 4], strides = [1, 1]} : vector<16x4xf32> to vector<14x4xf32>
    %3 = vector.extract_strided_slice %1 {offsets = [1, 0], sizes = [14, 4], strides = [1, 1]} : vector<16x4xf32> to vector<14x4xf32>
    %4 = vector.extract_strided_slice %1 {offsets = [2, 0], sizes = [14, 4], strides = [1, 1]} : vector<16x4xf32> to vector<14x4xf32>
    %5 = tpu.concatenate %2, %3, %4 in 1 : vector<14x4xf32>, vector<14x4xf32>, vector<14x4xf32> -> vector<14x12xf32>
    %c1 = arith.constant 1 : index
    %c0_2 = arith.constant 0 : index
    %c0_3 = arith.constant 0 : index
    %6 = vector.load %arg0[%c1, %c0_2, %c0_3] : memref<2x16x4xf32, #tpu.memory_space<vmem>>, vector<1x16x4xf32>
    %7 = vector.shape_cast %6 : vector<1x16x4xf32> to vector<16x4xf32>
    %8 = vector.extract_strided_slice %7 {offsets = [0, 0], sizes = [14, 4], strides = [1, 1]} : vector<16x4xf32> to vector<14x4xf32>
    %9 = vector.extract_strided_slice %7 {offsets = [1, 0], sizes = [14, 4], strides = [1, 1]} : vector<16x4xf32> to vector<14x4xf32>
    %10 = vector.extract_strided_slice %7 {offsets = [2, 0], sizes = [14, 4], strides = [1, 1]} : vector<16x4xf32> to vector<14x4xf32>
    %11 = tpu.concatenate %8, %9, %10 in 1 : vector<14x4xf32>, vector<14x4xf32>, vector<14x4xf32> -> vector<14x12xf32>
    %12 = tpu.concatenate %5, %11 in 0 : vector<14x12xf32>, vector<14x12xf32> -> vector<28x12xf32>
    %c0_4 = arith.constant 0 : index
    %c0_5 = arith.constant 0 : index
    %13 = vector.load %arg1[%c0_4, %c0_5] : memref<12x64xf32, #tpu.memory_space<vmem>>, vector<12x64xf32>
    %cst = arith.constant dense<0.000000e+00> : vector<28x64xf32>
    %14 = tpu.matmul %12, %13, %cst {dimension_numbers = #tpu.dot_dimension_numbers<[1], [0], [0], [1], [0, 0, 1, 1], [], []>} : vector<28x12xf32>, vector<12x64xf32>, vector<28x64xf32> -> vector<28x64xf32>
    %c0_6 = arith.constant 0 : index
    %c0_7 = arith.constant 0 : index
    %15 = vector.load %arg2[%c0_6, %c0_7] : memref<1x64xf32, #tpu.memory_space<vmem>>, vector<1x64xf32>
    %16 = vector.broadcast %15 : vector<1x64xf32> to vector<28x64xf32>
    %17 = arith.addf %14, %16 : vector<28x64xf32>
    %cst_8 = arith.constant 0.000000e+00 : f32
    %18 = vector.broadcast %cst_8 : f32 to vector<28x64xf32>
    %19 = arith.maximumf %17, %18 : vector<28x64xf32>
    %20 = vector.extract_strided_slice %19 {offsets = [0, 0], sizes = [14, 64], strides = [1, 1]} : vector<28x64xf32> to vector<14x64xf32>
    %21 = vector.extract_strided_slice %20 {offsets = [0, 0], sizes = [12, 64], strides = [1, 1]} : vector<14x64xf32> to vector<12x64xf32>
    %22 = vector.extract_strided_slice %20 {offsets = [1, 0], sizes = [12, 64], strides = [1, 1]} : vector<14x64xf32> to vector<12x64xf32>
    %23 = vector.extract_strided_slice %20 {offsets = [2, 0], sizes = [12, 64], strides = [1, 1]} : vector<14x64xf32> to vector<12x64xf32>
    %24 = tpu.concatenate %21, %22, %23 in 1 : vector<12x64xf32>, vector<12x64xf32>, vector<12x64xf32> -> vector<12x192xf32>
    %25 = vector.extract_strided_slice %19 {offsets = [14, 0], sizes = [14, 64], strides = [1, 1]} : vector<28x64xf32> to vector<14x64xf32>
    %26 = vector.extract_strided_slice %25 {offsets = [0, 0], sizes = [12, 64], strides = [1, 1]} : vector<14x64xf32> to vector<12x64xf32>
    %27 = vector.extract_strided_slice %25 {offsets = [1, 0], sizes = [12, 64], strides = [1, 1]} : vector<14x64xf32> to vector<12x64xf32>
    %28 = vector.extract_strided_slice %25 {offsets = [2, 0], sizes = [12, 64], strides = [1, 1]} : vector<14x64xf32> to vector<12x64xf32>
    %29 = tpu.concatenate %26, %27, %28 in 1 : vector<12x64xf32>, vector<12x64xf32>, vector<12x64xf32> -> vector<12x192xf32>
    %30 = tpu.concatenate %24, %29 in 0 : vector<12x192xf32>, vector<12x192xf32> -> vector<24x192xf32>
    %c0_9 = arith.constant 0 : index
    %c0_10 = arith.constant 0 : index
    %31 = vector.load %arg3[%c0_9, %c0_10] : memref<192x64xf32, #tpu.memory_space<vmem>>, vector<192x64xf32>
    %cst_11 = arith.constant dense<0.000000e+00> : vector<24x64xf32>
    %32 = tpu.matmul %30, %31, %cst_11 {dimension_numbers = #tpu.dot_dimension_numbers<[1], [0], [0], [1], [0, 0, 1, 1], [], []>} : vector<24x192xf32>, vector<192x64xf32>, vector<24x64xf32> -> vector<24x64xf32>
    %c0_12 = arith.constant 0 : index
    %c0_13 = arith.constant 0 : index
    %33 = vector.load %arg4[%c0_12, %c0_13] : memref<1x64xf32, #tpu.memory_space<vmem>>, vector<1x64xf32>
    %34 = vector.broadcast %33 : vector<1x64xf32> to vector<24x64xf32>
    %35 = arith.addf %32, %34 : vector<24x64xf32>
    %cst_14 = arith.constant 0.000000e+00 : f32
    %36 = vector.broadcast %cst_14 : f32 to vector<24x64xf32>
    %37 = arith.maximumf %35, %36 : vector<24x64xf32>
    %38 = vector.extract_strided_slice %37 {offsets = [0, 0], sizes = [12, 64], strides = [1, 1]} : vector<24x64xf32> to vector<12x64xf32>
    %39 = vector.extract_strided_slice %38 {offsets = [0, 0], sizes = [11, 64], strides = [1, 1]} : vector<12x64xf32> to vector<11x64xf32>
    %40 = vector.extract_strided_slice %38 {offsets = [1, 0], sizes = [11, 64], strides = [1, 1]} : vector<12x64xf32> to vector<11x64xf32>
    %41 = arith.maximumf %39, %40 : vector<11x64xf32>
    %42 = vector.extract_strided_slice %37 {offsets = [12, 0], sizes = [12, 64], strides = [1, 1]} : vector<24x64xf32> to vector<12x64xf32>
    %43 = vector.extract_strided_slice %42 {offsets = [0, 0], sizes = [11, 64], strides = [1, 1]} : vector<12x64xf32> to vector<11x64xf32>
    %44 = vector.extract_strided_slice %42 {offsets = [1, 0], sizes = [11, 64], strides = [1, 1]} : vector<12x64xf32> to vector<11x64xf32>
    %45 = arith.maximumf %43, %44 : vector<11x64xf32>
    %46 = vector.extract_strided_slice %41 {offsets = [0, 0], sizes = [1, 64], strides = [1, 1]} : vector<11x64xf32> to vector<1x64xf32>
    %47 = vector.extract_strided_slice %45 {offsets = [0, 0], sizes = [1, 64], strides = [1, 1]} : vector<11x64xf32> to vector<1x64xf32>
    %48 = tpu.concatenate %46, %47 in 0 : vector<1x64xf32>, vector<1x64xf32> -> vector<2x64xf32>
    %49 = vector.extract_strided_slice %41 {offsets = [2, 0], sizes = [1, 64], strides = [1, 1]} : vector<11x64xf32> to vector<1x64xf32>
    %50 = vector.extract_strided_slice %45 {offsets = [2, 0], sizes = [1, 64], strides = [1, 1]} : vector<11x64xf32> to vector<1x64xf32>
    %51 = tpu.concatenate %49, %50 in 0 : vector<1x64xf32>, vector<1x64xf32> -> vector<2x64xf32>
    %52 = vector.extract_strided_slice %41 {offsets = [4, 0], sizes = [1, 64], strides = [1, 1]} : vector<11x64xf32> to vector<1x64xf32>
    %53 = vector.extract_strided_slice %45 {offsets = [4, 0], sizes = [1, 64], strides = [1, 1]} : vector<11x64xf32> to vector<1x64xf32>
    %54 = tpu.concatenate %52, %53 in 0 : vector<1x64xf32>, vector<1x64xf32> -> vector<2x64xf32>
    %55 = vector.extract_strided_slice %41 {offsets = [6, 0], sizes = [1, 64], strides = [1, 1]} : vector<11x64xf32> to vector<1x64xf32>
    %56 = vector.extract_strided_slice %45 {offsets = [6, 0], sizes = [1, 64], strides = [1, 1]} : vector<11x64xf32> to vector<1x64xf32>
    %57 = tpu.concatenate %55, %56 in 0 : vector<1x64xf32>, vector<1x64xf32> -> vector<2x64xf32>
    %58 = vector.extract_strided_slice %41 {offsets = [8, 0], sizes = [1, 64], strides = [1, 1]} : vector<11x64xf32> to vector<1x64xf32>
    %59 = vector.extract_strided_slice %45 {offsets = [8, 0], sizes = [1, 64], strides = [1, 1]} : vector<11x64xf32> to vector<1x64xf32>
    %60 = tpu.concatenate %58, %59 in 0 : vector<1x64xf32>, vector<1x64xf32> -> vector<2x64xf32>
    %61 = vector.extract_strided_slice %41 {offsets = [10, 0], sizes = [1, 64], strides = [1, 1]} : vector<11x64xf32> to vector<1x64xf32>
    %62 = vector.extract_strided_slice %45 {offsets = [10, 0], sizes = [1, 64], strides = [1, 1]} : vector<11x64xf32> to vector<1x64xf32>
    %63 = tpu.concatenate %61, %62 in 0 : vector<1x64xf32>, vector<1x64xf32> -> vector<2x64xf32>
    %64 = tpu.concatenate %48, %51, %54, %57, %60, %63 in 0 : vector<2x64xf32>, vector<2x64xf32>, vector<2x64xf32>, vector<2x64xf32>, vector<2x64xf32>, vector<2x64xf32> -> vector<12x64xf32>
    %c0_15 = arith.constant 0 : index
    %c0_16 = arith.constant 0 : index
    %65 = vector.load %arg5[%c0_15, %c0_16] : memref<64x512xf32, #tpu.memory_space<vmem>>, vector<64x512xf32>
    %cst_17 = arith.constant dense<0.000000e+00> : vector<12x512xf32>
    %66 = tpu.matmul %64, %65, %cst_17 {dimension_numbers = #tpu.dot_dimension_numbers<[1], [0], [0], [1], [0, 0, 1, 1], [], []>} : vector<12x64xf32>, vector<64x512xf32>, vector<12x512xf32> -> vector<12x512xf32>
    %c0_18 = arith.constant 0 : index
    %c0_19 = arith.constant 0 : index
    %67 = vector.load %arg7[%c0_18, %c0_19] : memref<1x512xf32, #tpu.memory_space<vmem>>, vector<1x512xf32>
    %68 = vector.broadcast %67 : vector<1x512xf32> to vector<12x512xf32>
    %69 = arith.addf %66, %68 : vector<12x512xf32>
    %c0_20 = arith.constant 0 : index
    %c0_21 = arith.constant 0 : index
    %70 = vector.load %arg8[%c0_20, %c0_21] : memref<64x512xf32, #tpu.memory_space<vmem>>, vector<64x512xf32>
    %cst_22 = arith.constant dense<0.000000e+00> : vector<12x512xf32>
    %71 = tpu.matmul %64, %70, %cst_22 {dimension_numbers = #tpu.dot_dimension_numbers<[1], [0], [0], [1], [0, 0, 1, 1], [], []>} : vector<12x64xf32>, vector<64x512xf32>, vector<12x512xf32> -> vector<12x512xf32>
    %c0_23 = arith.constant 0 : index
    %c0_24 = arith.constant 0 : index
    %72 = vector.load %arg10[%c0_23, %c0_24] : memref<1x512xf32, #tpu.memory_space<vmem>>, vector<1x512xf32>
    %73 = vector.broadcast %72 : vector<1x512xf32> to vector<12x512xf32>
    %74 = arith.addf %71, %73 : vector<12x512xf32>
    %c0_25 = arith.constant 0 : index
    %c0_26 = arith.constant 0 : index
    %75 = vector.load %arg6[%c0_25, %c0_26] : memref<128x512xf32, #tpu.memory_space<vmem>>, vector<128x512xf32>
    %cst_27 = arith.constant 0.000000e+00 : f32
    %76 = vector.broadcast %cst_27 : f32 to vector<2x128xf32>
    %cst_28 = arith.constant 0.000000e+00 : f32
    %77 = vector.broadcast %cst_28 : f32 to vector<2x128xf32>
    %78 = vector.extract_strided_slice %69 {offsets = [0, 0], sizes = [2, 512], strides = [1, 1]} : vector<12x512xf32> to vector<2x512xf32>
    %cst_29 = arith.constant dense<0.000000e+00> : vector<2x512xf32>
    %79 = tpu.matmul %76, %75, %cst_29 {dimension_numbers = #tpu.dot_dimension_numbers<[1], [0], [0], [1], [0, 0, 1, 1], [], []>} : vector<2x128xf32>, vector<128x512xf32>, vector<2x512xf32> -> vector<2x512xf32>
    %80 = arith.addf %78, %79 : vector<2x512xf32>
    %81 = vector.extract_strided_slice %80 {offsets = [0, 0], sizes = [2, 128], strides = [1, 1]} : vector<2x512xf32> to vector<2x128xf32>
    %82 = arith.negf %81 : vector<2x128xf32>
    %83 = math.exp %82 : vector<2x128xf32>
    %cst_30 = arith.constant 1.000000e+00 : f32
    %84 = vector.broadcast %cst_30 : f32 to vector<2x128xf32>
    %85 = arith.addf %84, %83 : vector<2x128xf32>
    %86 = arith.divf %84, %85 : vector<2x128xf32>
    %87 = vector.extract_strided_slice %80 {offsets = [0, 128], sizes = [2, 128], strides = [1, 1]} : vector<2x512xf32> to vector<2x128xf32>
    %88 = arith.negf %87 : vector<2x128xf32>
    %89 = math.exp %88 : vector<2x128xf32>
    %cst_31 = arith.constant 1.000000e+00 : f32
    %90 = vector.broadcast %cst_31 : f32 to vector<2x128xf32>
    %91 = arith.addf %90, %89 : vector<2x128xf32>
    %92 = arith.divf %90, %91 : vector<2x128xf32>
    %93 = vector.extract_strided_slice %80 {offsets = [0, 256], sizes = [2, 128], strides = [1, 1]} : vector<2x512xf32> to vector<2x128xf32>
    %94 = math.tanh %93 : vector<2x128xf32>
    %95 = vector.extract_strided_slice %80 {offsets = [0, 384], sizes = [2, 128], strides = [1, 1]} : vector<2x512xf32> to vector<2x128xf32>
    %96 = arith.negf %95 : vector<2x128xf32>
    %97 = math.exp %96 : vector<2x128xf32>
    %cst_32 = arith.constant 1.000000e+00 : f32
    %98 = vector.broadcast %cst_32 : f32 to vector<2x128xf32>
    %99 = arith.addf %98, %97 : vector<2x128xf32>
    %100 = arith.divf %98, %99 : vector<2x128xf32>
    %101 = arith.mulf %92, %77 : vector<2x128xf32>
    %102 = arith.mulf %86, %94 : vector<2x128xf32>
    %103 = arith.addf %101, %102 : vector<2x128xf32>
    %104 = math.tanh %103 : vector<2x128xf32>
    %105 = arith.mulf %100, %104 : vector<2x128xf32>
    %106 = vector.extract_strided_slice %69 {offsets = [2, 0], sizes = [2, 512], strides = [1, 1]} : vector<12x512xf32> to vector<2x512xf32>
    %cst_33 = arith.constant dense<0.000000e+00> : vector<2x512xf32>
    %107 = tpu.matmul %105, %75, %cst_33 {dimension_numbers = #tpu.dot_dimension_numbers<[1], [0], [0], [1], [0, 0, 1, 1], [], []>} : vector<2x128xf32>, vector<128x512xf32>, vector<2x512xf32> -> vector<2x512xf32>
    %108 = arith.addf %106, %107 : vector<2x512xf32>
    %109 = vector.extract_strided_slice %108 {offsets = [0, 0], sizes = [2, 128], strides = [1, 1]} : vector<2x512xf32> to vector<2x128xf32>
    %110 = arith.negf %109 : vector<2x128xf32>
    %111 = math.exp %110 : vector<2x128xf32>
    %cst_34 = arith.constant 1.000000e+00 : f32
    %112 = vector.broadcast %cst_34 : f32 to vector<2x128xf32>
    %113 = arith.addf %112, %111 : vector<2x128xf32>
    %114 = arith.divf %112, %113 : vector<2x128xf32>
    %115 = vector.extract_strided_slice %108 {offsets = [0, 128], sizes = [2, 128], strides = [1, 1]} : vector<2x512xf32> to vector<2x128xf32>
    %116 = arith.negf %115 : vector<2x128xf32>
    %117 = math.exp %116 : vector<2x128xf32>
    %cst_35 = arith.constant 1.000000e+00 : f32
    %118 = vector.broadcast %cst_35 : f32 to vector<2x128xf32>
    %119 = arith.addf %118, %117 : vector<2x128xf32>
    %120 = arith.divf %118, %119 : vector<2x128xf32>
    %121 = vector.extract_strided_slice %108 {offsets = [0, 256], sizes = [2, 128], strides = [1, 1]} : vector<2x512xf32> to vector<2x128xf32>
    %122 = math.tanh %121 : vector<2x128xf32>
    %123 = vector.extract_strided_slice %108 {offsets = [0, 384], sizes = [2, 128], strides = [1, 1]} : vector<2x512xf32> to vector<2x128xf32>
    %124 = arith.negf %123 : vector<2x128xf32>
    %125 = math.exp %124 : vector<2x128xf32>
    %cst_36 = arith.constant 1.000000e+00 : f32
    %126 = vector.broadcast %cst_36 : f32 to vector<2x128xf32>
    %127 = arith.addf %126, %125 : vector<2x128xf32>
    %128 = arith.divf %126, %127 : vector<2x128xf32>
    %129 = arith.mulf %120, %103 : vector<2x128xf32>
    %130 = arith.mulf %114, %122 : vector<2x128xf32>
    %131 = arith.addf %129, %130 : vector<2x128xf32>
    %132 = math.tanh %131 : vector<2x128xf32>
    %133 = arith.mulf %128, %132 : vector<2x128xf32>
    %134 = vector.extract_strided_slice %69 {offsets = [4, 0], sizes = [2, 512], strides = [1, 1]} : vector<12x512xf32> to vector<2x512xf32>
    %cst_37 = arith.constant dense<0.000000e+00> : vector<2x512xf32>
    %135 = tpu.matmul %133, %75, %cst_37 {dimension_numbers = #tpu.dot_dimension_numbers<[1], [0], [0], [1], [0, 0, 1, 1], [], []>} : vector<2x128xf32>, vector<128x512xf32>, vector<2x512xf32> -> vector<2x512xf32>
    %136 = arith.addf %134, %135 : vector<2x512xf32>
    %137 = vector.extract_strided_slice %136 {offsets = [0, 0], sizes = [2, 128], strides = [1, 1]} : vector<2x512xf32> to vector<2x128xf32>
    %138 = arith.negf %137 : vector<2x128xf32>
    %139 = math.exp %138 : vector<2x128xf32>
    %cst_38 = arith.constant 1.000000e+00 : f32
    %140 = vector.broadcast %cst_38 : f32 to vector<2x128xf32>
    %141 = arith.addf %140, %139 : vector<2x128xf32>
    %142 = arith.divf %140, %141 : vector<2x128xf32>
    %143 = vector.extract_strided_slice %136 {offsets = [0, 128], sizes = [2, 128], strides = [1, 1]} : vector<2x512xf32> to vector<2x128xf32>
    %144 = arith.negf %143 : vector<2x128xf32>
    %145 = math.exp %144 : vector<2x128xf32>
    %cst_39 = arith.constant 1.000000e+00 : f32
    %146 = vector.broadcast %cst_39 : f32 to vector<2x128xf32>
    %147 = arith.addf %146, %145 : vector<2x128xf32>
    %148 = arith.divf %146, %147 : vector<2x128xf32>
    %149 = vector.extract_strided_slice %136 {offsets = [0, 256], sizes = [2, 128], strides = [1, 1]} : vector<2x512xf32> to vector<2x128xf32>
    %150 = math.tanh %149 : vector<2x128xf32>
    %151 = vector.extract_strided_slice %136 {offsets = [0, 384], sizes = [2, 128], strides = [1, 1]} : vector<2x512xf32> to vector<2x128xf32>
    %152 = arith.negf %151 : vector<2x128xf32>
    %153 = math.exp %152 : vector<2x128xf32>
    %cst_40 = arith.constant 1.000000e+00 : f32
    %154 = vector.broadcast %cst_40 : f32 to vector<2x128xf32>
    %155 = arith.addf %154, %153 : vector<2x128xf32>
    %156 = arith.divf %154, %155 : vector<2x128xf32>
    %157 = arith.mulf %148, %131 : vector<2x128xf32>
    %158 = arith.mulf %142, %150 : vector<2x128xf32>
    %159 = arith.addf %157, %158 : vector<2x128xf32>
    %160 = math.tanh %159 : vector<2x128xf32>
    %161 = arith.mulf %156, %160 : vector<2x128xf32>
    %162 = vector.extract_strided_slice %69 {offsets = [6, 0], sizes = [2, 512], strides = [1, 1]} : vector<12x512xf32> to vector<2x512xf32>
    %cst_41 = arith.constant dense<0.000000e+00> : vector<2x512xf32>
    %163 = tpu.matmul %161, %75, %cst_41 {dimension_numbers = #tpu.dot_dimension_numbers<[1], [0], [0], [1], [0, 0, 1, 1], [], []>} : vector<2x128xf32>, vector<128x512xf32>, vector<2x512xf32> -> vector<2x512xf32>
    %164 = arith.addf %162, %163 : vector<2x512xf32>
    %165 = vector.extract_strided_slice %164 {offsets = [0, 0], sizes = [2, 128], strides = [1, 1]} : vector<2x512xf32> to vector<2x128xf32>
    %166 = arith.negf %165 : vector<2x128xf32>
    %167 = math.exp %166 : vector<2x128xf32>
    %cst_42 = arith.constant 1.000000e+00 : f32
    %168 = vector.broadcast %cst_42 : f32 to vector<2x128xf32>
    %169 = arith.addf %168, %167 : vector<2x128xf32>
    %170 = arith.divf %168, %169 : vector<2x128xf32>
    %171 = vector.extract_strided_slice %164 {offsets = [0, 128], sizes = [2, 128], strides = [1, 1]} : vector<2x512xf32> to vector<2x128xf32>
    %172 = arith.negf %171 : vector<2x128xf32>
    %173 = math.exp %172 : vector<2x128xf32>
    %cst_43 = arith.constant 1.000000e+00 : f32
    %174 = vector.broadcast %cst_43 : f32 to vector<2x128xf32>
    %175 = arith.addf %174, %173 : vector<2x128xf32>
    %176 = arith.divf %174, %175 : vector<2x128xf32>
    %177 = vector.extract_strided_slice %164 {offsets = [0, 256], sizes = [2, 128], strides = [1, 1]} : vector<2x512xf32> to vector<2x128xf32>
    %178 = math.tanh %177 : vector<2x128xf32>
    %179 = vector.extract_strided_slice %164 {offsets = [0, 384], sizes = [2, 128], strides = [1, 1]} : vector<2x512xf32> to vector<2x128xf32>
    %180 = arith.negf %179 : vector<2x128xf32>
    %181 = math.exp %180 : vector<2x128xf32>
    %cst_44 = arith.constant 1.000000e+00 : f32
    %182 = vector.broadcast %cst_44 : f32 to vector<2x128xf32>
    %183 = arith.addf %182, %181 : vector<2x128xf32>
    %184 = arith.divf %182, %183 : vector<2x128xf32>
    %185 = arith.mulf %176, %159 : vector<2x128xf32>
    %186 = arith.mulf %170, %178 : vector<2x128xf32>
    %187 = arith.addf %185, %186 : vector<2x128xf32>
    %188 = math.tanh %187 : vector<2x128xf32>
    %189 = arith.mulf %184, %188 : vector<2x128xf32>
    %190 = vector.extract_strided_slice %69 {offsets = [8, 0], sizes = [2, 512], strides = [1, 1]} : vector<12x512xf32> to vector<2x512xf32>
    %cst_45 = arith.constant dense<0.000000e+00> : vector<2x512xf32>
    %191 = tpu.matmul %189, %75, %cst_45 {dimension_numbers = #tpu.dot_dimension_numbers<[1], [0], [0], [1], [0, 0, 1, 1], [], []>} : vector<2x128xf32>, vector<128x512xf32>, vector<2x512xf32> -> vector<2x512xf32>
    %192 = arith.addf %190, %191 : vector<2x512xf32>
    %193 = vector.extract_strided_slice %192 {offsets = [0, 0], sizes = [2, 128], strides = [1, 1]} : vector<2x512xf32> to vector<2x128xf32>
    %194 = arith.negf %193 : vector<2x128xf32>
    %195 = math.exp %194 : vector<2x128xf32>
    %cst_46 = arith.constant 1.000000e+00 : f32
    %196 = vector.broadcast %cst_46 : f32 to vector<2x128xf32>
    %197 = arith.addf %196, %195 : vector<2x128xf32>
    %198 = arith.divf %196, %197 : vector<2x128xf32>
    %199 = vector.extract_strided_slice %192 {offsets = [0, 128], sizes = [2, 128], strides = [1, 1]} : vector<2x512xf32> to vector<2x128xf32>
    %200 = arith.negf %199 : vector<2x128xf32>
    %201 = math.exp %200 : vector<2x128xf32>
    %cst_47 = arith.constant 1.000000e+00 : f32
    %202 = vector.broadcast %cst_47 : f32 to vector<2x128xf32>
    %203 = arith.addf %202, %201 : vector<2x128xf32>
    %204 = arith.divf %202, %203 : vector<2x128xf32>
    %205 = vector.extract_strided_slice %192 {offsets = [0, 256], sizes = [2, 128], strides = [1, 1]} : vector<2x512xf32> to vector<2x128xf32>
    %206 = math.tanh %205 : vector<2x128xf32>
    %207 = vector.extract_strided_slice %192 {offsets = [0, 384], sizes = [2, 128], strides = [1, 1]} : vector<2x512xf32> to vector<2x128xf32>
    %208 = arith.negf %207 : vector<2x128xf32>
    %209 = math.exp %208 : vector<2x128xf32>
    %cst_48 = arith.constant 1.000000e+00 : f32
    %210 = vector.broadcast %cst_48 : f32 to vector<2x128xf32>
    %211 = arith.addf %210, %209 : vector<2x128xf32>
    %212 = arith.divf %210, %211 : vector<2x128xf32>
    %213 = arith.mulf %204, %187 : vector<2x128xf32>
    %214 = arith.mulf %198, %206 : vector<2x128xf32>
    %215 = arith.addf %213, %214 : vector<2x128xf32>
    %216 = math.tanh %215 : vector<2x128xf32>
    %217 = arith.mulf %212, %216 : vector<2x128xf32>
    %218 = vector.extract_strided_slice %69 {offsets = [10, 0], sizes = [2, 512], strides = [1, 1]} : vector<12x512xf32> to vector<2x512xf32>
    %cst_49 = arith.constant dense<0.000000e+00> : vector<2x512xf32>
    %219 = tpu.matmul %217, %75, %cst_49 {dimension_numbers = #tpu.dot_dimension_numbers<[1], [0], [0], [1], [0, 0, 1, 1], [], []>} : vector<2x128xf32>, vector<128x512xf32>, vector<2x512xf32> -> vector<2x512xf32>
    %220 = arith.addf %218, %219 : vector<2x512xf32>
    %221 = vector.extract_strided_slice %220 {offsets = [0, 0], sizes = [2, 128], strides = [1, 1]} : vector<2x512xf32> to vector<2x128xf32>
    %222 = arith.negf %221 : vector<2x128xf32>
    %223 = math.exp %222 : vector<2x128xf32>
    %cst_50 = arith.constant 1.000000e+00 : f32
    %224 = vector.broadcast %cst_50 : f32 to vector<2x128xf32>
    %225 = arith.addf %224, %223 : vector<2x128xf32>
    %226 = arith.divf %224, %225 : vector<2x128xf32>
    %227 = vector.extract_strided_slice %220 {offsets = [0, 128], sizes = [2, 128], strides = [1, 1]} : vector<2x512xf32> to vector<2x128xf32>
    %228 = arith.negf %227 : vector<2x128xf32>
    %229 = math.exp %228 : vector<2x128xf32>
    %cst_51 = arith.constant 1.000000e+00 : f32
    %230 = vector.broadcast %cst_51 : f32 to vector<2x128xf32>
    %231 = arith.addf %230, %229 : vector<2x128xf32>
    %232 = arith.divf %230, %231 : vector<2x128xf32>
    %233 = vector.extract_strided_slice %220 {offsets = [0, 256], sizes = [2, 128], strides = [1, 1]} : vector<2x512xf32> to vector<2x128xf32>
    %234 = math.tanh %233 : vector<2x128xf32>
    %235 = vector.extract_strided_slice %220 {offsets = [0, 384], sizes = [2, 128], strides = [1, 1]} : vector<2x512xf32> to vector<2x128xf32>
    %236 = arith.negf %235 : vector<2x128xf32>
    %237 = math.exp %236 : vector<2x128xf32>
    %cst_52 = arith.constant 1.000000e+00 : f32
    %238 = vector.broadcast %cst_52 : f32 to vector<2x128xf32>
    %239 = arith.addf %238, %237 : vector<2x128xf32>
    %240 = arith.divf %238, %239 : vector<2x128xf32>
    %241 = arith.mulf %232, %215 : vector<2x128xf32>
    %242 = arith.mulf %226, %234 : vector<2x128xf32>
    %243 = arith.addf %241, %242 : vector<2x128xf32>
    %244 = math.tanh %243 : vector<2x128xf32>
    %245 = arith.mulf %240, %244 : vector<2x128xf32>
    %c0_53 = arith.constant 0 : index
    %c0_54 = arith.constant 0 : index
    %246 = vector.load %arg9[%c0_53, %c0_54] : memref<128x512xf32, #tpu.memory_space<vmem>>, vector<128x512xf32>
    %cst_55 = arith.constant 0.000000e+00 : f32
    %247 = vector.broadcast %cst_55 : f32 to vector<2x128xf32>
    %cst_56 = arith.constant 0.000000e+00 : f32
    %248 = vector.broadcast %cst_56 : f32 to vector<2x128xf32>
    %249 = vector.extract_strided_slice %74 {offsets = [10, 0], sizes = [2, 512], strides = [1, 1]} : vector<12x512xf32> to vector<2x512xf32>
    %cst_57 = arith.constant dense<0.000000e+00> : vector<2x512xf32>
    %250 = tpu.matmul %247, %246, %cst_57 {dimension_numbers = #tpu.dot_dimension_numbers<[1], [0], [0], [1], [0, 0, 1, 1], [], []>} : vector<2x128xf32>, vector<128x512xf32>, vector<2x512xf32> -> vector<2x512xf32>
    %251 = arith.addf %249, %250 : vector<2x512xf32>
    %252 = vector.extract_strided_slice %251 {offsets = [0, 0], sizes = [2, 128], strides = [1, 1]} : vector<2x512xf32> to vector<2x128xf32>
    %253 = arith.negf %252 : vector<2x128xf32>
    %254 = math.exp %253 : vector<2x128xf32>
    %cst_58 = arith.constant 1.000000e+00 : f32
    %255 = vector.broadcast %cst_58 : f32 to vector<2x128xf32>
    %256 = arith.addf %255, %254 : vector<2x128xf32>
    %257 = arith.divf %255, %256 : vector<2x128xf32>
    %258 = vector.extract_strided_slice %251 {offsets = [0, 128], sizes = [2, 128], strides = [1, 1]} : vector<2x512xf32> to vector<2x128xf32>
    %259 = arith.negf %258 : vector<2x128xf32>
    %260 = math.exp %259 : vector<2x128xf32>
    %cst_59 = arith.constant 1.000000e+00 : f32
    %261 = vector.broadcast %cst_59 : f32 to vector<2x128xf32>
    %262 = arith.addf %261, %260 : vector<2x128xf32>
    %263 = arith.divf %261, %262 : vector<2x128xf32>
    %264 = vector.extract_strided_slice %251 {offsets = [0, 256], sizes = [2, 128], strides = [1, 1]} : vector<2x512xf32> to vector<2x128xf32>
    %265 = math.tanh %264 : vector<2x128xf32>
    %266 = vector.extract_strided_slice %251 {offsets = [0, 384], sizes = [2, 128], strides = [1, 1]} : vector<2x512xf32> to vector<2x128xf32>
    %267 = arith.negf %266 : vector<2x128xf32>
    %268 = math.exp %267 : vector<2x128xf32>
    %cst_60 = arith.constant 1.000000e+00 : f32
    %269 = vector.broadcast %cst_60 : f32 to vector<2x128xf32>
    %270 = arith.addf %269, %268 : vector<2x128xf32>
    %271 = arith.divf %269, %270 : vector<2x128xf32>
    %272 = arith.mulf %263, %248 : vector<2x128xf32>
    %273 = arith.mulf %257, %265 : vector<2x128xf32>
    %274 = arith.addf %272, %273 : vector<2x128xf32>
    %275 = math.tanh %274 : vector<2x128xf32>
    %276 = arith.mulf %271, %275 : vector<2x128xf32>
    %277 = vector.extract_strided_slice %74 {offsets = [8, 0], sizes = [2, 512], strides = [1, 1]} : vector<12x512xf32> to vector<2x512xf32>
    %cst_61 = arith.constant dense<0.000000e+00> : vector<2x512xf32>
    %278 = tpu.matmul %276, %246, %cst_61 {dimension_numbers = #tpu.dot_dimension_numbers<[1], [0], [0], [1], [0, 0, 1, 1], [], []>} : vector<2x128xf32>, vector<128x512xf32>, vector<2x512xf32> -> vector<2x512xf32>
    %279 = arith.addf %277, %278 : vector<2x512xf32>
    %280 = vector.extract_strided_slice %279 {offsets = [0, 0], sizes = [2, 128], strides = [1, 1]} : vector<2x512xf32> to vector<2x128xf32>
    %281 = arith.negf %280 : vector<2x128xf32>
    %282 = math.exp %281 : vector<2x128xf32>
    %cst_62 = arith.constant 1.000000e+00 : f32
    %283 = vector.broadcast %cst_62 : f32 to vector<2x128xf32>
    %284 = arith.addf %283, %282 : vector<2x128xf32>
    %285 = arith.divf %283, %284 : vector<2x128xf32>
    %286 = vector.extract_strided_slice %279 {offsets = [0, 128], sizes = [2, 128], strides = [1, 1]} : vector<2x512xf32> to vector<2x128xf32>
    %287 = arith.negf %286 : vector<2x128xf32>
    %288 = math.exp %287 : vector<2x128xf32>
    %cst_63 = arith.constant 1.000000e+00 : f32
    %289 = vector.broadcast %cst_63 : f32 to vector<2x128xf32>
    %290 = arith.addf %289, %288 : vector<2x128xf32>
    %291 = arith.divf %289, %290 : vector<2x128xf32>
    %292 = vector.extract_strided_slice %279 {offsets = [0, 256], sizes = [2, 128], strides = [1, 1]} : vector<2x512xf32> to vector<2x128xf32>
    %293 = math.tanh %292 : vector<2x128xf32>
    %294 = vector.extract_strided_slice %279 {offsets = [0, 384], sizes = [2, 128], strides = [1, 1]} : vector<2x512xf32> to vector<2x128xf32>
    %295 = arith.negf %294 : vector<2x128xf32>
    %296 = math.exp %295 : vector<2x128xf32>
    %cst_64 = arith.constant 1.000000e+00 : f32
    %297 = vector.broadcast %cst_64 : f32 to vector<2x128xf32>
    %298 = arith.addf %297, %296 : vector<2x128xf32>
    %299 = arith.divf %297, %298 : vector<2x128xf32>
    %300 = arith.mulf %291, %274 : vector<2x128xf32>
    %301 = arith.mulf %285, %293 : vector<2x128xf32>
    %302 = arith.addf %300, %301 : vector<2x128xf32>
    %303 = math.tanh %302 : vector<2x128xf32>
    %304 = arith.mulf %299, %303 : vector<2x128xf32>
    %305 = vector.extract_strided_slice %74 {offsets = [6, 0], sizes = [2, 512], strides = [1, 1]} : vector<12x512xf32> to vector<2x512xf32>
    %cst_65 = arith.constant dense<0.000000e+00> : vector<2x512xf32>
    %306 = tpu.matmul %304, %246, %cst_65 {dimension_numbers = #tpu.dot_dimension_numbers<[1], [0], [0], [1], [0, 0, 1, 1], [], []>} : vector<2x128xf32>, vector<128x512xf32>, vector<2x512xf32> -> vector<2x512xf32>
    %307 = arith.addf %305, %306 : vector<2x512xf32>
    %308 = vector.extract_strided_slice %307 {offsets = [0, 0], sizes = [2, 128], strides = [1, 1]} : vector<2x512xf32> to vector<2x128xf32>
    %309 = arith.negf %308 : vector<2x128xf32>
    %310 = math.exp %309 : vector<2x128xf32>
    %cst_66 = arith.constant 1.000000e+00 : f32
    %311 = vector.broadcast %cst_66 : f32 to vector<2x128xf32>
    %312 = arith.addf %311, %310 : vector<2x128xf32>
    %313 = arith.divf %311, %312 : vector<2x128xf32>
    %314 = vector.extract_strided_slice %307 {offsets = [0, 128], sizes = [2, 128], strides = [1, 1]} : vector<2x512xf32> to vector<2x128xf32>
    %315 = arith.negf %314 : vector<2x128xf32>
    %316 = math.exp %315 : vector<2x128xf32>
    %cst_67 = arith.constant 1.000000e+00 : f32
    %317 = vector.broadcast %cst_67 : f32 to vector<2x128xf32>
    %318 = arith.addf %317, %316 : vector<2x128xf32>
    %319 = arith.divf %317, %318 : vector<2x128xf32>
    %320 = vector.extract_strided_slice %307 {offsets = [0, 256], sizes = [2, 128], strides = [1, 1]} : vector<2x512xf32> to vector<2x128xf32>
    %321 = math.tanh %320 : vector<2x128xf32>
    %322 = vector.extract_strided_slice %307 {offsets = [0, 384], sizes = [2, 128], strides = [1, 1]} : vector<2x512xf32> to vector<2x128xf32>
    %323 = arith.negf %322 : vector<2x128xf32>
    %324 = math.exp %323 : vector<2x128xf32>
    %cst_68 = arith.constant 1.000000e+00 : f32
    %325 = vector.broadcast %cst_68 : f32 to vector<2x128xf32>
    %326 = arith.addf %325, %324 : vector<2x128xf32>
    %327 = arith.divf %325, %326 : vector<2x128xf32>
    %328 = arith.mulf %319, %302 : vector<2x128xf32>
    %329 = arith.mulf %313, %321 : vector<2x128xf32>
    %330 = arith.addf %328, %329 : vector<2x128xf32>
    %331 = math.tanh %330 : vector<2x128xf32>
    %332 = arith.mulf %327, %331 : vector<2x128xf32>
    %333 = vector.extract_strided_slice %74 {offsets = [4, 0], sizes = [2, 512], strides = [1, 1]} : vector<12x512xf32> to vector<2x512xf32>
    %cst_69 = arith.constant dense<0.000000e+00> : vector<2x512xf32>
    %334 = tpu.matmul %332, %246, %cst_69 {dimension_numbers = #tpu.dot_dimension_numbers<[1], [0], [0], [1], [0, 0, 1, 1], [], []>} : vector<2x128xf32>, vector<128x512xf32>, vector<2x512xf32> -> vector<2x512xf32>
    %335 = arith.addf %333, %334 : vector<2x512xf32>
    %336 = vector.extract_strided_slice %335 {offsets = [0, 0], sizes = [2, 128], strides = [1, 1]} : vector<2x512xf32> to vector<2x128xf32>
    %337 = arith.negf %336 : vector<2x128xf32>
    %338 = math.exp %337 : vector<2x128xf32>
    %cst_70 = arith.constant 1.000000e+00 : f32
    %339 = vector.broadcast %cst_70 : f32 to vector<2x128xf32>
    %340 = arith.addf %339, %338 : vector<2x128xf32>
    %341 = arith.divf %339, %340 : vector<2x128xf32>
    %342 = vector.extract_strided_slice %335 {offsets = [0, 128], sizes = [2, 128], strides = [1, 1]} : vector<2x512xf32> to vector<2x128xf32>
    %343 = arith.negf %342 : vector<2x128xf32>
    %344 = math.exp %343 : vector<2x128xf32>
    %cst_71 = arith.constant 1.000000e+00 : f32
    %345 = vector.broadcast %cst_71 : f32 to vector<2x128xf32>
    %346 = arith.addf %345, %344 : vector<2x128xf32>
    %347 = arith.divf %345, %346 : vector<2x128xf32>
    %348 = vector.extract_strided_slice %335 {offsets = [0, 256], sizes = [2, 128], strides = [1, 1]} : vector<2x512xf32> to vector<2x128xf32>
    %349 = math.tanh %348 : vector<2x128xf32>
    %350 = vector.extract_strided_slice %335 {offsets = [0, 384], sizes = [2, 128], strides = [1, 1]} : vector<2x512xf32> to vector<2x128xf32>
    %351 = arith.negf %350 : vector<2x128xf32>
    %352 = math.exp %351 : vector<2x128xf32>
    %cst_72 = arith.constant 1.000000e+00 : f32
    %353 = vector.broadcast %cst_72 : f32 to vector<2x128xf32>
    %354 = arith.addf %353, %352 : vector<2x128xf32>
    %355 = arith.divf %353, %354 : vector<2x128xf32>
    %356 = arith.mulf %347, %330 : vector<2x128xf32>
    %357 = arith.mulf %341, %349 : vector<2x128xf32>
    %358 = arith.addf %356, %357 : vector<2x128xf32>
    %359 = math.tanh %358 : vector<2x128xf32>
    %360 = arith.mulf %355, %359 : vector<2x128xf32>
    %361 = vector.extract_strided_slice %74 {offsets = [2, 0], sizes = [2, 512], strides = [1, 1]} : vector<12x512xf32> to vector<2x512xf32>
    %cst_73 = arith.constant dense<0.000000e+00> : vector<2x512xf32>
    %362 = tpu.matmul %360, %246, %cst_73 {dimension_numbers = #tpu.dot_dimension_numbers<[1], [0], [0], [1], [0, 0, 1, 1], [], []>} : vector<2x128xf32>, vector<128x512xf32>, vector<2x512xf32> -> vector<2x512xf32>
    %363 = arith.addf %361, %362 : vector<2x512xf32>
    %364 = vector.extract_strided_slice %363 {offsets = [0, 0], sizes = [2, 128], strides = [1, 1]} : vector<2x512xf32> to vector<2x128xf32>
    %365 = arith.negf %364 : vector<2x128xf32>
    %366 = math.exp %365 : vector<2x128xf32>
    %cst_74 = arith.constant 1.000000e+00 : f32
    %367 = vector.broadcast %cst_74 : f32 to vector<2x128xf32>
    %368 = arith.addf %367, %366 : vector<2x128xf32>
    %369 = arith.divf %367, %368 : vector<2x128xf32>
    %370 = vector.extract_strided_slice %363 {offsets = [0, 128], sizes = [2, 128], strides = [1, 1]} : vector<2x512xf32> to vector<2x128xf32>
    %371 = arith.negf %370 : vector<2x128xf32>
    %372 = math.exp %371 : vector<2x128xf32>
    %cst_75 = arith.constant 1.000000e+00 : f32
    %373 = vector.broadcast %cst_75 : f32 to vector<2x128xf32>
    %374 = arith.addf %373, %372 : vector<2x128xf32>
    %375 = arith.divf %373, %374 : vector<2x128xf32>
    %376 = vector.extract_strided_slice %363 {offsets = [0, 256], sizes = [2, 128], strides = [1, 1]} : vector<2x512xf32> to vector<2x128xf32>
    %377 = math.tanh %376 : vector<2x128xf32>
    %378 = vector.extract_strided_slice %363 {offsets = [0, 384], sizes = [2, 128], strides = [1, 1]} : vector<2x512xf32> to vector<2x128xf32>
    %379 = arith.negf %378 : vector<2x128xf32>
    %380 = math.exp %379 : vector<2x128xf32>
    %cst_76 = arith.constant 1.000000e+00 : f32
    %381 = vector.broadcast %cst_76 : f32 to vector<2x128xf32>
    %382 = arith.addf %381, %380 : vector<2x128xf32>
    %383 = arith.divf %381, %382 : vector<2x128xf32>
    %384 = arith.mulf %375, %358 : vector<2x128xf32>
    %385 = arith.mulf %369, %377 : vector<2x128xf32>
    %386 = arith.addf %384, %385 : vector<2x128xf32>
    %387 = math.tanh %386 : vector<2x128xf32>
    %388 = arith.mulf %383, %387 : vector<2x128xf32>
    %389 = vector.extract_strided_slice %74 {offsets = [0, 0], sizes = [2, 512], strides = [1, 1]} : vector<12x512xf32> to vector<2x512xf32>
    %cst_77 = arith.constant dense<0.000000e+00> : vector<2x512xf32>
    %390 = tpu.matmul %388, %246, %cst_77 {dimension_numbers = #tpu.dot_dimension_numbers<[1], [0], [0], [1], [0, 0, 1, 1], [], []>} : vector<2x128xf32>, vector<128x512xf32>, vector<2x512xf32> -> vector<2x512xf32>
    %391 = arith.addf %389, %390 : vector<2x512xf32>
    %392 = vector.extract_strided_slice %391 {offsets = [0, 0], sizes = [2, 128], strides = [1, 1]} : vector<2x512xf32> to vector<2x128xf32>
    %393 = arith.negf %392 : vector<2x128xf32>
    %394 = math.exp %393 : vector<2x128xf32>
    %cst_78 = arith.constant 1.000000e+00 : f32
    %395 = vector.broadcast %cst_78 : f32 to vector<2x128xf32>
    %396 = arith.addf %395, %394 : vector<2x128xf32>
    %397 = arith.divf %395, %396 : vector<2x128xf32>
    %398 = vector.extract_strided_slice %391 {offsets = [0, 128], sizes = [2, 128], strides = [1, 1]} : vector<2x512xf32> to vector<2x128xf32>
    %399 = arith.negf %398 : vector<2x128xf32>
    %400 = math.exp %399 : vector<2x128xf32>
    %cst_79 = arith.constant 1.000000e+00 : f32
    %401 = vector.broadcast %cst_79 : f32 to vector<2x128xf32>
    %402 = arith.addf %401, %400 : vector<2x128xf32>
    %403 = arith.divf %401, %402 : vector<2x128xf32>
    %404 = vector.extract_strided_slice %391 {offsets = [0, 256], sizes = [2, 128], strides = [1, 1]} : vector<2x512xf32> to vector<2x128xf32>
    %405 = math.tanh %404 : vector<2x128xf32>
    %406 = vector.extract_strided_slice %391 {offsets = [0, 384], sizes = [2, 128], strides = [1, 1]} : vector<2x512xf32> to vector<2x128xf32>
    %407 = arith.negf %406 : vector<2x128xf32>
    %408 = math.exp %407 : vector<2x128xf32>
    %cst_80 = arith.constant 1.000000e+00 : f32
    %409 = vector.broadcast %cst_80 : f32 to vector<2x128xf32>
    %410 = arith.addf %409, %408 : vector<2x128xf32>
    %411 = arith.divf %409, %410 : vector<2x128xf32>
    %412 = arith.mulf %403, %386 : vector<2x128xf32>
    %413 = arith.mulf %397, %405 : vector<2x128xf32>
    %414 = arith.addf %412, %413 : vector<2x128xf32>
    %415 = math.tanh %414 : vector<2x128xf32>
    %416 = arith.mulf %411, %415 : vector<2x128xf32>
    %417 = tpu.concatenate %105, %416 in 1 : vector<2x128xf32>, vector<2x128xf32> -> vector<2x256xf32>
    %418 = tpu.concatenate %133, %388 in 1 : vector<2x128xf32>, vector<2x128xf32> -> vector<2x256xf32>
    %419 = tpu.concatenate %161, %360 in 1 : vector<2x128xf32>, vector<2x128xf32> -> vector<2x256xf32>
    %420 = tpu.concatenate %189, %332 in 1 : vector<2x128xf32>, vector<2x128xf32> -> vector<2x256xf32>
    %421 = tpu.concatenate %217, %304 in 1 : vector<2x128xf32>, vector<2x128xf32> -> vector<2x256xf32>
    %422 = tpu.concatenate %245, %276 in 1 : vector<2x128xf32>, vector<2x128xf32> -> vector<2x256xf32>
    %423 = tpu.concatenate %417, %418, %419, %420, %421, %422 in 0 : vector<2x256xf32>, vector<2x256xf32>, vector<2x256xf32>, vector<2x256xf32>, vector<2x256xf32>, vector<2x256xf32> -> vector<12x256xf32>
    %c0_81 = arith.constant 0 : index
    %c0_82 = arith.constant 0 : index
    %424 = vector.load %arg11[%c0_81, %c0_82] : memref<256x512xf32, #tpu.memory_space<vmem>>, vector<256x512xf32>
    %cst_83 = arith.constant dense<0.000000e+00> : vector<12x512xf32>
    %425 = tpu.matmul %423, %424, %cst_83 {dimension_numbers = #tpu.dot_dimension_numbers<[1], [0], [0], [1], [0, 0, 1, 1], [], []>} : vector<12x256xf32>, vector<256x512xf32>, vector<12x512xf32> -> vector<12x512xf32>
    %c0_84 = arith.constant 0 : index
    %c0_85 = arith.constant 0 : index
    %426 = vector.load %arg13[%c0_84, %c0_85] : memref<1x512xf32, #tpu.memory_space<vmem>>, vector<1x512xf32>
    %427 = vector.broadcast %426 : vector<1x512xf32> to vector<12x512xf32>
    %428 = arith.addf %425, %427 : vector<12x512xf32>
    %c0_86 = arith.constant 0 : index
    %c0_87 = arith.constant 0 : index
    %429 = vector.load %arg12[%c0_86, %c0_87] : memref<128x512xf32, #tpu.memory_space<vmem>>, vector<128x512xf32>
    %cst_88 = arith.constant 0.000000e+00 : f32
    %430 = vector.broadcast %cst_88 : f32 to vector<2x128xf32>
    %cst_89 = arith.constant 0.000000e+00 : f32
    %431 = vector.broadcast %cst_89 : f32 to vector<2x128xf32>
    %432 = vector.extract_strided_slice %428 {offsets = [10, 0], sizes = [2, 512], strides = [1, 1]} : vector<12x512xf32> to vector<2x512xf32>
    %cst_90 = arith.constant dense<0.000000e+00> : vector<2x512xf32>
    %433 = tpu.matmul %430, %429, %cst_90 {dimension_numbers = #tpu.dot_dimension_numbers<[1], [0], [0], [1], [0, 0, 1, 1], [], []>} : vector<2x128xf32>, vector<128x512xf32>, vector<2x512xf32> -> vector<2x512xf32>
    %434 = arith.addf %432, %433 : vector<2x512xf32>
    %435 = vector.extract_strided_slice %434 {offsets = [0, 0], sizes = [2, 128], strides = [1, 1]} : vector<2x512xf32> to vector<2x128xf32>
    %436 = arith.negf %435 : vector<2x128xf32>
    %437 = math.exp %436 : vector<2x128xf32>
    %cst_91 = arith.constant 1.000000e+00 : f32
    %438 = vector.broadcast %cst_91 : f32 to vector<2x128xf32>
    %439 = arith.addf %438, %437 : vector<2x128xf32>
    %440 = arith.divf %438, %439 : vector<2x128xf32>
    %441 = vector.extract_strided_slice %434 {offsets = [0, 128], sizes = [2, 128], strides = [1, 1]} : vector<2x512xf32> to vector<2x128xf32>
    %442 = arith.negf %441 : vector<2x128xf32>
    %443 = math.exp %442 : vector<2x128xf32>
    %cst_92 = arith.constant 1.000000e+00 : f32
    %444 = vector.broadcast %cst_92 : f32 to vector<2x128xf32>
    %445 = arith.addf %444, %443 : vector<2x128xf32>
    %446 = arith.divf %444, %445 : vector<2x128xf32>
    %447 = vector.extract_strided_slice %434 {offsets = [0, 256], sizes = [2, 128], strides = [1, 1]} : vector<2x512xf32> to vector<2x128xf32>
    %448 = math.tanh %447 : vector<2x128xf32>
    %449 = vector.extract_strided_slice %434 {offsets = [0, 384], sizes = [2, 128], strides = [1, 1]} : vector<2x512xf32> to vector<2x128xf32>
    %450 = arith.negf %449 : vector<2x128xf32>
    %451 = math.exp %450 : vector<2x128xf32>
    %cst_93 = arith.constant 1.000000e+00 : f32
    %452 = vector.broadcast %cst_93 : f32 to vector<2x128xf32>
    %453 = arith.addf %452, %451 : vector<2x128xf32>
    %454 = arith.divf %452, %453 : vector<2x128xf32>
    %455 = arith.mulf %446, %431 : vector<2x128xf32>
    %456 = arith.mulf %440, %448 : vector<2x128xf32>
    %457 = arith.addf %455, %456 : vector<2x128xf32>
    %458 = math.tanh %457 : vector<2x128xf32>
    %459 = arith.mulf %454, %458 : vector<2x128xf32>
    %460 = vector.extract_strided_slice %428 {offsets = [8, 0], sizes = [2, 512], strides = [1, 1]} : vector<12x512xf32> to vector<2x512xf32>
    %cst_94 = arith.constant dense<0.000000e+00> : vector<2x512xf32>
    %461 = tpu.matmul %459, %429, %cst_94 {dimension_numbers = #tpu.dot_dimension_numbers<[1], [0], [0], [1], [0, 0, 1, 1], [], []>} : vector<2x128xf32>, vector<128x512xf32>, vector<2x512xf32> -> vector<2x512xf32>
    %462 = arith.addf %460, %461 : vector<2x512xf32>
    %463 = vector.extract_strided_slice %462 {offsets = [0, 0], sizes = [2, 128], strides = [1, 1]} : vector<2x512xf32> to vector<2x128xf32>
    %464 = arith.negf %463 : vector<2x128xf32>
    %465 = math.exp %464 : vector<2x128xf32>
    %cst_95 = arith.constant 1.000000e+00 : f32
    %466 = vector.broadcast %cst_95 : f32 to vector<2x128xf32>
    %467 = arith.addf %466, %465 : vector<2x128xf32>
    %468 = arith.divf %466, %467 : vector<2x128xf32>
    %469 = vector.extract_strided_slice %462 {offsets = [0, 128], sizes = [2, 128], strides = [1, 1]} : vector<2x512xf32> to vector<2x128xf32>
    %470 = arith.negf %469 : vector<2x128xf32>
    %471 = math.exp %470 : vector<2x128xf32>
    %cst_96 = arith.constant 1.000000e+00 : f32
    %472 = vector.broadcast %cst_96 : f32 to vector<2x128xf32>
    %473 = arith.addf %472, %471 : vector<2x128xf32>
    %474 = arith.divf %472, %473 : vector<2x128xf32>
    %475 = vector.extract_strided_slice %462 {offsets = [0, 256], sizes = [2, 128], strides = [1, 1]} : vector<2x512xf32> to vector<2x128xf32>
    %476 = math.tanh %475 : vector<2x128xf32>
    %477 = vector.extract_strided_slice %462 {offsets = [0, 384], sizes = [2, 128], strides = [1, 1]} : vector<2x512xf32> to vector<2x128xf32>
    %478 = arith.negf %477 : vector<2x128xf32>
    %479 = math.exp %478 : vector<2x128xf32>
    %cst_97 = arith.constant 1.000000e+00 : f32
    %480 = vector.broadcast %cst_97 : f32 to vector<2x128xf32>
    %481 = arith.addf %480, %479 : vector<2x128xf32>
    %482 = arith.divf %480, %481 : vector<2x128xf32>
    %483 = arith.mulf %474, %457 : vector<2x128xf32>
    %484 = arith.mulf %468, %476 : vector<2x128xf32>
    %485 = arith.addf %483, %484 : vector<2x128xf32>
    %486 = math.tanh %485 : vector<2x128xf32>
    %487 = arith.mulf %482, %486 : vector<2x128xf32>
    %488 = vector.extract_strided_slice %428 {offsets = [6, 0], sizes = [2, 512], strides = [1, 1]} : vector<12x512xf32> to vector<2x512xf32>
    %cst_98 = arith.constant dense<0.000000e+00> : vector<2x512xf32>
    %489 = tpu.matmul %487, %429, %cst_98 {dimension_numbers = #tpu.dot_dimension_numbers<[1], [0], [0], [1], [0, 0, 1, 1], [], []>} : vector<2x128xf32>, vector<128x512xf32>, vector<2x512xf32> -> vector<2x512xf32>
    %490 = arith.addf %488, %489 : vector<2x512xf32>
    %491 = vector.extract_strided_slice %490 {offsets = [0, 0], sizes = [2, 128], strides = [1, 1]} : vector<2x512xf32> to vector<2x128xf32>
    %492 = arith.negf %491 : vector<2x128xf32>
    %493 = math.exp %492 : vector<2x128xf32>
    %cst_99 = arith.constant 1.000000e+00 : f32
    %494 = vector.broadcast %cst_99 : f32 to vector<2x128xf32>
    %495 = arith.addf %494, %493 : vector<2x128xf32>
    %496 = arith.divf %494, %495 : vector<2x128xf32>
    %497 = vector.extract_strided_slice %490 {offsets = [0, 128], sizes = [2, 128], strides = [1, 1]} : vector<2x512xf32> to vector<2x128xf32>
    %498 = arith.negf %497 : vector<2x128xf32>
    %499 = math.exp %498 : vector<2x128xf32>
    %cst_100 = arith.constant 1.000000e+00 : f32
    %500 = vector.broadcast %cst_100 : f32 to vector<2x128xf32>
    %501 = arith.addf %500, %499 : vector<2x128xf32>
    %502 = arith.divf %500, %501 : vector<2x128xf32>
    %503 = vector.extract_strided_slice %490 {offsets = [0, 256], sizes = [2, 128], strides = [1, 1]} : vector<2x512xf32> to vector<2x128xf32>
    %504 = math.tanh %503 : vector<2x128xf32>
    %505 = vector.extract_strided_slice %490 {offsets = [0, 384], sizes = [2, 128], strides = [1, 1]} : vector<2x512xf32> to vector<2x128xf32>
    %506 = arith.negf %505 : vector<2x128xf32>
    %507 = math.exp %506 : vector<2x128xf32>
    %cst_101 = arith.constant 1.000000e+00 : f32
    %508 = vector.broadcast %cst_101 : f32 to vector<2x128xf32>
    %509 = arith.addf %508, %507 : vector<2x128xf32>
    %510 = arith.divf %508, %509 : vector<2x128xf32>
    %511 = arith.mulf %502, %485 : vector<2x128xf32>
    %512 = arith.mulf %496, %504 : vector<2x128xf32>
    %513 = arith.addf %511, %512 : vector<2x128xf32>
    %514 = math.tanh %513 : vector<2x128xf32>
    %515 = arith.mulf %510, %514 : vector<2x128xf32>
    %516 = vector.extract_strided_slice %428 {offsets = [4, 0], sizes = [2, 512], strides = [1, 1]} : vector<12x512xf32> to vector<2x512xf32>
    %cst_102 = arith.constant dense<0.000000e+00> : vector<2x512xf32>
    %517 = tpu.matmul %515, %429, %cst_102 {dimension_numbers = #tpu.dot_dimension_numbers<[1], [0], [0], [1], [0, 0, 1, 1], [], []>} : vector<2x128xf32>, vector<128x512xf32>, vector<2x512xf32> -> vector<2x512xf32>
    %518 = arith.addf %516, %517 : vector<2x512xf32>
    %519 = vector.extract_strided_slice %518 {offsets = [0, 0], sizes = [2, 128], strides = [1, 1]} : vector<2x512xf32> to vector<2x128xf32>
    %520 = arith.negf %519 : vector<2x128xf32>
    %521 = math.exp %520 : vector<2x128xf32>
    %cst_103 = arith.constant 1.000000e+00 : f32
    %522 = vector.broadcast %cst_103 : f32 to vector<2x128xf32>
    %523 = arith.addf %522, %521 : vector<2x128xf32>
    %524 = arith.divf %522, %523 : vector<2x128xf32>
    %525 = vector.extract_strided_slice %518 {offsets = [0, 128], sizes = [2, 128], strides = [1, 1]} : vector<2x512xf32> to vector<2x128xf32>
    %526 = arith.negf %525 : vector<2x128xf32>
    %527 = math.exp %526 : vector<2x128xf32>
    %cst_104 = arith.constant 1.000000e+00 : f32
    %528 = vector.broadcast %cst_104 : f32 to vector<2x128xf32>
    %529 = arith.addf %528, %527 : vector<2x128xf32>
    %530 = arith.divf %528, %529 : vector<2x128xf32>
    %531 = vector.extract_strided_slice %518 {offsets = [0, 256], sizes = [2, 128], strides = [1, 1]} : vector<2x512xf32> to vector<2x128xf32>
    %532 = math.tanh %531 : vector<2x128xf32>
    %533 = vector.extract_strided_slice %518 {offsets = [0, 384], sizes = [2, 128], strides = [1, 1]} : vector<2x512xf32> to vector<2x128xf32>
    %534 = arith.negf %533 : vector<2x128xf32>
    %535 = math.exp %534 : vector<2x128xf32>
    %cst_105 = arith.constant 1.000000e+00 : f32
    %536 = vector.broadcast %cst_105 : f32 to vector<2x128xf32>
    %537 = arith.addf %536, %535 : vector<2x128xf32>
    %538 = arith.divf %536, %537 : vector<2x128xf32>
    %539 = arith.mulf %530, %513 : vector<2x128xf32>
    %540 = arith.mulf %524, %532 : vector<2x128xf32>
    %541 = arith.addf %539, %540 : vector<2x128xf32>
    %542 = math.tanh %541 : vector<2x128xf32>
    %543 = arith.mulf %538, %542 : vector<2x128xf32>
    %544 = vector.extract_strided_slice %428 {offsets = [2, 0], sizes = [2, 512], strides = [1, 1]} : vector<12x512xf32> to vector<2x512xf32>
    %cst_106 = arith.constant dense<0.000000e+00> : vector<2x512xf32>
    %545 = tpu.matmul %543, %429, %cst_106 {dimension_numbers = #tpu.dot_dimension_numbers<[1], [0], [0], [1], [0, 0, 1, 1], [], []>} : vector<2x128xf32>, vector<128x512xf32>, vector<2x512xf32> -> vector<2x512xf32>
    %546 = arith.addf %544, %545 : vector<2x512xf32>
    %547 = vector.extract_strided_slice %546 {offsets = [0, 0], sizes = [2, 128], strides = [1, 1]} : vector<2x512xf32> to vector<2x128xf32>
    %548 = arith.negf %547 : vector<2x128xf32>
    %549 = math.exp %548 : vector<2x128xf32>
    %cst_107 = arith.constant 1.000000e+00 : f32
    %550 = vector.broadcast %cst_107 : f32 to vector<2x128xf32>
    %551 = arith.addf %550, %549 : vector<2x128xf32>
    %552 = arith.divf %550, %551 : vector<2x128xf32>
    %553 = vector.extract_strided_slice %546 {offsets = [0, 128], sizes = [2, 128], strides = [1, 1]} : vector<2x512xf32> to vector<2x128xf32>
    %554 = arith.negf %553 : vector<2x128xf32>
    %555 = math.exp %554 : vector<2x128xf32>
    %cst_108 = arith.constant 1.000000e+00 : f32
    %556 = vector.broadcast %cst_108 : f32 to vector<2x128xf32>
    %557 = arith.addf %556, %555 : vector<2x128xf32>
    %558 = arith.divf %556, %557 : vector<2x128xf32>
    %559 = vector.extract_strided_slice %546 {offsets = [0, 256], sizes = [2, 128], strides = [1, 1]} : vector<2x512xf32> to vector<2x128xf32>
    %560 = math.tanh %559 : vector<2x128xf32>
    %561 = vector.extract_strided_slice %546 {offsets = [0, 384], sizes = [2, 128], strides = [1, 1]} : vector<2x512xf32> to vector<2x128xf32>
    %562 = arith.negf %561 : vector<2x128xf32>
    %563 = math.exp %562 : vector<2x128xf32>
    %cst_109 = arith.constant 1.000000e+00 : f32
    %564 = vector.broadcast %cst_109 : f32 to vector<2x128xf32>
    %565 = arith.addf %564, %563 : vector<2x128xf32>
    %566 = arith.divf %564, %565 : vector<2x128xf32>
    %567 = arith.mulf %558, %541 : vector<2x128xf32>
    %568 = arith.mulf %552, %560 : vector<2x128xf32>
    %569 = arith.addf %567, %568 : vector<2x128xf32>
    %570 = math.tanh %569 : vector<2x128xf32>
    %571 = arith.mulf %566, %570 : vector<2x128xf32>
    %572 = vector.extract_strided_slice %428 {offsets = [0, 0], sizes = [2, 512], strides = [1, 1]} : vector<12x512xf32> to vector<2x512xf32>
    %cst_110 = arith.constant dense<0.000000e+00> : vector<2x512xf32>
    %573 = tpu.matmul %571, %429, %cst_110 {dimension_numbers = #tpu.dot_dimension_numbers<[1], [0], [0], [1], [0, 0, 1, 1], [], []>} : vector<2x128xf32>, vector<128x512xf32>, vector<2x512xf32> -> vector<2x512xf32>
    %574 = arith.addf %572, %573 : vector<2x512xf32>
    %575 = vector.extract_strided_slice %574 {offsets = [0, 0], sizes = [2, 128], strides = [1, 1]} : vector<2x512xf32> to vector<2x128xf32>
    %576 = arith.negf %575 : vector<2x128xf32>
    %577 = math.exp %576 : vector<2x128xf32>
    %cst_111 = arith.constant 1.000000e+00 : f32
    %578 = vector.broadcast %cst_111 : f32 to vector<2x128xf32>
    %579 = arith.addf %578, %577 : vector<2x128xf32>
    %580 = arith.divf %578, %579 : vector<2x128xf32>
    %581 = vector.extract_strided_slice %574 {offsets = [0, 128], sizes = [2, 128], strides = [1, 1]} : vector<2x512xf32> to vector<2x128xf32>
    %582 = arith.negf %581 : vector<2x128xf32>
    %583 = math.exp %582 : vector<2x128xf32>
    %cst_112 = arith.constant 1.000000e+00 : f32
    %584 = vector.broadcast %cst_112 : f32 to vector<2x128xf32>
    %585 = arith.addf %584, %583 : vector<2x128xf32>
    %586 = arith.divf %584, %585 : vector<2x128xf32>
    %587 = vector.extract_strided_slice %574 {offsets = [0, 256], sizes = [2, 128], strides = [1, 1]} : vector<2x512xf32> to vector<2x128xf32>
    %588 = math.tanh %587 : vector<2x128xf32>
    %589 = vector.extract_strided_slice %574 {offsets = [0, 384], sizes = [2, 128], strides = [1, 1]} : vector<2x512xf32> to vector<2x128xf32>
    %590 = arith.negf %589 : vector<2x128xf32>
    %591 = math.exp %590 : vector<2x128xf32>
    %cst_113 = arith.constant 1.000000e+00 : f32
    %592 = vector.broadcast %cst_113 : f32 to vector<2x128xf32>
    %593 = arith.addf %592, %591 : vector<2x128xf32>
    %594 = arith.divf %592, %593 : vector<2x128xf32>
    %595 = arith.mulf %586, %569 : vector<2x128xf32>
    %596 = arith.mulf %580, %588 : vector<2x128xf32>
    %597 = arith.addf %595, %596 : vector<2x128xf32>
    %598 = math.tanh %597 : vector<2x128xf32>
    %599 = arith.mulf %594, %598 : vector<2x128xf32>
    %c0_114 = arith.constant 0 : index
    %c0_115 = arith.constant 0 : index
    %600 = vector.load %arg14[%c0_114, %c0_115] : memref<128x128xf32, #tpu.memory_space<vmem>>, vector<128x128xf32>
    %cst_116 = arith.constant dense<0.000000e+00> : vector<2x128xf32>
    %601 = tpu.matmul %599, %600, %cst_116 {dimension_numbers = #tpu.dot_dimension_numbers<[1], [0], [0], [1], [0, 0, 1, 1], [], []>} : vector<2x128xf32>, vector<128x128xf32>, vector<2x128xf32> -> vector<2x128xf32>
    %c0_117 = arith.constant 0 : index
    %c0_118 = arith.constant 0 : index
    %602 = vector.load %arg15[%c0_117, %c0_118] : memref<1x128xf32, #tpu.memory_space<vmem>>, vector<1x128xf32>
    %603 = vector.broadcast %602 : vector<1x128xf32> to vector<2x128xf32>
    %604 = arith.addf %601, %603 : vector<2x128xf32>
    %cst_119 = arith.constant 0.000000e+00 : f32
    %605 = vector.broadcast %cst_119 : f32 to vector<2x128xf32>
    %606 = arith.maximumf %604, %605 : vector<2x128xf32>
    %c0_120 = arith.constant 0 : index
    %c0_121 = arith.constant 0 : index
    %607 = vector.load %arg16[%c0_120, %c0_121] : memref<128x13xf32, #tpu.memory_space<vmem>>, vector<128x13xf32>
    %cst_122 = arith.constant dense<0.000000e+00> : vector<2x13xf32>
    %608 = tpu.matmul %606, %607, %cst_122 {dimension_numbers = #tpu.dot_dimension_numbers<[1], [0], [0], [1], [0, 0, 1, 1], [], []>} : vector<2x128xf32>, vector<128x13xf32>, vector<2x13xf32> -> vector<2x13xf32>
    %c0_123 = arith.constant 0 : index
    %c0_124 = arith.constant 0 : index
    %609 = vector.load %arg17[%c0_123, %c0_124] : memref<1x13xf32, #tpu.memory_space<vmem>>, vector<1x13xf32>
    %610 = vector.broadcast %609 : vector<1x13xf32> to vector<2x13xf32>
    %611 = arith.addf %608, %610 : vector<2x13xf32>
    %c0_125 = arith.constant 0 : index
    %c0_126 = arith.constant 0 : index
    %612 = vector.load %arg18[%c0_125, %c0_126] : memref<2x13xf32, #tpu.memory_space<vmem>>, vector<2x13xf32>
    tpu.vector_store %arg18[%c0_125, %c0_126], %611 {strides = array<i32>} : memref<2x13xf32, #tpu.memory_space<vmem>>, vector<2x13xf32>,
    return
  }
}

</mosaic_0001>

<bundles_post_ra>
// kernel: cnn_lstm_forward.1
= control target key start
LH: loop header
LB: loop body
LE: loop exit
PB: predicated region body
PF: predicated region fallthrough
CT: control target
= control target key end

     0   :  { %s9514_s0 = inlined_call_operand.vmem [shape: f32[2,16,4], index: 0, kind: input, shape index: {}]   ;;  %s9515_s1 = inlined_call_operand.vmem [shape: f32[12,64], index: 1, kind: input, shape index: {}]   ;;  %s9516_s2 = inlined_call_operand.vmem [shape: f32[1,64], index: 2, kind: input, shape index: {}]   ;;  %s9517_s3 = inlined_call_operand.vmem [shape: f32[192,64], index: 3, kind: input, shape index: {}]   ;;  %s9518_s4 = inlined_call_operand.vmem [shape: f32[1,64], index: 4, kind: input, shape index: {}]   ;;  %s9519_s5 = inlined_call_operand.vmem [shape: f32[64,512], index: 5, kind: input, shape index: {}]   ;;  %s9520_s6 = inlined_call_operand.vmem [shape: f32[128,512], index: 6, kind: input, shape index: {}]   ;;  %s9521_s7 = inlined_call_operand.vmem [shape: f32[1,512], index: 7, kind: input, shape index: {}]   ;;  %s9522_s8 = inlined_call_operand.vmem [shape: f32[64,512], index: 8, kind: input, shape index: {}]   ;;  %s9523_s9 = inlined_call_operand.vmem [shape: f32[128,512], index: 9, kind: input, shape index: {}]   ;;  %s9524_s10 = inlined_call_operand.vmem [shape: f32[1,512], index: 10, kind: input, shape index: {}]   ;;  %s9525_s11 = inlined_call_operand.vmem [shape: f32[256,512], index: 11, kind: input, shape index: {}]   ;;  %s9526_s12 = inlined_call_operand.vmem [shape: f32[128,512], index: 12, kind: input, shape index: {}]   ;;  %s9527_s13 = inlined_call_operand.vmem [shape: f32[1,512], index: 13, kind: input, shape index: {}]   ;;  %s9528_s14 = inlined_call_operand.vmem [shape: f32[128,128], index: 14, kind: input, shape index: {}]   ;;  %s9529_s15 = inlined_call_operand.vmem [shape: f32[1,128], index: 15, kind: input, shape index: {}]   ;;  %s9530_s16 = inlined_call_operand.vmem [shape: f32[128,13], index: 16, kind: input, shape index: {}]   ;;  %s9531_s17 = inlined_call_operand.vmem [shape: f32[1,13], index: 17, kind: input, shape index: {}]   ;;  %s9532_s18 = inlined_call_operand.hbm [shape: f32[2,13], index: 18, kind: output, shape index: {}]  }
   0x1   :  { %9549 = sst [smem:[#allocation18_spill]] %s9514_s0 }
   0x2   :  { %9550 = sst [smem:[#allocation19_spill]] %s9515_s1 }
   0x3   :  { %9551 = sst [smem:[#allocation20_spill]] %s9516_s2 }
   0x4   :  { %s9552_s29 = sld [smem:[#allocation18_spill]]  ;;  %vm64_vm0 = vcmask 1046528   ;;  %vm74_vm1 = vcmask 1045504   ;;  %s9553_s23 = sld [smem:[#allocation19_spill]]  ;;  %vm144_vm2 = vcmask 1043456  }
   0x5   :  { %s6845_s24 = smov 4  }
   0xa   :  { %v61_v0 = vld [vmem:[%s9552_s29 + $0x8] sm:$0xff]  ;;  %v4890_v1 = vld [vmem:[%s9552_s29 + $0x10] sm:$0xff]  ;;  %v4891_v2 = vld [vmem:[%s9552_s29 + $0x18] sm:$0xff] }
   0xb   :  { %v66_v3 = vrot.slane %v61_v0, 1  ;;  %v95_v4 = vrot.slane %v4890_v1, 1  ;;  %v96_v5 = vrot.slane %v4891_v2, 1  ;;  %v60_v6 = vld [vmem:[%s9552_s29] sm:$0xff]  ;;  %v104_v7 = vrot.slane %v4890_v1, 2 }
   0xc   :  { %v65_v8 = vrot.slane %v60_v6, 1  ;;  %v105_v9 = vrot.slane %v4891_v2, 2  ;;  %v124_v10 = vld [vmem:[%s9553_s23] sm:$0xff]  ;;  %v125_v12 = vld [vmem:[%s9553_s23 + $0x8] sm:$0xf] }
   0xd   :  { %70 = vrot.lane.b32.xlu1 %v66_v3, %s6845_s24  ;;  %v97_v11 = vsel %vm64_vm0, %v95_v4, %v96_v5  ;;  %v5086_v14 = vpack.c.bf16 %v125_v12, %v124_v10 }
   0xe   :  { %98 = vrot.lane.b32.xlu0 %v97_v11, %s6845_s24  ;;  %v67_v13 = vsel %vm64_vm0, %v65_v8, %v66_v3 }
   0xf   :  { %23 = vsyncpa [#allocation3], 0  ;;  %v106_v15 = vsel %vm74_vm1, %v104_v7, %v105_v9  ;;  %v76_v16 = vrot.slane %v61_v0, 2  ;;  %v75_v17 = vrot.slane %v60_v6, 2  ;;  %vm6846_vm3 = vmmov 1   ;;  %s6847_s27 = smov 8  }
  0x10   :  { %vm5087_vm4 = vmpackc.low %vm144_vm2, %vm6846_vm3  ;;  %vm84_vm5 = vcmask 31744   ;;  %vm87_vm6 = vcmask 64512   ;;  %vm133_vm7 = vcmask 97280   ;;  %v294_v39 = vld [vmem:[%s9517_s3] sm:$0xff]  ;;  %v295_v40 = vld [vmem:[%s9517_s3 + $0x8] sm:$0xff]  ;;  %v9535_v42 = vmov 0.0|0.0  }
  0x11   :  { %68 = vrot.lane.b32.xlu1 %v67_v13, %s6845_s24  ;;  %5088 = vmatprep.subr.msk.bf16.mxu0 %vm5087_vm4, %v5086_v14  ;;  %v77_v18 = vsel %vm74_vm1, %v75_v17, %v76_v16  ;;  %v296_v41 = vld [vmem:[%s9517_s3 + $0x10] sm:$0xff]  ;;  %v5093_v43 = vpack.c.bf16 %v295_v40, %v294_v39  ;;  %v297_v44 = vld [vmem:[%s9517_s3 + $0x18] sm:$0xff]  ;;  %v298_v46 = vld [vmem:[%s9517_s3 + $0x20] sm:$0xff]  ;;  %s9554_s29 = sld [smem:[#allocation20_spill]]  ;;  %vm252_vm8 = vcmask 523264   ;;  %vm434_vm9 = vcmask 1040384  }
  0x12   :  { %107 = vrot.lane.b32.xlu0 %v106_v15, %s6847_s27  ;;  %5091 = vmatpush3.bf16.msk.msra.mxu0 %vm5087_vm4, %v5086_v14  ;;  %v5096_v45 = vpack.c.bf16 %v297_v44, %v296_v41  ;;  %v299_v47 = vld [vmem:[%s9517_s3 + $0x28] sm:$0xff]  ;;  %v300_v49 = vld [vmem:[%s9517_s3 + $0x30] sm:$0xff]  ;;  %v301_v50 = vld [vmem:[%s9517_s3 + $0x38] sm:$0xff]  ;;  %vm474_vm10 = vcmask 1041408   ;;  %vm6851_vm11 = vmmov 0   ;;  %vm4874_vm12 = vcmask 99328  }
  0x13   :  { %5092 = vmatprep.subr.bf16.mxu1 %v9535_v42  ;;  %v5099_v48 = vpack.c.bf16 %v299_v47, %v298_v46  ;;  %v5102_v51 = vpack.c.bf16 %v301_v50, %v300_v49  ;;  %v302_v52 = vld [vmem:[%s9517_s3 + $0x40] sm:$0xff]  ;;  %v303_v53 = vld [vmem:[%s9517_s3 + $0x48] sm:$0xff]  ;;  %v304_v55 = vld [vmem:[%s9517_s3 + $0x50] sm:$0xff] }
  0x14   :  { %5094 = vmatpush1.bf16.msra.mxu1 %v5093_v43  ;;  %v5105_v54 = vpack.c.bf16 %v303_v53, %v302_v52  ;;  %v305_v56 = vld [vmem:[%s9517_s3 + $0x58] sm:$0xff]  ;;  %v306_v58 = vld [vmem:[%s9517_s3 + $0x60] sm:$0xff]  ;;  %v307_v59 = vld [vmem:[%s9517_s3 + $0x68] sm:$0xff] }
  0x15   :  { %80 = vrot.lane.b32.xlu1 %v76_v16, %s6847_s27  ;;  %5095 = vmatprep.subr.bf16.mxu1 %v9535_v42  ;;  %v5108_v57 = vpack.c.bf16 %v305_v56, %v304_v55  ;;  %v5111_v60 = vpack.c.bf16 %v307_v59, %v306_v58  ;;  %v308_v61 = vld [vmem:[%s9517_s3 + $0x70] sm:$0xff]  ;;  %v309_v62 = vld [vmem:[%s9517_s3 + $0x78] sm:$0xff]  ;;  %v315_v7 = vld [vmem:[%s9517_s3 + $0xa8] sm:$0xff] }
  0x16   :  { %78 = vrot.lane.b32.xlu0 %v77_v18, %s6847_s27  ;;  %v5114_v63 = vpack.c.bf16 %v309_v62, %v308_v61  ;;  %v312_v3 = vld [vmem:[%s9517_s3 + $0x90] sm:$0xff]  ;;  %v313_v4 = vld [vmem:[%s9517_s3 + $0x98] sm:$0xff] }
  0x17   :  { %v316_v15 = vld [vmem:[%s9517_s3 + $0xb0] sm:$0xff]  ;;  %v317_v16 = vld [vmem:[%s9517_s3 + $0xb8] sm:$0xff] }
  0x18   :  { %5097 = vmatpush1.bf16.msra.mxu1 %v5096_v45  ;;  %v5126_v18 = vpack.c.bf16 %v317_v16, %v316_v15  ;;  %v708_v15 = vld [vmem:[%s9522_s8 + $0x78] sm:$0xff]  ;;  %v487_v16 = vld [vmem:[%s9519_s5 + $0x40] sm:$0xff] }
  0x19   :  { %109 = vrot.lane.b32.xlu1 %v105_v9, %s6847_s27  ;;  %5098 = vmatprep.subr.bf16.mxu1 %v9535_v42  ;;  %v4892_v9 = vld [vmem:[%s9554_s29] ss:$0 sm:$0xff] }
  0x1a   :  { %100 = vrot.lane.b32.xlu0 %v96_v5, %s6845_s24  ;;  %v5120_v5 = vpack.c.bf16 %v313_v4, %v312_v3  ;;  %v700_v3 = vld [vmem:[%s9522_s8 + $0x38] sm:$0xff]  ;;  %v479_v4 = vld [vmem:[%s9519_s5] sm:$0xff] }
  0x1c   :  { %5100 = vmatpush1.bf16.msra.mxu1 %v5099_v48 }
  0x1d   :  { %5101 = vmatprep.subr.bf16.mxu1 %v9535_v42 }
  0x20   :  { %5103 = vmatpush1.bf16.msra.mxu1 %v5102_v51 }
  0x21   :  { %5104 = vmatprep.subr.bf16.mxu1 %v9535_v42 }
  0x24   :  { %5106 = vmatpush1.bf16.msra.mxu1 %v5105_v54 }
  0x25   :  { %5107 = vmatprep.subr.bf16.mxu1 %v9535_v42 }
  0x28   :  { %5109 = vmatpush1.bf16.msra.mxu1 %v5108_v57 }
  0x29   :  { %5110 = vmatprep.subr.bf16.mxu1 %v9535_v42 }
  0x2c   :  { %5112 = vmatpush1.bf16.msra.mxu1 %v5111_v60 }
  0x2d   :  { %5113 = vmatprep.subr.bf16.mxu1 %v9535_v42 }
  0x30   :  { %5115 = vmatpush1.bf16.msra.mxu1 %v5114_v63  ;;  %v480_v63 = vld [vmem:[%s9519_s5 + $0x8] sm:$0xff] }
  0x31   :  { %5116 = vmatprep.subr.bf16.mxu1 %v9535_v42 }
  0x7f   :  { %v71_v19 = vpop.permute.xlu1 %70 }
  0x80   :  { %v99_v20 = vpop.permute.xlu0 %98  ;;  %v86_v26 = vsel %vm84_vm5, %v61_v0, %v71_v19  ;;  %v310_v0 = vld [vmem:[%s9517_s3 + $0x80] sm:$0xff] }
  0x81   :  { %v113_v22 = vsel %vm84_vm5, %v4890_v1, %v99_v20  ;;  %v311_v1 = vld [vmem:[%s9517_s3 + $0x88] sm:$0xff] }
  0x83   :  { %v69_v21 = vpop.permute.xlu1 %68 }
  0x84   :  { %v108_v23 = vpop.permute.xlu0 %107  ;;  %v85_v28 = vsel %vm84_vm5, %v60_v6, %v69_v21  ;;  %v314_v6 = vld [vmem:[%s9517_s3 + $0xa0] sm:$0xff]  ;;  %s6849_s3 = smov 64  }
  0x85   :  { %v115_v24 = vsel %vm87_vm6, %v113_v22, %v108_v23  ;;  %v5123_v8 = vpack.c.bf16 %v315_v7, %v314_v6 }
  0x86   :  { %v119_v25 = vrot.slane %v115_v24, 2 }
  0x87   :  { %v81_v27 = vpop.permute.xlu1 %80 }
  0x88   :  { %v89_v29 = vsel %vm87_vm6, %v86_v26, %v81_v27  ;;  %v79_v30 = vpop.permute.xlu0 %78 }
  0x89   :  { %v88_v31 = vsel %vm87_vm6, %v85_v28, %v79_v30  ;;  %v123_v32 = vsel %vm74_vm1, %v89_v29, %v119_v25 }
  0x8a   :  { %5010 = vmatprep.mubr.msk.f32.mxu0 %vm133_vm7, %v88_v31 }
  0x8b   :  { %5011 = vmatmul.mubr.msk.f32.vlgmr.msra.gmra.mrb[0].mxu0 %vm133_vm7, %v123_v32  ;;  %v110_v33 = vpop.permute.xlu1 %109 }
  0x8c   :  { %v101_v34 = vpop.permute.xlu0 %100 }
  0x8d   :  { %v114_v35 = vsel %vm84_vm5, %v4891_v2, %v101_v34  ;;  %v5117_v2 = vpack.c.bf16 %v311_v1, %v310_v0  ;;  %v484_v0 = vld [vmem:[%s9519_s5 + $0x28] sm:$0xff]  ;;  %v696_v1 = vld [vmem:[%s9522_s8 + $0x18] sm:$0xff] }
  0x8e   :  { %v116_v36 = vsel %vm87_vm6, %v114_v35, %v110_v33  ;;  %v5176_v6 = vpack.c.bf16 %v700_v3, %v696_v1 }
  0x8f   :  { %v120_v37 = vrot.slane %v116_v36, 2  ;;  %5118 = vmatpush1.bf16.msra.mxu1 %v5117_v2  ;;  %v5128_v2 = vpack.c.bf16 %v484_v0, %v480_v63 }
  0x90   :  { %5119 = vmatprep.subr.bf16.mxu1 %v9535_v42 }
  0x91   :  { %v121_v38 = vsel %vm74_vm1, %v119_v25, %v120_v37  ;;  %5129 = vmatprep.subr.bf16.mxu0 %v5128_v2 }
  0x92   :  { %5013 = vmatprep.mubr.msk.f32.mxu0 %vm133_vm7, %v121_v38 }
  0x93   :  { %5014 = vmatmul.mubr.msk.f32.gmra.mrb[2].mxu0 %vm133_vm7, %v120_v37  ;;  %5121 = vmatpush1.bf16.msra.mxu1 %v5120_v5  ;;  %v483_v5 = vld [vmem:[%s9519_s5 + $0x20] sm:$0xff] }
  0x94   :  { %5122 = vmatprep.subr.bf16.mxu1 %v9535_v42  ;;  %v5130_v7 = vpack.c.bf16 %v483_v5, %v479_v4 }
  0x96   :  { %5131 = vmatpush1.bf16.msra.mxu0 %v5130_v7 }
  0x97   :  { %5124 = vmatpush1.bf16.msra.mxu1 %v5123_v8  ;;  %v695_v8 = vld [vmem:[%s9522_s8 + $0x10] sm:$0xff] }
  0x98   :  { %5125 = vmatprep.subr.bf16.mxu1 %v9535_v42 }
  0x9b   :  { %5127 = vmatpush1.bf16.msra.mxu1 %v5126_v18 }
  0x9c   :  { %5177 = vmatprep.subr.bf16.mxu1 %v5176_v6 }
 0x15e   :  { %v5012_v10 = vpop.f32.mrb[0].mxu0 }
 0x15f   :  { %v220_v11 = vadd.f32 %v5012_v10, %v4892_v9  ;;  %v214_v12 = vpop.f32.mrb[1].mxu0 }
 0x160   :  { %v215_v13 = vadd.f32 %v4892_v9, %v214_v12  ;;  %v492_v12 = vld [vmem:[%s9519_s5 + $0x68] sm:$0xff] }
 0x161   :  { %v234_v14 = vmax.f32 %v220_v11, 0.0  ;;  %v488_v11 = vld [vmem:[%s9519_s5 + $0x48] sm:$0xff] }
 0x162   :  { %v233_v17 = vmax.f32 %v215_v13, 0.0  ;;  %v704_v13 = vld [vmem:[%s9522_s8 + $0x58] sm:$0xff] }
 0x163   :  { %v249_v19 = vrot.slane %v234_v14, 2  ;;  %v240_v27 = vrot.slane %v234_v14, 1  ;;  %v5180_v18 = vpack.c.bf16 %v708_v15, %v704_v13 }
 0x164   :  { %v248_v20 = vrot.slane %v233_v17, 2  ;;  %v239_v28 = vrot.slane %v233_v17, 1 }
 0x166   :  { %v5015_v21 = vpop.f32.mrb[2].mxu0  ;;  %v250_v22 = vsel %vm74_vm1, %v248_v20, %v249_v19  ;;  %v241_v33 = vsel %vm64_vm0, %v239_v28, %v240_v27  ;;  %v703_v20 = vld [vmem:[%s9522_s8 + $0x50] sm:$0xff]  ;;  %v495_v28 = vld [vmem:[%s9519_s5 + $0x80] sm:$0xff] }
 0x167   :  { %v230_v23 = vadd.f32 %v5015_v21, %v4892_v9  ;;  %v224_v24 = vpop.f32.mrb[3].mxu0  ;;  %4899 = vmatprep.mubr.msk.f32.mxu1 %vm252_vm8, %v250_v22  ;;  %v707_v21 = vld [vmem:[%s9522_s8 + $0x70] sm:$0xff] }
 0x168   :  { %v225_v25 = vadd.f32 %v4892_v9, %v224_v24  ;;  %v699_v9 = vld [vmem:[%s9522_s8 + $0x30] sm:$0xff]  ;;  %v5182_v22 = vpack.c.bf16 %v707_v21, %v703_v20  ;;  %v500_v24 = vld [vmem:[%s9519_s5 + $0xa8] sm:$0xff] }
 0x169   :  { %v236_v26 = vmax.f32 %v230_v23, 0.0  ;;  %v5178_v10 = vpack.c.bf16 %v699_v9, %v695_v8  ;;  %v496_v23 = vld [vmem:[%s9519_s5 + $0x88] sm:$0xff] }
 0x16a   :  { %v235_v29 = vmax.f32 %v225_v25, 0.0  ;;  %v712_v25 = vld [vmem:[%s9522_s8 + $0x98] sm:$0xff] }
 0x16b   :  { %v259_v30 = vrot.slane %v236_v26, 1  ;;  %v271_v36 = vrot.slane %v236_v26, 2 }
 0x16c   :  { %v257_v31 = vrot.slane %v235_v29, 1  ;;  %v270_v37 = vrot.slane %v235_v29, 2 }
 0x16d   :  { %v287_v57 = vrot.slane %v271_v36, 2 }
 0x16e   :  { %v260_v32 = vsel %vm64_vm0, %v257_v31, %v259_v30  ;;  %v258_v34 = vsel %vm64_vm0, %v240_v27, %v257_v31  ;;  %v272_v38 = vsel %vm74_vm1, %v270_v37, %v271_v36  ;;  %v282_v39 = vrot.slane %v270_v37, 2  ;;  %v508_v36 = vld [vmem:[%s9519_s5 + $0xe8] sm:$0xff]  ;;  %v720_v37 = vld [vmem:[%s9522_s8 + $0xd8] sm:$0xff] }
 0x16f   :  { %263 = vrot.lane.b32.xlu1 %v260_v32, %s6849_s3  ;;  %v6528_v35 = vpack.i.bf16 %v258_v34, %v241_v33  ;;  %v283_v40 = vrot.slane %v272_v38, 2  ;;  %v711_v32 = vld [vmem:[%s9522_s8 + $0x90] sm:$0xff] }
 0x170   :  { %v715_v33 = vld [vmem:[%s9522_s8 + $0xb0] sm:$0xff] }
 0x171   :  { %6529 = vrot.lane.b32.xlu0 %v6528_v35, %s6849_s3  ;;  %v284_v47 = vsel %vm74_vm1, %v282_v39, %v283_v40  ;;  %v288_v61 = vsel %vm74_vm1, %v283_v40, %v287_v57  ;;  %v5186_v34 = vpack.c.bf16 %v715_v33, %v711_v32  ;;  %v504_v35 = vld [vmem:[%s9519_s5 + $0xc8] sm:$0xff]  ;;  %v724_v39 = vld [vmem:[%s9522_s8 + $0xf8] sm:$0xff]  ;;  %v503_v40 = vld [vmem:[%s9519_s5 + $0xc0] sm:$0xff] }
 0x172   :  { %v293_v55 = vsel %vm144_vm2, %v249_v19, %v284_v47  ;;  %v5140_v38 = vpack.c.bf16 %v508_v36, %v504_v35  ;;  %v907_v32 = vld [vmem:[%s9520_s6 + $0x30] sm:$0xff]  ;;  %v494_v35 = vld [vmem:[%s9519_s5 + $0x78] sm:$0xff] }
 0x173   :  { %265 = vrot.lane.b32.xlu1 %v259_v30, %s6849_s3 }
 0x175   :  { %244 = vrot.lane.b32.xlu0 %v240_v27, %s6849_s3  ;;  %v716_v27 = vld [vmem:[%s9522_s8 + $0xb8] sm:$0xff] }
 0x176   :  { %v5184_v30 = vpack.c.bf16 %v716_v27, %v712_v25  ;;  %v481_v25 = vld [vmem:[%s9519_s5 + $0x10] sm:$0xff] }
 0x1e1   :  { %v264_v41 = vpop.permute.xlu1 %263 }
 0x1e2   :  { %v274_v44 = vsel %vm252_vm8, %v235_v29, %v264_v41  ;;  %v499_v29 = vld [vmem:[%s9519_s5 + $0xa0] sm:$0xff] }
 0x1e3   :  { %v6530_v43 = vpop.permute.xlu0 %6529  ;;  %v280_v51 = vrot.slane %v274_v44, 2  ;;  %v5138_v31 = vpack.c.bf16 %v499_v29, %v495_v28  ;;  %v507_v41 = vld [vmem:[%s9519_s5 + $0xe0] sm:$0xff] }
 0x1e4   :  { %v6532_v45 = vunpack.i.h.bf16 %v6530_v43  ;;  %v6531_v46 = vunpack.i.l.bf16 %v6530_v43  ;;  %v5188_v43 = vpack.c.bf16 %v724_v39, %v720_v37  ;;  %v5142_v44 = vpack.c.bf16 %v507_v41, %v503_v40  ;;  %v912_v39 = vld [vmem:[%s9520_s6 + $0x58] sm:$0xff] }
 0x1e5   :  { %v266_v48 = vpop.permute.xlu1 %265  ;;  %v916_v40 = vld [vmem:[%s9520_s6 + $0x78] sm:$0xff] }
 0x1e6   :  { %v273_v49 = vsel %vm252_vm8, %v234_v14, %v6532_v45  ;;  %v253_v50 = vsel %vm252_vm8, %v233_v17, %v6531_v46  ;;  %v275_v53 = vsel %vm252_vm8, %v236_v26, %v266_v48  ;;  %v491_v17 = vld [vmem:[%s9519_s5 + $0x60] sm:$0xff]  ;;  %v5136_v26 = vpack.c.bf16 %v500_v24, %v496_v23  ;;  %v719_v45 = vld [vmem:[%s9522_s8 + $0xd0] sm:$0xff]  ;;  %v482_v48 = vld [vmem:[%s9519_s5 + $0x18] sm:$0xff] }
 0x1e7   :  { %v279_v52 = vrot.slane %v273_v49, 2  ;;  %v245_v54 = vpop.permute.xlu0 %244  ;;  %397 = vmatmul.mubr.f32.vlgmr.msra.gmra.mrb[0].mxu1 %v253_v50  ;;  %v285_v59 = vrot.slane %v275_v53, 2  ;;  %v5134_v19 = vpack.c.bf16 %v491_v17, %v487_v16  ;;  %v723_v46 = vld [vmem:[%s9522_s8 + $0xf0] sm:$0xff]  ;;  %v486_v49 = vld [vmem:[%s9519_s5 + $0x38] sm:$0xff]  ;;  %v9537_v53 = vmov 0.0  }
 0x1e8   :  { %v254_v56 = vsel %vm252_vm8, %v234_v14, %v245_v54  ;;  %4900 = vmatprep.mubr.msk.f32.mxu1 %vm252_vm8, %v293_v55  ;;  %5179 = vmatpush1.bf16.msra.mxu1 %v5178_v10  ;;  %v5132_v14 = vpack.c.bf16 %v492_v12, %v488_v11  ;;  %v5190_v47 = vpack.c.bf16 %v723_v46, %v719_v45  ;;  %v904_v50 = vld [vmem:[%s9520_s6 + $0x18] sm:$0xff]  ;;  %v4898_v55 = vld [vmem:[%s9518_s4] ss:$0 sm:$0xff]  ;;  %v489_v46 = vld [vmem:[%s9519_s5 + $0x50] sm:$0xff] }
 0x1e9   :  { %v281_v58 = vsel %vm74_vm1, %v279_v52, %v280_v51  ;;  %v286_v62 = vsel %vm74_vm1, %v280_v51, %v285_v59  ;;  %5181 = vmatprep.subr.bf16.mxu1 %v5180_v18  ;;  %v5144_v51 = vpack.c.bf16 %v486_v49, %v482_v48  ;;  %v908_v52 = vld [vmem:[%s9520_s6 + $0x38] sm:$0xff]  ;;  %603 = vmatprep.mubr.f32.mxu0 %v9537_v53 }
 0x1ea   :  { %v292_v60 = vsel %vm144_vm2, %v254_v56, %v281_v58  ;;  %5133 = vmatprep.subr.bf16.mxu0 %v5132_v14  ;;  %v7196_v54 = vpack.c.bf16 %v908_v52, %v904_v50  ;;  %v911_v50 = vld [vmem:[%s9520_s6 + $0x50] sm:$0xff]  ;;  %v498_v52 = vld [vmem:[%s9519_s5 + $0x98] sm:$0xff] }
 0x1eb   :  { %402 = vmatmul.mubr.f32.gmra.mrb[2].mxu1 %v292_v60  ;;  %5135 = vmatpush1.bf16.msra.mxu0 %v5134_v19 }
 0x1ec   :  { %4901 = vmatprep.mubr.msk.f32.mxu1 %vm252_vm8, %v288_v61  ;;  %5183 = vmatpush1.bf16.msra.mxu1 %v5182_v22 }
 0x1ed   :  { %5137 = vmatprep.subr.bf16.mxu0 %v5136_v26  ;;  %5185 = vmatprep.subr.bf16.mxu1 %v5184_v30  ;;  %v485_v26 = vld [vmem:[%s9519_s5 + $0x30] sm:$0xff] }
 0x1ef   :  { %407 = vmatmul.mubr.f32.gmra.mrb[4].mxu1 %v286_v62  ;;  %5139 = vmatpush1.bf16.msra.mxu0 %v5138_v31  ;;  %v903_v31 = vld [vmem:[%s9520_s6 + $0x10] sm:$0xff] }
 0x1f0   :  { %5187 = vmatpush1.bf16.msra.mxu1 %v5186_v34  ;;  %5141 = vmatprep.subr.bf16.mxu0 %v5140_v38  ;;  %v490_v34 = vld [vmem:[%s9519_s5 + $0x58] sm:$0xff]  ;;  %v5146_v38 = vpack.c.bf16 %v485_v26, %v481_v25  ;;  %v697_v25 = vld [vmem:[%s9522_s8 + $0x20] sm:$0xff]  ;;  %v935_v26 = vld [vmem:[%s9520_s6 + $0x110] sm:$0xff] }
 0x1f1   :  { %5189 = vmatprep.subr.bf16.mxu1 %v5188_v43  ;;  %888 = vmatprep.mubr.f32.mxu1 %v9537_v53  ;;  %v5148_v49 = vpack.c.bf16 %v494_v35, %v490_v34  ;;  %v701_v34 = vld [vmem:[%s9522_s8 + $0x40] sm:$0xff] }
 0x1f2   :  { %v705_v35 = vld [vmem:[%s9522_s8 + $0x60] sm:$0xff] }
 0x1f3   :  { %5143 = vmatpush1.bf16.msra.mxu0 %v5142_v44  ;;  %v7236_v44 = vpack.c.bf16 %v907_v32, %v903_v31  ;;  %v948_v31 = vld [vmem:[%s9520_s6 + $0x178] sm:$0xff] }
 0x1f4   :  { %5191 = vmatpush1.bf16.msra.mxu1 %v5190_v47  ;;  %5145 = vmatprep.subr.bf16.mxu0 %v5144_v51  ;;  %v493_v47 = vld [vmem:[%s9519_s5 + $0x70] sm:$0xff] }
 0x1f5   :  { %5225 = vmatprep.subr.bf16.mxu1 %v7196_v54  ;;  %v915_v51 = vld [vmem:[%s9520_s6 + $0x70] sm:$0xff] }
 0x2ba   :  { %v398_v56 = vpop.f32.mrb[0].mxu1 }
 0x2bb   :  { %v399_v57 = vadd.f32 %v4898_v55, %v398_v56  ;;  %v400_v58 = vpop.f32.mrb[1].mxu1  ;;  %v7260_v56 = vpack.c.bf16 %v916_v40, %v912_v39  ;;  %v710_v39 = vld [vmem:[%s9522_s8 + $0x88] sm:$0xff] }
 0x2bc   :  { %v920_v58 = vld [vmem:[%s9520_s6 + $0x98] sm:$0xff] }
 0x2bd   :  { %v412_v60 = vmax.f32 %v399_v57, 0.0  ;;  %v502_v57 = vld [vmem:[%s9519_s5 + $0xb8] sm:$0xff] }
 0x2be   :  { %v403_v59 = vpop.f32.mrb[2].mxu1 }
 0x2bf   :  { %v404_v61 = vadd.f32 %v4898_v55, %v403_v59  ;;  %v405_v62 = vpop.f32.mrb[3].mxu1  ;;  %v417_v1 = vrot.slane %v412_v60, 1  ;;  %v924_v59 = vld [vmem:[%s9520_s6 + $0xb8] sm:$0xff] }
 0x2c0   :  { %v497_v62 = vld [vmem:[%s9519_s5 + $0x90] sm:$0xff] }
 0x2c1   :  { %v413_v63 = vmax.f32 %v404_v61, 0.0  ;;  %v7276_v61 = vpack.c.bf16 %v915_v51, %v911_v50  ;;  %v713_v50 = vld [vmem:[%s9522_s8 + $0xa0] sm:$0xff] }
 0x2c2   :  { %v408_v0 = vpop.f32.mrb[4].mxu1 }
 0x2c3   :  { %v418_v2 = vrot.slane %v413_v63, 1  ;;  %v409_v3 = vadd.f32 %v4898_v55, %v408_v0  ;;  %v410_v4 = vpop.f32.mrb[5].mxu1  ;;  %v5152_v0 = vpack.c.bf16 %v502_v57, %v498_v52  ;;  %v951_v57 = vld [vmem:[%s9520_s6 + $0x190] sm:$0xff] }
 0x2c4   :  { %v506_v4 = vld [vmem:[%s9519_s5 + $0xd8] sm:$0xff] }
 0x2c5   :  { %v419_v5 = vsel %vm64_vm0, %v417_v1, %v418_v2  ;;  %v414_v6 = vmax.f32 %v409_v3, 0.0  ;;  %v423_v8 = vmax.f32 %v413_v63, %v418_v2  ;;  %v7285_v1 = vpack.c.bf16 %v924_v59, %v920_v58  ;;  %v923_v3 = vld [vmem:[%s9520_s6 + $0xb0] sm:$0xff]  ;;  %v718_v59 = vld [vmem:[%s9522_s8 + $0xc8] sm:$0xff] }
 0x2c6   :  { %v422_v7 = vmax.f32 %v412_v60, %v419_v5  ;;  %v5150_v60 = vpack.c.bf16 %v493_v47, %v489_v46  ;;  %v510_v5 = vld [vmem:[%s9519_s5 + $0xf8] sm:$0xff]  ;;  %v5166_v47 = vpack.c.bf16 %v705_v35, %v701_v34  ;;  %v955_v58 = vld [vmem:[%s9520_s6 + $0x1b0] sm:$0xff] }
 0x2c7   :  { %v425_v9 = vrot.slane %v414_v6, 1  ;;  %v457_v13 = vrot.slane %v423_v8, 2  ;;  %v956_v46 = vld [vmem:[%s9520_s6 + $0x1b8] sm:$0xff] }
 0x2c8   :  { %v442_v12 = vrot.slane %v422_v7, 4  ;;  %v448_v15 = vrot.slane %v422_v7, 6  ;;  %v437_v20 = vrot.slane %v422_v7, 2 }
 0x2c9   :  { %v426_v10 = vsel %vm64_vm0, %v418_v2, %v425_v9  ;;  %v430_v11 = vmax.f32 %v414_v6, %v425_v9  ;;  %v919_v2 = vld [vmem:[%s9520_s6 + $0x90] sm:$0xff]  ;;  %v928_v6 = vld [vmem:[%s9520_s6 + $0xd8] sm:$0xff] }
 0x2ca   :  { %v429_v14 = vmax.f32 %v413_v63, %v426_v10  ;;  %v501_v63 = vld [vmem:[%s9519_s5 + $0xb0] sm:$0xff]  ;;  %v7312_v9 = vpack.c.bf16 %v923_v3, %v919_v2  ;;  %v7439_v2 = vpack.c.bf16 %v955_v58, %v951_v57  ;;  %v717_v3 = vld [vmem:[%s9522_s8 + $0xc0] sm:$0xff] }
 0x2cb   :  { %v445_v16 = vrot.slane %v430_v11, 7  ;;  %v450_v17 = vrot.slane %v430_v11, 1  ;;  %v459_v18 = vrot.slane %v430_v11, 5  ;;  %v453_v19 = vrot.slane %v430_v11, 3  ;;  %v505_v10 = vld [vmem:[%s9519_s5 + $0xd0] sm:$0xff]  ;;  %v941_v57 = vld [vmem:[%s9520_s6 + $0x140] sm:$0xff] }
 0x2cc   :  { %v432_v21 = vrot.slane %v429_v14, 3  ;;  %v439_v22 = vrot.slane %v429_v14, 5  ;;  %v509_v11 = vld [vmem:[%s9519_s5 + $0xf0] sm:$0xff]  ;;  %v945_v58 = vld [vmem:[%s9520_s6 + $0x160] sm:$0xff] }
 0x2cd   :  { %v447_v23 = vsel %vm434_vm9, %v442_v12, %v445_v16  ;;  %v452_v24 = vsel %vm434_vm9, %v448_v15, %v450_v17  ;;  %v455_v27 = vsel %vm434_vm9, %v423_v8, %v453_v19  ;;  %v461_v28 = vsel %vm434_vm9, %v457_v13, %v459_v18  ;;  %v927_v14 = vld [vmem:[%s9520_s6 + $0xd0] sm:$0xff]  ;;  %v694_v16 = vld [vmem:[%s9522_s8 + $0x8] sm:$0xff]  ;;  %v936_v18 = vld [vmem:[%s9520_s6 + $0x118] sm:$0xff] }
 0x2ce   :  { %v435_v29 = vsel %vm434_vm9, %v422_v7, %v432_v21  ;;  %v441_v30 = vsel %vm434_vm9, %v437_v20, %v439_v22  ;;  %v472_v36 = vrot.slane %v461_v28, 6  ;;  %v466_v37 = vrot.slane %v447_v23, 4  ;;  %v932_v7 = vld [vmem:[%s9520_s6 + $0xf8] sm:$0xff]  ;;  %v931_v15 = vld [vmem:[%s9520_s6 + $0xf0] sm:$0xff]  ;;  %v698_v17 = vld [vmem:[%s9522_s8 + $0x28] sm:$0xff] }
 0x2cf   :  { %v463_v33 = vrot.slane %v441_v30, 6  ;;  %v469_v41 = vrot.slane %v452_v24, 2  ;;  %v5154_v8 = vpack.c.bf16 %v501_v63, %v497_v62  ;;  %v5156_v12 = vpack.c.bf16 %v510_v5, %v506_v4  ;;  %v940_v19 = vld [vmem:[%s9520_s6 + $0x138] sm:$0xff]  ;;  %v693_v22 = vld [vmem:[%s9522_s8] sm:$0xff]  ;;  %v702_v28 = vld [vmem:[%s9522_s8 + $0x48] sm:$0xff] }
 0x2d0   :  { %v7239_v45 = vsel %vm474_vm10, %v455_v27, %v472_v36  ;;  %v7321_v13 = vpack.c.bf16 %v932_v7, %v928_v6  ;;  %v5158_v20 = vpack.c.bf16 %v509_v11, %v505_v10  ;;  %v7344_v21 = vpack.c.bf16 %v931_v15, %v927_v14  ;;  %v939_v27 = vld [vmem:[%s9520_s6 + $0x130] sm:$0xff]  ;;  %v944_v30 = vld [vmem:[%s9520_s6 + $0x158] sm:$0xff]  ;;  %v721_v6 = vld [vmem:[%s9522_s8 + $0xe0] sm:$0xff] }
 0x2d1   :  { %v475_v43 = vsel %vm474_vm10, %v435_v29, %v463_v33  ;;  %v5160_v23 = vpack.c.bf16 %v698_v17, %v694_v16  ;;  %v7350_v24 = vpack.c.bf16 %v940_v19, %v936_v18  ;;  %v706_v29 = vld [vmem:[%s9522_s8 + $0x68] sm:$0xff]  ;;  %v5162_v32 = vpack.c.bf16 %v697_v25, %v693_v22  ;;  %v960_v62 = vld [vmem:[%s9520_s6 + $0x1d8] sm:$0xff]  ;;  %v959_v7 = vld [vmem:[%s9520_s6 + $0x1d0] sm:$0xff] }
 0x2d2   :  { %v476_v48 = vsel %vm144_vm2, %v475_v43, %v466_v37  ;;  %v7374_v33 = vpack.c.bf16 %v939_v27, %v935_v26  ;;  %v5164_v36 = vpack.c.bf16 %v706_v29, %v702_v28  ;;  %v943_v37 = vld [vmem:[%s9520_s6 + $0x150] sm:$0xff]  ;;  %v7392_v40 = vpack.c.bf16 %v948_v31, %v944_v30  ;;  %v952_v43 = vld [vmem:[%s9520_s6 + $0x198] sm:$0xff]  ;;  %v902_v10 = vld [vmem:[%s9520_s6 + $0x8] sm:$0xff] }
 0x2d3   :  { %v7258_v55 = vsel %vm74_vm1, %v476_v48, %v469_v41  ;;  %v714_v41 = vld [vmem:[%s9522_s8 + $0xa8] sm:$0xff]  ;;  %v7415_v52 = vpack.c.bf16 %v956_v46, %v952_v43  ;;  %v964_v63 = vld [vmem:[%s9520_s6 + $0x1f8] sm:$0xff]  ;;  %v901_v16 = vld [vmem:[%s9520_s6] sm:$0xff] }
 0x2d4   :  { %4902 = vmatmul.mubr.msk.f32.vlgmr.msra.gmra.mrb[4].mxu0 %vm252_vm8, %v7258_v55  ;;  %4908 = vmatmul.mubr.msk.f32.vlgmr.msra.gmra.mrb[6].mxu1 %vm252_vm8, %v7258_v55  ;;  %v5168_v51 = vpack.c.bf16 %v714_v41, %v710_v39  ;;  %v7445_v5 = vpack.c.bf16 %v964_v63, %v960_v62  ;;  %v906_v11 = vld [vmem:[%s9520_s6 + $0x28] sm:$0xff]  ;;  %v905_v17 = vld [vmem:[%s9520_s6 + $0x20] sm:$0xff]  ;;  %v7589_v62 = vpack.c.bf16 %v945_v58, %v941_v57 }
 0x2d5   :  { %5147 = vmatpush1.bf16.msra.mxu0 %v5146_v38  ;;  %5227 = vmatpush1.bf16.msra.mxu1 %v7236_v44  ;;  %v947_v38 = vld [vmem:[%s9520_s6 + $0x170] sm:$0xff]  ;;  %v7467_v15 = vpack.c.bf16 %v906_v11, %v902_v10  ;;  %v910_v18 = vld [vmem:[%s9520_s6 + $0x48] sm:$0xff]  ;;  %v913_v25 = vld [vmem:[%s9520_s6 + $0x60] sm:$0xff] }
 0x2d6   :  { %609 = vmatprep.mubr.f32.mxu0 %v9537_v53  ;;  %5149 = vmatprep.subr.bf16.mxu0 %v5148_v49  ;;  %v7406_v48 = vpack.c.bf16 %v947_v38, %v943_v37  ;;  %v709_v49 = vld [vmem:[%s9522_s8 + $0x80] sm:$0xff]  ;;  %v914_v19 = vld [vmem:[%s9520_s6 + $0x68] sm:$0xff] }
 0x2d7   :  { %894 = vmatprep.mubr.f32.mxu1 %v9537_v53  ;;  %5229 = vmatprep.subr.bf16.mxu1 %v7260_v56  ;;  %v7485_v22 = vpack.c.bf16 %v914_v19, %v910_v18  ;;  %v918_v26 = vld [vmem:[%s9520_s6 + $0x88] sm:$0xff]  ;;  %v917_v30 = vld [vmem:[%s9520_s6 + $0x80] sm:$0xff] }
 0x2d8   :  { %4903 = vmatmul.mubr.msk.f32.gmra.mrb[6].mxu0 %vm252_vm8, %v7239_v45  ;;  %4909 = vmatmul.mubr.msk.f32.gmra.mrb[8].mxu1 %vm252_vm8, %v7239_v45  ;;  %v922_v27 = vld [vmem:[%s9520_s6 + $0xa8] sm:$0xff]  ;;  %v929_v37 = vld [vmem:[%s9520_s6 + $0xe0] sm:$0xff] }
 0x2d9   :  { %5151 = vmatpush1.bf16.msra.mxu0 %v5150_v60  ;;  %5231 = vmatpush1.bf16.msra.mxu1 %v7276_v61  ;;  %v722_v60 = vld [vmem:[%s9522_s8 + $0xe8] sm:$0xff]  ;;  %v7508_v29 = vpack.c.bf16 %v922_v27, %v918_v26  ;;  %v933_v43 = vld [vmem:[%s9520_s6 + $0x100] sm:$0xff] }
 0x2da   :  { %5153 = vmatprep.subr.bf16.mxu0 %v5152_v0  ;;  %5233 = vmatprep.subr.bf16.mxu1 %v7285_v1  ;;  %v5170_v0 = vpack.c.bf16 %v713_v50, %v709_v49  ;;  %v5172_v4 = vpack.c.bf16 %v722_v60, %v718_v59  ;;  %v926_v31 = vld [vmem:[%s9520_s6 + $0xc8] sm:$0xff]  ;;  %v937_v46 = vld [vmem:[%s9520_s6 + $0x120] sm:$0xff] }
 0x2db   :  { %680 = vmatprep.mubr.f32.mxu0 %v9537_v53  ;;  %1100 = vmatprep.mubr.f32.mxu1 %v9537_v53  ;;  %v938_v38 = vld [vmem:[%s9520_s6 + $0x128] sm:$0xff]  ;;  %v7569_v50 = vpack.c.bf16 %v937_v46, %v933_v43  ;;  %v957_v10 = vld [vmem:[%s9520_s6 + $0x1c0] sm:$0xff] }
 0x2dc   :  { %v946_v49 = vld [vmem:[%s9520_s6 + $0x168] sm:$0xff]  ;;  %v961_v11 = vld [vmem:[%s9520_s6 + $0x1e0] sm:$0xff] }
 0x2dd   :  { %5155 = vmatpush1.bf16.msra.mxu0 %v5154_v8  ;;  %5235 = vmatpush1.bf16.msra.mxu1 %v7312_v9  ;;  %v963_v8 = vld [vmem:[%s9520_s6 + $0x1f0] sm:$0xff]  ;;  %v950_v59 = vld [vmem:[%s9520_s6 + $0x188] sm:$0xff]  ;;  %v725_v19 = vld [vmem:[%s9524_s10] sm:$0xf] }
 0x2de   :  { %5157 = vmatprep.subr.bf16.mxu0 %v5156_v12  ;;  %5237 = vmatprep.subr.bf16.mxu1 %v7321_v13  ;;  %v5174_v12 = vpack.c.bf16 %v721_v6, %v717_v3  ;;  %v7464_v14 = vpack.c.bf16 %v963_v8, %v959_v7  ;;  %v954_v60 = vld [vmem:[%s9520_s6 + $0x1a8] sm:$0xff]  ;;  %v953_v3 = vld [vmem:[%s9520_s6 + $0x1a0] sm:$0xff] }
 0x2df   :  { %v7592_v63 = vpack.c.bf16 %v954_v60, %v950_v59  ;;  %v962_v6 = vld [vmem:[%s9520_s6 + $0x1e8] sm:$0xff] }
 0x2e1   :  { %5159 = vmatpush1.bf16.msra.mxu0 %v5158_v20  ;;  %5239 = vmatpush1.bf16.msra.mxu1 %v7344_v21  ;;  %v7482_v20 = vpack.c.bf16 %v905_v17, %v901_v16  ;;  %v513_v16 = vlaneseq }
 0x2e2   :  { %5161 = vmatprep.subr.bf16.mxu0 %v5160_v23  ;;  %5241 = vmatprep.subr.bf16.mxu1 %v7350_v24  ;;  %v909_v23 = vld [vmem:[%s9520_s6 + $0x40] sm:$0xff] }
 0x2e3   :  { %v7505_v28 = vpack.c.bf16 %v913_v25, %v909_v23  ;;  %v514_v17 = vshrl.u32 %v513_v16, 7 }
 0x2e4   :  { %4904 = vmatmul.mubr.msk.f32.vlgmr.msra.gmra.mrb[8].mxu0 %vm252_vm8, %v7258_v55 }
 0x2e5   :  { %5163 = vmatpush1.bf16.msra.mxu0 %v5162_v32  ;;  %5243 = vmatpush1.bf16.msra.mxu1 %v7374_v33  ;;  %v930_v32 = vld [vmem:[%s9520_s6 + $0xe8] sm:$0xff]  ;;  %v7650_v18 = vsub.s32 2, %v514_v17  ;;  %v7655_v23 = vsub.s32 3, %v514_v17  ;;  %v7663_v27 = vsub.s32 0, %v514_v17 }
 0x2e6   :  { %686 = vmatprep.mubr.f32.mxu0 %v9537_v53  ;;  %5165 = vmatprep.subr.bf16.mxu0 %v5164_v36  ;;  %v7532_v35 = vpack.c.bf16 %v930_v32, %v926_v31  ;;  %v925_v36 = vld [vmem:[%s9520_s6 + $0xc0] sm:$0xff]  ;;  %v7668_v32 = vsub.s32 1, %v514_v17 }
 0x2e7   :  { %5245 = vmatprep.subr.bf16.mxu1 %v7392_v40  ;;  %v7549_v39 = vpack.c.bf16 %v929_v37, %v925_v36  ;;  %9555 = vst [vmem:[#allocation5_spill] sm:$0xff] %v7650_v18  ;;  %9556 = vst [vmem:[#allocation6_spill] sm:$0xff] %v7655_v23  ;;  %v7658_v25 = vrot.slane %v725_v19, %v7650_v18  ;;  %v7661_v26 = vrot.slane %v725_v19, %v7655_v23 }
 0x2e8   :  { %4905 = vmatmul.mubr.msk.f32.gmra.mrb[10].mxu0 %vm252_vm8, %v7239_v45  ;;  %9559 = vst [vmem:[#allocation9_spill] sm:$0xff] %v7663_v27  ;;  %9560 = vst [vmem:[#allocation10_spill] sm:$0xff] %v7668_v32 }
 0x2e9   :  { %5167 = vmatpush1.bf16.msra.mxu0 %v5166_v47  ;;  %5247 = vmatpush1.bf16.msra.mxu1 %v7406_v48  ;;  %v942_v47 = vld [vmem:[%s9520_s6 + $0x148] sm:$0xff]  ;;  %9557 = vst [vmem:[#allocation7_spill] sm:$0xff] %v7658_v25  ;;  %9558 = vst [vmem:[#allocation8_spill] sm:$0xff] %v7661_v26 }
 0x2ea   :  { %5169 = vmatprep.subr.bf16.mxu0 %v5168_v51  ;;  %5249 = vmatprep.subr.bf16.mxu1 %v7415_v52  ;;  %v7572_v51 = vpack.c.bf16 %v946_v49, %v942_v47 }
 0x2eb   :  { %811 = vmatprep.mubr.f32.mxu0 %v9537_v53 }
 0x2ed   :  { %5171 = vmatpush1.bf16.msra.mxu0 %v5170_v0  ;;  %5251 = vmatpush1.bf16.msra.mxu1 %v7439_v2  ;;  %v949_v0 = vld [vmem:[%s9520_s6 + $0x180] sm:$0xff] }
 0x2ee   :  { %5173 = vmatprep.subr.bf16.mxu0 %v5172_v4  ;;  %5253 = vmatprep.subr.bf16.mxu1 %v7445_v5  ;;  %v958_v4 = vld [vmem:[%s9520_s6 + $0x1c8] sm:$0xff]  ;;  %v7609_v7 = vpack.c.bf16 %v953_v3, %v949_v0 }
 0x2ef   :  { %v7612_v8 = vpack.c.bf16 %v962_v6, %v958_v4 }
 0x2f1   :  { %5175 = vmatpush1.bf16.msra.mxu0 %v5174_v12  ;;  %5255 = vmatpush1.bf16.msra.mxu1 %v7464_v14  ;;  %v7623_v12 = vpack.c.bf16 %v961_v11, %v957_v10 }
 0x2f2   :  { %5193 = vmatprep.subr.bf16.mxu0 %v7467_v15  ;;  %5289 = vmatprep.subr.bf16.mxu1 %v7196_v54 }
 0x2f4   :  { %4906 = vmatmul.mubr.msk.f32.vlgmr.msra.gmra.mrb[12].mxu0 %vm252_vm8, %v7258_v55  ;;  %1101 = vmatmul.mubr.f32.vlgmr.msra.gmra.mrb[10].mxu1 %v9537_v53  ;;  %v921_v55 = vld [vmem:[%s9520_s6 + $0xa0] sm:$0xff] }
 0x2f5   :  { %5195 = vmatpush1.bf16.msra.mxu0 %v7482_v20  ;;  %817 = vmatprep.mubr.f32.mxu0 %v9537_v53  ;;  %v7528_v34 = vpack.c.bf16 %v921_v55, %v917_v30  ;;  %v511_v30 = vld [vmem:[%s9521_s7] sm:$0xf] }
 0x2f6   :  { %5197 = vmatprep.subr.bf16.mxu0 %v7485_v22  ;;  %5291 = vmatpush1.bf16.msra.mxu1 %v7236_v44  ;;  %v516_v43 = vrot.slane %v511_v30, %v7663_v27  ;;  %v520_v46 = vrot.slane %v511_v30, %v7668_v32  ;;  %v524_v4 = vrot.slane %v511_v30, %v7650_v18 }
 0x2f7   :  { %5293 = vmatprep.subr.bf16.mxu1 %v7260_v56  ;;  %1270 = vmatprep.mubr.f32.mxu1 %v9537_v53  ;;  %v528_v6 = vrot.slane %v511_v30, %v7655_v23 }
 0x2f8   :  { %4907 = vmatmul.mubr.msk.f32.gmra.mrb[14].mxu0 %vm252_vm8, %v7239_v45  ;;  %v934_v45 = vld [vmem:[%s9520_s6 + $0x108] sm:$0xff]  ;;  %s6852_s6 = smov [#allocation2]  }
 0x2f9   :  { %5199 = vmatpush1.bf16.msra.mxu0 %v7505_v28  ;;  %1029 = vmatprep.mubr.f32.mxu0 %v9537_v53  ;;  %v7552_v41 = vpack.c.bf16 %v938_v38, %v934_v45  ;;  %s4882_s0 = sshll.u32 %s6852_s6, 4  ;;  %s4883_s0 = int_to_ptr.vmem [resolvable:$true] %s4882_s0 }
 0x2fa   :  { %5201 = vmatprep.subr.bf16.mxu0 %v7508_v29  ;;  %5295 = vmatpush1.bf16.msra.mxu1 %v7276_v61  ;;  %p6826_p1 = scmp.lt.s32.totalorder %s4883_s0, %s4883_s0 }
 0x2fb   :  { %5297 = vmatprep.subr.bf16.mxu1 %v7285_v1 }
 0x2fd   :  { %5203 = vmatpush1.bf16.msra.mxu0 %v7528_v34 }
 0x2fe   :  { %5205 = vmatprep.subr.bf16.mxu0 %v7532_v35  ;;  %5299 = vmatpush1.bf16.msra.mxu1 %v7312_v9 }
 0x2ff   :  { %5301 = vmatprep.subr.bf16.mxu1 %v7321_v13 }
 0x301   :  { %5207 = vmatpush1.bf16.msra.mxu0 %v7549_v39 }
 0x302   :  { %5209 = vmatprep.subr.bf16.mxu0 %v7552_v41  ;;  %5303 = vmatpush1.bf16.msra.mxu1 %v7344_v21 }
 0x303   :  { %5305 = vmatprep.subr.bf16.mxu1 %v7350_v24 }
 0x305   :  { %5211 = vmatpush1.bf16.msra.mxu0 %v7569_v50 }
 0x306   :  { %5213 = vmatprep.subr.bf16.mxu0 %v7572_v51  ;;  %5307 = vmatpush1.bf16.msra.mxu1 %v7374_v33 }
 0x307   :  { %5309 = vmatprep.subr.bf16.mxu1 %v7392_v40 }
 0x309   :  { %5215 = vmatpush1.bf16.msra.mxu0 %v7589_v62 }
 0x30a   :  { %5217 = vmatprep.subr.bf16.mxu0 %v7592_v63  ;;  %5311 = vmatpush1.bf16.msra.mxu1 %v7406_v48 }
 0x30b   :  { %5313 = vmatprep.subr.bf16.mxu1 %v7415_v52 }
 0x30d   :  { %5219 = vmatpush1.bf16.msra.mxu0 %v7609_v7 }
 0x30e   :  { %5221 = vmatprep.subr.bf16.mxu0 %v7612_v8  ;;  %5315 = vmatpush1.bf16.msra.mxu1 %v7439_v2 }
 0x30f   :  { %5317 = vmatprep.subr.bf16.mxu1 %v7445_v5 }
 0x311   :  { %5223 = vmatpush1.bf16.msra.mxu0 %v7623_v12 }
 0x312   :  { %5257 = vmatprep.subr.bf16.mxu0 %v7467_v15  ;;  %5319 = vmatpush1.bf16.msra.mxu1 %v7464_v14 }
 0x313   :  { %5353 = vmatprep.subr.bf16.mxu1 %v7196_v54 }
 0x314   :  { %1030 = vmatmul.mubr.f32.vlgmr.msra.gmra.mrb[16].mxu0 %v9537_v53 }
 0x315   :  { %5259 = vmatpush1.bf16.msra.mxu0 %v7482_v20  ;;  %1199 = vmatprep.mubr.f32.mxu0 %v9537_v53 }
 0x316   :  { %5261 = vmatprep.subr.bf16.mxu0 %v7485_v22 }
 0x319   :  { %5263 = vmatpush1.bf16.msra.mxu0 %v7505_v28 }
 0x31a   :  { %5265 = vmatprep.subr.bf16.mxu0 %v7508_v29 }
 0x31d   :  { %5267 = vmatpush1.bf16.msra.mxu0 %v7528_v34 }
 0x31e   :  { %5269 = vmatprep.subr.bf16.mxu0 %v7532_v35 }
 0x321   :  { %5271 = vmatpush1.bf16.msra.mxu0 %v7549_v39 }
 0x322   :  { %5273 = vmatprep.subr.bf16.mxu0 %v7552_v41 }
 0x325   :  { %5275 = vmatpush1.bf16.msra.mxu0 %v7569_v50 }
 0x326   :  { %5277 = vmatprep.subr.bf16.mxu0 %v7572_v51 }
 0x329   :  { %5279 = vmatpush1.bf16.msra.mxu0 %v7589_v62 }
 0x32a   :  { %5281 = vmatprep.subr.bf16.mxu0 %v7592_v63 }
 0x32d   :  { %5283 = vmatpush1.bf16.msra.mxu0 %v7609_v7 }
 0x32e   :  { %5285 = vmatprep.subr.bf16.mxu0 %v7612_v8 }
 0x331   :  { %5287 = vmatpush1.bf16.msra.mxu0 %v7623_v12 }
 0x332   :  { %5321 = vmatprep.subr.bf16.mxu0 %v7467_v15 }
 0x3a7   :  { %v605_v55 = vpop.f32.mrb[4].mxu0  ;;  %v890_v31 = vpop.f32.mrb[6].mxu1 }
 0x3a8   :  { %v7671_v36 = vadd.f32 %v890_v31, %v7658_v25  ;;  %v607_v37 = vpop.f32.mrb[5].mxu0  ;;  %v892_v45 = vpop.f32.mrb[7].mxu1  ;;  %v7693_v31 = vrot.slane %v725_v19, %v7663_v27  ;;  %v7708_v23 = vadd.f32 %v605_v55, %v516_v43 }
 0x3a9   :  { %v7674_v38 = vadd.f32 %v892_v45, %v7661_v26  ;;  %v7696_v45 = vrot.slane %v725_v19, %v7668_v32  ;;  %v7710_v27 = vadd.f32 %v607_v37, %v520_v46 }
 0x3aa   :  { %9561 = vst [vmem:[#allocation11_spill] sm:$0xff] %v7671_v36 }
 0x3ab   :  { %9562 = vst [vmem:[#allocation12_spill] sm:$0xff] %v7674_v38  ;;  %v611_v47 = vpop.f32.mrb[6].mxu0  ;;  %v7678_v49 = vpop.f32.mrb[8].mxu1 }
 0x3ac   :  { %9563 = vst [vmem:[#allocation13_spill] sm:$0xff] %v7678_v49  ;;  %v7680_v57 = vadd.f32 %v611_v47, %v516_v43  ;;  %v613_v58 = vpop.f32.mrb[7].mxu0  ;;  %v7682_v59 = vpop.f32.mrb[9].mxu1 }
 0x3ad   :  { %9564 = vst [vmem:[#allocation14_spill] sm:$0xff] %v7682_v59  ;;  %v7684_v60 = vadd.f32 %v613_v58, %v520_v46 }
 0x3b7   :  { %v682_v0 = vpop.f32.mrb[8].mxu0 }
 0x3b8   :  { %v684_v3 = vpop.f32.mrb[9].mxu0 }
 0x3b9   :  { %v7714_v49 = vadd.f32 %v684_v3, %v528_v6 }
 0x3bb   :  { %v688_v10 = vpop.f32.mrb[10].mxu0 }
 0x3bc   :  { %v7688_v11 = vadd.f32 %v688_v10, %v524_v4  ;;  %v690_v16 = vpop.f32.mrb[11].mxu0 }
 0x3bd   :  { %v7690_v17 = vadd.f32 %v690_v16, %v528_v6 }
 0x3c7   :  { %v813_v47 = vpop.f32.mrb[12].mxu0  ;;  %v1102_v58 = vpop.f32.mrb[10].mxu1 }
 0x3c8   :  { %v7699_v42 = vadd.f32 %v813_v47, %v7693_v31  ;;  %v815_v53 = vpop.f32.mrb[13].mxu0  ;;  %v1104_v18 = vpop.f32.mrb[11].mxu1 }
 0x3c9   :  { %v7702_v30 = vadd.f32 %v815_v53, %v7696_v45  ;;  %v1110_v53 = vadd.f32 %v1104_v18, %v7714_v49 }
 0x3ca   :  { %9565 = vst [vmem:[#allocation15_spill] sm:$0xff] %v7699_v42 }
 0x3cb   :  { %9566 = vst [vmem:[#allocation16_spill] sm:$0xff] %v7702_v30  ;;  %v7704_v10 = vpop.f32.mrb[14].mxu0  ;;  %v7717_v30 = vadd.f32 %v682_v0, %v524_v4  ;;  %v4912_v55 = vmul.f32 -1.442695, %v1110_v53 }
 0x3cc   :  { %v7706_v16 = vpop.f32.mrb[15].mxu0 }
 0x3cd   :  { %9567 = vst [vmem:[#allocation17_spill] sm:$0xff] %v7706_v16  ;;  %v1109_v37 = vadd.f32 %v1102_v58, %v7717_v30 }
 0x3e7   :  { %v1031_v19 = vpop.f32.mrb[16].mxu0 }
 0x3e8   :  { %v1107_v32 = vadd.f32 %v1031_v19, %v7708_v23  ;;  %v1033_v36 = vpop.f32.mrb[17].mxu0 }
 0x3e9   :  { %v1108_v47 = vadd.f32 %v1033_v36, %v7710_v27 }
 0x3ea   :  { %v4910_v38 = vmul.f32 -1.442695, %v1107_v32 }
 0x3eb   :  { %v4911_v42 = vmul.f32 -1.442695, %v1108_v47 }
 0x3ec   :  { %6533 = vpow2.f32 %v4910_v38 }
 0x3ed   :  { %6535 = vpow2.f32 %v4911_v42 }
 0x3ee   :  { %6537 = vpow2.f32 %v4912_v55 }
 0x3ef   :  { %6539 = vtanh.f32 %v1109_v37 }
 0x3f6   :  { %v6534_v43 = vpop.eup %6533 }
 0x3f7   :  { %v6536_v46 = vpop.eup %6535  ;;  %v1114_v19 = vadd.f32 1.0, %v6534_v43 }
 0x3f8   :  { %v1120_v25 = vadd.f32 1.0, %v6536_v46  ;;  %v6538_v32 = vpop.eup %6537 }
 0x3f9   :  { %6541 = vrcp.f32 %v1114_v19  ;;  %v6540_v36 = vpop.eup %6539  ;;  %v1127_v42 = vadd.f32 1.0, %v6538_v32 }
 0x3fa   :  { %6543 = vrcp.f32 %v1120_v25  ;;  %v9568_v25 = vmov 0.0  }
 0x3fb   :  { %6545 = vrcp.f32 %v1127_v42 }
 0x403   :  { %v6542_v38 = vpop.eup %6541 }
 0x404   :  { %v6544_v3 = vpop.eup %6543  ;;  %v1131_v6 = vmul.f32 %v6542_v38, %v6540_v36 }
 0x405   :  { %v1130_v18 = vmul.f32 0.0, %v6544_v3  ;;  %v6546_v4 = vpop.eup %6545 }
 0x407   :  { %v7720_v0 = vadd.f32 %v1131_v6, %v1130_v18 }
 0x409   :  { %6547 = vtanh.f32 %v7720_v0 }
 0x413   :  { %v6548_v58 = vpop.eup %6547 }
 0x414   :  { %v7723_v47 = vmul.f32 %v6548_v58, %v6546_v4 }
 0x416   :  { %1200 = vmatmul.mubr.f32.vlgmr.msra.gmra.mrb[18].mxu0 %v7723_v47  ;;  %1271 = vmatmul.mubr.f32.vlgmr.msra.gmra.mrb[12].mxu1 %v7723_v47 }
 0x417   :  { %5323 = vmatpush1.bf16.msra.mxu0 %v7482_v20  ;;  %5355 = vmatpush1.bf16.msra.mxu1 %v7236_v44 }
 0x418   :  { %5325 = vmatprep.subr.bf16.mxu0 %v7485_v22  ;;  %5357 = vmatprep.subr.bf16.mxu1 %v7260_v56 }
 0x419   :  { %1387 = vmatprep.mubr.f32.mxu0 %v9568_v25  ;;  %1458 = vmatprep.mubr.f32.mxu1 %v9568_v25 }
 0x41b   :  { %5327 = vmatpush1.bf16.msra.mxu0 %v7505_v28  ;;  %5359 = vmatpush1.bf16.msra.mxu1 %v7276_v61 }
 0x41c   :  { %5329 = vmatprep.subr.bf16.mxu0 %v7508_v29  ;;  %5361 = vmatprep.subr.bf16.mxu1 %v7285_v1 }
 0x41f   :  { %5331 = vmatpush1.bf16.msra.mxu0 %v7528_v34  ;;  %5363 = vmatpush1.bf16.msra.mxu1 %v7312_v9 }
 0x420   :  { %5333 = vmatprep.subr.bf16.mxu0 %v7532_v35  ;;  %5365 = vmatprep.subr.bf16.mxu1 %v7321_v13 }
 0x423   :  { %5335 = vmatpush1.bf16.msra.mxu0 %v7549_v39  ;;  %5367 = vmatpush1.bf16.msra.mxu1 %v7344_v21 }
 0x424   :  { %5337 = vmatprep.subr.bf16.mxu0 %v7552_v41  ;;  %5369 = vmatprep.subr.bf16.mxu1 %v7350_v24 }
 0x427   :  { %5339 = vmatpush1.bf16.msra.mxu0 %v7569_v50  ;;  %5371 = vmatpush1.bf16.msra.mxu1 %v7374_v33 }
 0x428   :  { %5341 = vmatprep.subr.bf16.mxu0 %v7572_v51  ;;  %5373 = vmatprep.subr.bf16.mxu1 %v7392_v40 }
 0x42b   :  { %5343 = vmatpush1.bf16.msra.mxu0 %v7589_v62  ;;  %5375 = vmatpush1.bf16.msra.mxu1 %v7406_v48 }
 0x42c   :  { %5345 = vmatprep.subr.bf16.mxu0 %v7592_v63  ;;  %5377 = vmatprep.subr.bf16.mxu1 %v7415_v52 }
 0x42f   :  { %5347 = vmatpush1.bf16.msra.mxu0 %v7609_v7  ;;  %5379 = vmatpush1.bf16.msra.mxu1 %v7439_v2 }
 0x430   :  { %5349 = vmatprep.subr.bf16.mxu0 %v7612_v8  ;;  %5381 = vmatprep.subr.bf16.mxu1 %v7445_v5 }
 0x433   :  { %5351 = vmatpush1.bf16.msra.mxu0 %v7623_v12  ;;  %5383 = vmatpush1.bf16.msra.mxu1 %v7464_v14 }
 0x434   :  { %5385 = vmatprep.subr.bf16.mxu0 %v7467_v15  ;;  %5417 = vmatprep.subr.bf16.mxu1 %v7196_v54 }
 0x4e9   :  { %v1201_v53 = vpop.f32.mrb[18].mxu0  ;;  %v1272_v55 = vpop.f32.mrb[12].mxu1 }
 0x4ea   :  { %v1281_v37 = vrot.slane %v1201_v53, 6  ;;  %v1203_v43 = vpop.f32.mrb[19].mxu0  ;;  %v1274_v46 = vpop.f32.mrb[13].mxu1  ;;  %v1283_v18 = vrot.slane %v1272_v55, 6 }
 0x4eb   :  { %v1282_v19 = vrot.slane %v1203_v43, 6  ;;  %v1284_v42 = vrot.slane %v1274_v46, 6  ;;  %v1313_v46 = vrot.slane %v7720_v0, 6 }
 0x4ec   :  { %v1289_v32 = vadd.f32 %v1281_v37, %v7708_v23  ;;  %v1291_v58 = vadd.f32 %v1283_v18, %v7717_v30 }
 0x4ed   :  { %v1290_v36 = vadd.f32 %v1282_v19, %v7710_v27  ;;  %v1292_v6 = vadd.f32 %v1284_v42, %v7714_v49 }
 0x4ee   :  { %v4913_v38 = vmul.f32 -1.442695, %v1289_v32 }
 0x4ef   :  { %v4914_v3 = vmul.f32 -1.442695, %v1290_v36  ;;  %v4915_v4 = vmul.f32 -1.442695, %v1292_v6 }
 0x4f0   :  { %6549 = vpow2.f32 %v4913_v38 }
 0x4f1   :  { %6551 = vpow2.f32 %v4914_v3 }
 0x4f2   :  { %6553 = vpow2.f32 %v4915_v4 }
 0x4f3   :  { %6555 = vtanh.f32 %v1291_v58 }
 0x4fa   :  { %v6550_v59 = vpop.eup %6549 }
 0x4fb   :  { %v6552_v53 = vpop.eup %6551  ;;  %v1296_v26 = vadd.f32 1.0, %v6550_v59 }
 0x4fc   :  { %v1302_v43 = vadd.f32 1.0, %v6552_v53  ;;  %v6554_v37 = vpop.eup %6553 }
 0x4fd   :  { %6557 = vrcp.f32 %v1296_v26  ;;  %v6556_v19 = vpop.eup %6555  ;;  %v1309_v3 = vadd.f32 1.0, %v6554_v37 }
 0x4fe   :  { %6559 = vrcp.f32 %v1302_v43 }
 0x4ff   :  { %6561 = vrcp.f32 %v1309_v3 }
 0x507   :  { %v6558_v32 = vpop.eup %6557 }
 0x508   :  { %v6560_v36 = vpop.eup %6559  ;;  %v1316_v38 = vmul.f32 %v6558_v32, %v6556_v19 }
 0x509   :  { %v1315_v55 = vmul.f32 %v6560_v36, %v1313_v46  ;;  %v6562_v59 = vpop.eup %6561 }
 0x50b   :  { %v7766_v42 = vadd.f32 %v1316_v38, %v1315_v55 }
 0x50d   :  { %6563 = vtanh.f32 %v7766_v42 }
 0x517   :  { %v6564_v6 = vpop.eup %6563 }
 0x518   :  { %v7769_v18 = vmul.f32 %v6564_v6, %v6562_v59 }
 0x51a   :  { %v1321_v26 = vrot.slane %v7769_v18, 2 }
 0x51c   :  { %1388 = vmatmul.mubr.f32.vlgmr.msra.gmra.mrb[20].mxu0 %v1321_v26  ;;  %1459 = vmatmul.mubr.f32.vlgmr.msra.gmra.mrb[14].mxu1 %v1321_v26 }
 0x51d   :  { %5387 = vmatpush1.bf16.msra.mxu0 %v7482_v20  ;;  %5419 = vmatpush1.bf16.msra.mxu1 %v7236_v44 }
 0x51e   :  { %5389 = vmatprep.subr.bf16.mxu0 %v7485_v22  ;;  %5421 = vmatprep.subr.bf16.mxu1 %v7260_v56 }
 0x51f   :  { %1575 = vmatprep.mubr.f32.mxu0 %v9568_v25  ;;  %1646 = vmatprep.mubr.f32.mxu1 %v9568_v25 }
 0x521   :  { %5391 = vmatpush1.bf16.msra.mxu0 %v7505_v28  ;;  %5423 = vmatpush1.bf16.msra.mxu1 %v7276_v61 }
 0x522   :  { %5393 = vmatprep.subr.bf16.mxu0 %v7508_v29  ;;  %5425 = vmatprep.subr.bf16.mxu1 %v7285_v1 }
 0x525   :  { %5395 = vmatpush1.bf16.msra.mxu0 %v7528_v34  ;;  %5427 = vmatpush1.bf16.msra.mxu1 %v7312_v9 }
 0x526   :  { %5397 = vmatprep.subr.bf16.mxu0 %v7532_v35  ;;  %5429 = vmatprep.subr.bf16.mxu1 %v7321_v13 }
 0x529   :  { %5399 = vmatpush1.bf16.msra.mxu0 %v7549_v39  ;;  %5431 = vmatpush1.bf16.msra.mxu1 %v7344_v21 }
 0x52a   :  { %5401 = vmatprep.subr.bf16.mxu0 %v7552_v41  ;;  %5433 = vmatprep.subr.bf16.mxu1 %v7350_v24 }
 0x52d   :  { %5403 = vmatpush1.bf16.msra.mxu0 %v7569_v50  ;;  %5435 = vmatpush1.bf16.msra.mxu1 %v7374_v33 }
 0x52e   :  { %5405 = vmatprep.subr.bf16.mxu0 %v7572_v51  ;;  %5437 = vmatprep.subr.bf16.mxu1 %v7392_v40 }
 0x531   :  { %5407 = vmatpush1.bf16.msra.mxu0 %v7589_v62  ;;  %5439 = vmatpush1.bf16.msra.mxu1 %v7406_v48 }
 0x532   :  { %5409 = vmatprep.subr.bf16.mxu0 %v7592_v63  ;;  %5441 = vmatprep.subr.bf16.mxu1 %v7415_v52 }
 0x535   :  { %5411 = vmatpush1.bf16.msra.mxu0 %v7609_v7  ;;  %5443 = vmatpush1.bf16.msra.mxu1 %v7439_v2 }
 0x536   :  { %5413 = vmatprep.subr.bf16.mxu0 %v7612_v8  ;;  %5445 = vmatprep.subr.bf16.mxu1 %v7445_v5 }
 0x539   :  { %5415 = vmatpush1.bf16.msra.mxu0 %v7623_v12  ;;  %5447 = vmatpush1.bf16.msra.mxu1 %v7464_v14 }
 0x53a   :  { %5449 = vmatprep.subr.bf16.mxu0 %v7467_v15  ;;  %5481 = vmatprep.subr.bf16.mxu1 %v7196_v54 }
 0x5ef   :  { %v1389_v0 = vpop.f32.mrb[20].mxu0  ;;  %v1460_v4 = vpop.f32.mrb[14].mxu1 }
 0x5f0   :  { %v1469_v58 = vrot.slane %v1389_v0, 4  ;;  %v1391_v53 = vpop.f32.mrb[21].mxu0  ;;  %v1462_v43 = vpop.f32.mrb[15].mxu1  ;;  %v1471_v55 = vrot.slane %v1460_v4, 4 }
 0x5f1   :  { %v1470_v37 = vrot.slane %v1391_v53, 4  ;;  %v1472_v38 = vrot.slane %v1462_v43, 4  ;;  %v1501_v43 = vrot.slane %v7766_v42, 6 }
 0x5f2   :  { %v1477_v19 = vadd.f32 %v1469_v58, %v7708_v23  ;;  %v1479_v6 = vadd.f32 %v1471_v55, %v7717_v30 }
 0x5f3   :  { %v1478_v32 = vadd.f32 %v1470_v37, %v7710_v27  ;;  %v1480_v3 = vadd.f32 %v1472_v38, %v7714_v49 }
 0x5f4   :  { %v4916_v46 = vmul.f32 -1.442695, %v1477_v19 }
 0x5f5   :  { %v4917_v36 = vmul.f32 -1.442695, %v1478_v32  ;;  %v4918_v59 = vmul.f32 -1.442695, %v1480_v3 }
 0x5f6   :  { %6565 = vpow2.f32 %v4916_v46 }
 0x5f7   :  { %6567 = vpow2.f32 %v4917_v36 }
 0x5f8   :  { %6569 = vpow2.f32 %v4918_v59 }
 0x5f9   :  { %6571 = vtanh.f32 %v1479_v6 }
 0x600   :  { %v6566_v26 = vpop.eup %6565 }
 0x601   :  { %v6568_v0 = vpop.eup %6567  ;;  %v1484_v16 = vadd.f32 1.0, %v6566_v26 }
 0x602   :  { %v1490_v53 = vadd.f32 1.0, %v6568_v0  ;;  %v6570_v58 = vpop.eup %6569 }
 0x603   :  { %6573 = vrcp.f32 %v1484_v16  ;;  %v6572_v37 = vpop.eup %6571  ;;  %v1497_v36 = vadd.f32 1.0, %v6570_v58  ;;  %v3216_v16 = vsel %vm474_vm10, %v7723_v47, %v7769_v18 }
 0x604   :  { %6575 = vrcp.f32 %v1490_v53 }
 0x605   :  { %6577 = vrcp.f32 %v1497_v36 }
 0x60d   :  { %v6574_v19 = vpop.eup %6573 }
 0x60e   :  { %v6576_v32 = vpop.eup %6575  ;;  %v1504_v46 = vmul.f32 %v6574_v19, %v6572_v37 }
 0x60f   :  { %v1503_v4 = vmul.f32 %v6576_v32, %v1501_v43  ;;  %v6578_v3 = vpop.eup %6577 }
 0x611   :  { %v7811_v38 = vadd.f32 %v1504_v46, %v1503_v4 }
 0x613   :  { %6579 = vtanh.f32 %v7811_v38 }
 0x61d   :  { %v6580_v55 = vpop.eup %6579 }
 0x61e   :  { %v1507_v59 = vmul.f32 %v6580_v55, %v6578_v3 }
 0x620   :  { %v1509_v6 = vrot.slane %v1507_v59, 4  ;;  %v7818_v26 = vsel %vm144_vm2, %v3216_v16, %v1507_v59 }
 0x622   :  { %1576 = vmatmul.mubr.f32.vlgmr.msra.gmra.mrb[22].mxu0 %v1509_v6  ;;  %1647 = vmatmul.mubr.f32.vlgmr.msra.gmra.mrb[16].mxu1 %v1509_v6 }
 0x623   :  { %5451 = vmatpush1.bf16.msra.mxu0 %v7482_v20  ;;  %5483 = vmatpush1.bf16.msra.mxu1 %v7236_v44 }
 0x624   :  { %5453 = vmatprep.subr.bf16.mxu0 %v7485_v22  ;;  %5485 = vmatprep.subr.bf16.mxu1 %v7260_v56 }
 0x625   :  { %1763 = vmatprep.mubr.f32.mxu0 %v9568_v25  ;;  %1834 = vmatprep.mubr.f32.mxu1 %v9568_v25 }
 0x627   :  { %5455 = vmatpush1.bf16.msra.mxu0 %v7505_v28  ;;  %5487 = vmatpush1.bf16.msra.mxu1 %v7276_v61 }
 0x628   :  { %5457 = vmatprep.subr.bf16.mxu0 %v7508_v29  ;;  %5489 = vmatprep.subr.bf16.mxu1 %v7285_v1 }
 0x62b   :  { %5459 = vmatpush1.bf16.msra.mxu0 %v7528_v34  ;;  %5491 = vmatpush1.bf16.msra.mxu1 %v7312_v9 }
 0x62c   :  { %5461 = vmatprep.subr.bf16.mxu0 %v7532_v35  ;;  %5493 = vmatprep.subr.bf16.mxu1 %v7321_v13 }
 0x62f   :  { %5463 = vmatpush1.bf16.msra.mxu0 %v7549_v39  ;;  %5495 = vmatpush1.bf16.msra.mxu1 %v7344_v21 }
 0x630   :  { %5465 = vmatprep.subr.bf16.mxu0 %v7552_v41  ;;  %5497 = vmatprep.subr.bf16.mxu1 %v7350_v24 }
 0x633   :  { %5467 = vmatpush1.bf16.msra.mxu0 %v7569_v50  ;;  %5499 = vmatpush1.bf16.msra.mxu1 %v7374_v33 }
 0x634   :  { %5469 = vmatprep.subr.bf16.mxu0 %v7572_v51  ;;  %5501 = vmatprep.subr.bf16.mxu1 %v7392_v40 }
 0x637   :  { %5471 = vmatpush1.bf16.msra.mxu0 %v7589_v62  ;;  %5503 = vmatpush1.bf16.msra.mxu1 %v7406_v48 }
 0x638   :  { %5473 = vmatprep.subr.bf16.mxu0 %v7592_v63  ;;  %5505 = vmatprep.subr.bf16.mxu1 %v7415_v52 }
 0x63b   :  { %5475 = vmatpush1.bf16.msra.mxu0 %v7609_v7  ;;  %5507 = vmatpush1.bf16.msra.mxu1 %v7439_v2 }
 0x63c   :  { %5477 = vmatprep.subr.bf16.mxu0 %v7612_v8  ;;  %5509 = vmatprep.subr.bf16.mxu1 %v7445_v5 }
 0x63f   :  { %5479 = vmatpush1.bf16.msra.mxu0 %v7623_v12  ;;  %5511 = vmatpush1.bf16.msra.mxu1 %v7464_v14 }
 0x640   :  { %5513 = vmatprep.subr.bf16.mxu0 %v7467_v15  ;;  %5545 = vmatprep.subr.bf16.mxu1 %v7196_v54 }
 0x6f5   :  { %v1577_v47 = vpop.f32.mrb[22].mxu0  ;;  %v1648_v42 = vpop.f32.mrb[16].mxu1 }
 0x6f6   :  { %v1657_v18 = vrot.slane %v1577_v47, 2  ;;  %v1579_v0 = vpop.f32.mrb[23].mxu0  ;;  %v1650_v53 = vpop.f32.mrb[17].mxu1  ;;  %v1659_v15 = vrot.slane %v1648_v42, 2  ;;  %v1689_v47 = vrot.slane %v7811_v38, 6  ;;  %v2057_v38 = vld [vmem:[%s9523_s9] sm:$0xff] }
 0x6f7   :  { %v1658_v58 = vrot.slane %v1579_v0, 2  ;;  %v1660_v46 = vrot.slane %v1650_v53, 2 }
 0x6f8   :  { %v1665_v37 = vadd.f32 %v1657_v18, %v7708_v23  ;;  %v1667_v54 = vadd.f32 %v1659_v15, %v7717_v30  ;;  %v2070_v15 = vld [vmem:[%s9523_s9 + $0x68] sm:$0xff] }
 0x6f9   :  { %v1666_v19 = vadd.f32 %v1658_v58, %v7710_v27  ;;  %v1668_v36 = vadd.f32 %v1660_v46, %v7714_v49  ;;  %v2063_v46 = vld [vmem:[%s9523_s9 + $0x30] sm:$0xff] }
 0x6fa   :  { %v4919_v43 = vmul.f32 -1.442695, %v1665_v37 }
 0x6fb   :  { %v4920_v32 = vmul.f32 -1.442695, %v1666_v19  ;;  %v4921_v4 = vmul.f32 -1.442695, %v1668_v36  ;;  %v2066_v36 = vld [vmem:[%s9523_s9 + $0x48] sm:$0xff] }
 0x6fc   :  { %6581 = vpow2.f32 %v4919_v43 }
 0x6fd   :  { %6583 = vpow2.f32 %v4920_v32  ;;  %v2059_v32 = vld [vmem:[%s9523_s9 + $0x10] sm:$0xff] }
 0x6fe   :  { %6585 = vpow2.f32 %v4921_v4  ;;  %v2068_v4 = vld [vmem:[%s9523_s9 + $0x58] sm:$0xff] }
 0x6ff   :  { %6587 = vtanh.f32 %v1667_v54  ;;  %v2072_v54 = vld [vmem:[%s9523_s9 + $0x78] sm:$0xff] }
 0x706   :  { %v6582_v3 = vpop.eup %6581 }
 0x707   :  { %v6584_v55 = vpop.eup %6583  ;;  %v1672_v59 = vadd.f32 1.0, %v6582_v3 }
 0x708   :  { %v1678_v16 = vadd.f32 1.0, %v6584_v55  ;;  %v6586_v23 = vpop.eup %6585 }
 0x709   :  { %6589 = vrcp.f32 %v1672_v59  ;;  %v6588_v27 = vpop.eup %6587  ;;  %v1685_v49 = vadd.f32 1.0, %v6586_v23  ;;  %v2065_v23 = vld [vmem:[%s9523_s9 + $0x40] sm:$0xff] }
 0x70a   :  { %6591 = vrcp.f32 %v1678_v16  ;;  %v7950_v16 = vpack.c.bf16 %v2063_v46, %v2059_v32  ;;  %v2095_v32 = vld [vmem:[%s9523_s9 + $0x130] sm:$0xff]  ;;  %v2098_v46 = vld [vmem:[%s9523_s9 + $0x148] sm:$0xff] }
 0x70b   :  { %6593 = vrcp.f32 %v1685_v49  ;;  %v2071_v49 = vld [vmem:[%s9523_s9 + $0x70] sm:$0xff] }
 0x713   :  { %v6590_v6 = vpop.eup %6589 }
 0x714   :  { %v6592_v18 = vpop.eup %6591  ;;  %v1692_v0 = vmul.f32 %v6590_v6, %v6588_v27  ;;  %v2069_v27 = vld [vmem:[%s9523_s9 + $0x60] sm:$0xff] }
 0x715   :  { %v1691_v42 = vmul.f32 %v6592_v18, %v1689_v47  ;;  %v6594_v30 = vpop.eup %6593  ;;  %v7960_v47 = vpack.c.bf16 %v2070_v15, %v2066_v36  ;;  %v7962_v18 = vpack.c.bf16 %v2072_v54, %v2068_v4  ;;  %v2102_v36 = vld [vmem:[%s9523_s9 + $0x168] sm:$0xff]  ;;  %v2100_v15 = vld [vmem:[%s9523_s9 + $0x158] sm:$0xff] }
 0x716   :  { %v2104_v4 = vld [vmem:[%s9523_s9 + $0x178] sm:$0xff] }
 0x717   :  { %v7859_v53 = vadd.f32 %v1692_v0, %v1691_v42  ;;  %v2067_v0 = vld [vmem:[%s9523_s9 + $0x50] sm:$0xff]  ;;  %v2074_v42 = vld [vmem:[%s9523_s9 + $0x88] sm:$0xff] }
 0x719   :  { %6595 = vtanh.f32 %v7859_v53 }
 0x723   :  { %v6596_v58 = vpop.eup %6595 }
 0x724   :  { %v1695_v37 = vmul.f32 %v6596_v58, %v6594_v30  ;;  %v2076_v30 = vld [vmem:[%s9523_s9 + $0x98] sm:$0xff] }
 0x725   :  { %v2080_v58 = vld [vmem:[%s9523_s9 + $0xb8] sm:$0xff] }
 0x726   :  { %v1697_v19 = vrot.slane %v1695_v37, 6  ;;  %v7864_v43 = vsel %vm74_vm1, %v7818_v26, %v1695_v37  ;;  %v2061_v26 = vld [vmem:[%s9523_s9 + $0x20] sm:$0xff]  ;;  %v7986_v37 = vpack.c.bf16 %v2069_v27, %v2065_v23  ;;  %v8108_v27 = vpack.c.bf16 %v2102_v36, %v2098_v46  ;;  %v2119_v46 = vld [vmem:[%s9523_s9 + $0x1f0] sm:$0xff] }
 0x727   :  { %v7948_v59 = vpack.c.bf16 %v2061_v26, %v2057_v38  ;;  %v2091_v26 = vld [vmem:[%s9523_s9 + $0x110] sm:$0xff]  ;;  %v2101_v23 = vld [vmem:[%s9523_s9 + $0x160] sm:$0xff] }
 0x728   :  { %1764 = vmatmul.mubr.f32.vlgmr.msra.gmra.mrb[24].mxu0 %v1697_v19  ;;  %1835 = vmatmul.mubr.f32.vlgmr.msra.gmra.mrb[18].mxu1 %v1697_v19  ;;  %v7988_v19 = vpack.c.bf16 %v2071_v49, %v2067_v0  ;;  %v8110_v0 = vpack.c.bf16 %v2104_v4, %v2100_v15  ;;  %v2099_v49 = vld [vmem:[%s9523_s9 + $0x150] sm:$0xff] }
 0x729   :  { %5515 = vmatpush1.bf16.msra.mxu0 %v7482_v20  ;;  %5547 = vmatpush1.bf16.msra.mxu1 %v7236_v44  ;;  %v2058_v44 = vld [vmem:[%s9523_s9 + $0x8] sm:$0xff] }
 0x72a   :  { %5517 = vmatprep.subr.bf16.mxu0 %v7485_v22  ;;  %5549 = vmatprep.subr.bf16.mxu1 %v7260_v56  ;;  %v2062_v56 = vld [vmem:[%s9523_s9 + $0x28] sm:$0xff] }
 0x72b   :  { %1936 = vmatprep.mubr.f32.mxu0 %v9568_v25  ;;  %2007 = vmatprep.mubr.f32.mxu1 %v9568_v25 }
 0x72d   :  { %5519 = vmatpush1.bf16.msra.mxu0 %v7505_v28  ;;  %5551 = vmatpush1.bf16.msra.mxu1 %v7276_v61  ;;  %v2060_v61 = vld [vmem:[%s9523_s9 + $0x18] sm:$0xff] }
 0x72e   :  { %5521 = vmatprep.subr.bf16.mxu0 %v7508_v29  ;;  %5553 = vmatprep.subr.bf16.mxu1 %v7285_v1  ;;  %v7907_v1 = vpack.c.bf16 %v2062_v56, %v2058_v44  ;;  %v2073_v44 = vld [vmem:[%s9523_s9 + $0x80] sm:$0xff] }
 0x72f   :  { %v2077_v56 = vld [vmem:[%s9523_s9 + $0xa0] sm:$0xff] }
 0x731   :  { %5523 = vmatpush1.bf16.msra.mxu0 %v7528_v34  ;;  %5555 = vmatpush1.bf16.msra.mxu1 %v7312_v9  ;;  %v2064_v9 = vld [vmem:[%s9523_s9 + $0x38] sm:$0xff] }
 0x732   :  { %5525 = vmatprep.subr.bf16.mxu0 %v7532_v35  ;;  %5557 = vmatprep.subr.bf16.mxu1 %v7321_v13  ;;  %v7912_v13 = vpack.c.bf16 %v2064_v9, %v2060_v61  ;;  %v8000_v9 = vpack.c.bf16 %v2080_v58, %v2076_v30  ;;  %v2110_v30 = vld [vmem:[%s9523_s9 + $0x1a8] sm:$0xff]  ;;  %v2108_v58 = vld [vmem:[%s9523_s9 + $0x198] sm:$0xff] }
 0x735   :  { %5527 = vmatpush1.bf16.msra.mxu0 %v7549_v39  ;;  %5559 = vmatpush1.bf16.msra.mxu1 %v7344_v21 }
 0x736   :  { %5529 = vmatprep.subr.bf16.mxu0 %v7552_v41  ;;  %5561 = vmatprep.subr.bf16.mxu1 %v7350_v24 }
 0x739   :  { %5531 = vmatpush1.bf16.msra.mxu0 %v7569_v50  ;;  %5563 = vmatpush1.bf16.msra.mxu1 %v7374_v33 }
 0x73a   :  { %5533 = vmatprep.subr.bf16.mxu0 %v7572_v51  ;;  %5565 = vmatprep.subr.bf16.mxu1 %v7392_v40  ;;  %v1865_v51 = vrot.slane %v7859_v53, 6  ;;  %v2078_v53 = vld [vmem:[%s9523_s9 + $0xa8] sm:$0xff] }
 0x73b   :  { %v7998_v61 = vpack.c.bf16 %v2078_v53, %v2074_v42  ;;  %v2103_v42 = vld [vmem:[%s9523_s9 + $0x170] sm:$0xff]  ;;  %v2106_v53 = vld [vmem:[%s9523_s9 + $0x188] sm:$0xff] }
 0x73d   :  { %5535 = vmatpush1.bf16.msra.mxu0 %v7589_v62  ;;  %5567 = vmatpush1.bf16.msra.mxu1 %v7406_v48 }
 0x73e   :  { %5537 = vmatprep.subr.bf16.mxu0 %v7592_v63  ;;  %5569 = vmatprep.subr.bf16.mxu1 %v7415_v52 }
 0x741   :  { %5539 = vmatpush1.bf16.msra.mxu0 %v7609_v7  ;;  %5571 = vmatpush1.bf16.msra.mxu1 %v7439_v2 }
 0x742   :  { %5541 = vmatprep.subr.bf16.mxu0 %v7612_v8  ;;  %5573 = vmatprep.subr.bf16.mxu1 %v7445_v5 }
 0x745   :  { %5543 = vmatpush1.bf16.msra.mxu0 %v7623_v12  ;;  %5575 = vmatpush1.bf16.msra.mxu1 %v7464_v14 }
 0x746   :  { %5577 = vmatprep.subr.bf16.mxu0 %v7907_v1  ;;  %5609 = vmatprep.subr.bf16.mxu1 %v7912_v13 }
 0x7fb   :  { %v1765_v21 = vpop.f32.mrb[24].mxu0  ;;  %v1836_v24 = vpop.f32.mrb[18].mxu1 }
 0x7fc   :  { %v1841_v33 = vadd.f32 %v1765_v21, %v7680_v57  ;;  %v1767_v40 = vpop.f32.mrb[25].mxu0  ;;  %v1838_v48 = vpop.f32.mrb[19].mxu1  ;;  %v1843_v22 = vadd.f32 %v1836_v24, %v7688_v11  ;;  %v2075_v21 = vld [vmem:[%s9523_s9 + $0x90] sm:$0xff] }
 0x7fd   :  { %v1842_v52 = vadd.f32 %v1767_v40, %v7684_v60  ;;  %v1844_v14 = vadd.f32 %v1838_v48, %v7690_v17  ;;  %v2079_v24 = vld [vmem:[%s9523_s9 + $0xb0] sm:$0xff]  ;;  %v2086_v40 = vld [vmem:[%s9523_s9 + $0xe8] sm:$0xff]  ;;  %v2084_v48 = vld [vmem:[%s9523_s9 + $0xd8] sm:$0xff] }
 0x7fe   :  { %v4922_v2 = vmul.f32 -1.442695, %v1841_v33  ;;  %v2082_v33 = vld [vmem:[%s9523_s9 + $0xc8] sm:$0xff] }
 0x7ff   :  { %v4923_v5 = vmul.f32 -1.442695, %v1842_v52  ;;  %v4924_v20 = vmul.f32 -1.442695, %v1844_v14  ;;  %v2088_v52 = vld [vmem:[%s9523_s9 + $0xf8] sm:$0xff]  ;;  %v2081_v14 = vld [vmem:[%s9523_s9 + $0xc0] sm:$0xff] }
 0x800   :  { %6597 = vpow2.f32 %v4922_v2  ;;  %v8024_v2 = vpack.c.bf16 %v2077_v56, %v2073_v44  ;;  %v2112_v44 = vld [vmem:[%s9523_s9 + $0x1b8] sm:$0xff] }
 0x801   :  { %6599 = vpow2.f32 %v4923_v5  ;;  %v8026_v5 = vpack.c.bf16 %v2079_v24, %v2075_v21  ;;  %v8134_v21 = vpack.c.bf16 %v2103_v42, %v2099_v49  ;;  %v2105_v24 = vld [vmem:[%s9523_s9 + $0x180] sm:$0xff] }
 0x802   :  { %6601 = vpow2.f32 %v4924_v20  ;;  %v2085_v20 = vld [vmem:[%s9523_s9 + $0xe0] sm:$0xff] }
 0x803   :  { %6603 = vtanh.f32 %v1843_v22  ;;  %v8036_v22 = vpack.c.bf16 %v2086_v40, %v2082_v33  ;;  %v2109_v33 = vld [vmem:[%s9523_s9 + $0x1a0] sm:$0xff]  ;;  %v8144_v40 = vpack.c.bf16 %v2110_v30, %v2106_v53 }
 0x80a   :  { %v6598_v28 = vpop.eup %6597 }
 0x80b   :  { %v6600_v29 = vpop.eup %6599  ;;  %v1848_v34 = vadd.f32 1.0, %v6598_v28  ;;  %v8038_v28 = vpack.c.bf16 %v2088_v52, %v2084_v48  ;;  %v8146_v48 = vpack.c.bf16 %v2112_v44, %v2108_v58  ;;  %v2107_v52 = vld [vmem:[%s9523_s9 + $0x190] sm:$0xff] }
 0x80c   :  { %v1854_v35 = vadd.f32 1.0, %v6600_v29  ;;  %v6602_v39 = vpop.eup %6601  ;;  %v2083_v29 = vld [vmem:[%s9523_s9 + $0xd0] sm:$0xff] }
 0x80d   :  { %6605 = vrcp.f32 %v1848_v34  ;;  %v6604_v41 = vpop.eup %6603  ;;  %v1861_v7 = vadd.f32 1.0, %v6602_v39  ;;  %v2087_v34 = vld [vmem:[%s9523_s9 + $0xf0] sm:$0xff]  ;;  %v2094_v39 = vld [vmem:[%s9523_s9 + $0x128] sm:$0xff] }
 0x80e   :  { %6607 = vrcp.f32 %v1854_v35  ;;  %v2090_v35 = vld [vmem:[%s9523_s9 + $0x108] sm:$0xff] }
 0x80f   :  { %6609 = vrcp.f32 %v1861_v7  ;;  %v2093_v7 = vld [vmem:[%s9523_s9 + $0x120] sm:$0xff] }
 0x817   :  { %v6606_v50 = vpop.eup %6605 }
 0x818   :  { %v6608_v62 = vpop.eup %6607  ;;  %v1868_v63 = vmul.f32 %v6606_v50, %v6604_v41  ;;  %v2092_v41 = vld [vmem:[%s9523_s9 + $0x118] sm:$0xff] }
 0x819   :  { %v1867_v8 = vmul.f32 %v6608_v62, %v1865_v51  ;;  %v6610_v3 = vpop.eup %6609  ;;  %v2096_v50 = vld [vmem:[%s9523_s9 + $0x138] sm:$0xff]  ;;  %v8060_v51 = vpack.c.bf16 %v2085_v20, %v2081_v14  ;;  %v8062_v62 = vpack.c.bf16 %v2087_v34, %v2083_v29  ;;  %v2111_v14 = vld [vmem:[%s9523_s9 + $0x1b0] sm:$0xff]  ;;  %v2114_v20 = vld [vmem:[%s9523_s9 + $0x1c8] sm:$0xff] }
 0x81a   :  { %v8074_v38 = vpack.c.bf16 %v2096_v50, %v2092_v41  ;;  %v2118_v29 = vld [vmem:[%s9523_s9 + $0x1e8] sm:$0xff]  ;;  %v2116_v34 = vld [vmem:[%s9523_s9 + $0x1d8] sm:$0xff]  ;;  %v8170_v41 = vpack.c.bf16 %v2111_v14, %v2107_v52  ;;  %v2113_v50 = vld [vmem:[%s9523_s9 + $0x1c0] sm:$0xff] }
 0x81b   :  { %v7921_v12 = vadd.f32 %v1868_v63, %v1867_v8  ;;  %v2089_v63 = vld [vmem:[%s9523_s9 + $0x100] sm:$0xff]  ;;  %v8072_v8 = vpack.c.bf16 %v2094_v39, %v2090_v35  ;;  %v2120_v35 = vld [vmem:[%s9523_s9 + $0x1f8] sm:$0xff]  ;;  %v8168_v39 = vpack.c.bf16 %v2109_v33, %v2105_v24 }
 0x81c   :  { %v8096_v54 = vpack.c.bf16 %v2093_v7, %v2089_v63  ;;  %v8177_v63 = vpack.c.bf16 %v2118_v29, %v2114_v20  ;;  %v8179_v7 = vpack.c.bf16 %v2120_v35, %v2116_v34 }
 0x81d   :  { %6611 = vtanh.f32 %v7921_v12 }
 0x827   :  { %v6612_v55 = vpop.eup %6611 }
 0x828   :  { %v7958_v6 = vmul.f32 %v6612_v55, %v6610_v3  ;;  %v8098_v3 = vpack.c.bf16 %v2095_v32, %v2091_v26  ;;  %v2097_v55 = vld [vmem:[%s9523_s9 + $0x140] sm:$0xff]  ;;  %v2115_v32 = vld [vmem:[%s9523_s9 + $0x1d0] sm:$0xff] }
 0x829   :  { %v8132_v56 = vpack.c.bf16 %v2101_v23, %v2097_v55  ;;  %v2117_v26 = vld [vmem:[%s9523_s9 + $0x1e0] sm:$0xff]  ;;  %v8194_v15 = vpack.c.bf16 %v2119_v46, %v2115_v32  ;;  %v2050_v46 = vrot.slane %v7921_v12, 6 }
 0x82a   :  { %1937 = vmatmul.mubr.f32.vlgmr.msra.gmra.mrb[26].mxu0 %v7958_v6  ;;  %2008 = vmatmul.mubr.f32.vlgmr.msra.gmra.mrb[20].mxu1 %v7958_v6  ;;  %v8192_v36 = vpack.c.bf16 %v2117_v26, %v2113_v50 }
 0x82b   :  { %5579 = vmatpush1.bf16.msra.mxu0 %v7948_v59  ;;  %5611 = vmatpush1.bf16.msra.mxu1 %v7950_v16 }
 0x82c   :  { %5581 = vmatprep.subr.bf16.mxu0 %v7960_v47  ;;  %5613 = vmatprep.subr.bf16.mxu1 %v7962_v18 }
 0x82d   :  { %2185 = vmatprep.mubr.f32.mxu0 %v9568_v25  ;;  %2256 = vmatprep.mubr.f32.mxu1 %v9568_v25 }
 0x82f   :  { %5583 = vmatpush1.bf16.msra.mxu0 %v7986_v37  ;;  %5615 = vmatpush1.bf16.msra.mxu1 %v7988_v19 }
 0x830   :  { %5585 = vmatprep.subr.bf16.mxu0 %v7998_v61  ;;  %5617 = vmatprep.subr.bf16.mxu1 %v8000_v9 }
 0x833   :  { %5587 = vmatpush1.bf16.msra.mxu0 %v8024_v2  ;;  %5619 = vmatpush1.bf16.msra.mxu1 %v8026_v5 }
 0x834   :  { %5589 = vmatprep.subr.bf16.mxu0 %v8036_v22  ;;  %5621 = vmatprep.subr.bf16.mxu1 %v8038_v28 }
 0x837   :  { %5591 = vmatpush1.bf16.msra.mxu0 %v8060_v51  ;;  %5623 = vmatpush1.bf16.msra.mxu1 %v8062_v62 }
 0x838   :  { %5593 = vmatprep.subr.bf16.mxu0 %v8072_v8  ;;  %5625 = vmatprep.subr.bf16.mxu1 %v8074_v38 }
 0x83b   :  { %5595 = vmatpush1.bf16.msra.mxu0 %v8096_v54  ;;  %5627 = vmatpush1.bf16.msra.mxu1 %v8098_v3 }
 0x83c   :  { %5597 = vmatprep.subr.bf16.mxu0 %v8108_v27  ;;  %5629 = vmatprep.subr.bf16.mxu1 %v8110_v0 }
 0x83f   :  { %5599 = vmatpush1.bf16.msra.mxu0 %v8132_v56  ;;  %5631 = vmatpush1.bf16.msra.mxu1 %v8134_v21 }
 0x840   :  { %5601 = vmatprep.subr.bf16.mxu0 %v8144_v40  ;;  %5633 = vmatprep.subr.bf16.mxu1 %v8146_v48 }
 0x843   :  { %5603 = vmatpush1.bf16.msra.mxu0 %v8168_v39  ;;  %5635 = vmatpush1.bf16.msra.mxu1 %v8170_v41 }
 0x844   :  { %5605 = vmatprep.subr.bf16.mxu0 %v8177_v63  ;;  %5637 = vmatprep.subr.bf16.mxu1 %v8179_v7 }
 0x847   :  { %5607 = vmatpush1.bf16.msra.mxu0 %v8192_v36  ;;  %5639 = vmatpush1.bf16.msra.mxu1 %v8194_v15 }
 0x848   :  { %5641 = vmatprep.subr.bf16.mxu0 %v7907_v1  ;;  %5673 = vmatprep.subr.bf16.mxu1 %v7912_v13 }
 0x84a   :  { %2186 = vmatmul.mubr.f32.vlgmr.msra.gmra.mrb[28].mxu0 %v9568_v25  ;;  %2257 = vmatmul.mubr.f32.vlgmr.msra.gmra.mrb[22].mxu1 %v9568_v25 }
 0x84b   :  { %5643 = vmatpush1.bf16.msra.mxu0 %v7948_v59  ;;  %5675 = vmatpush1.bf16.msra.mxu1 %v7950_v16 }
 0x84c   :  { %5645 = vmatprep.subr.bf16.mxu0 %v7960_v47  ;;  %5677 = vmatprep.subr.bf16.mxu1 %v7962_v18 }
 0x84d   :  { %2370 = vmatprep.mubr.f32.mxu0 %v9568_v25  ;;  %2441 = vmatprep.mubr.f32.mxu1 %v9568_v25 }
 0x84f   :  { %5647 = vmatpush1.bf16.msra.mxu0 %v7986_v37  ;;  %5679 = vmatpush1.bf16.msra.mxu1 %v7988_v19 }
 0x850   :  { %5649 = vmatprep.subr.bf16.mxu0 %v7998_v61  ;;  %5681 = vmatprep.subr.bf16.mxu1 %v8000_v9 }
 0x853   :  { %5651 = vmatpush1.bf16.msra.mxu0 %v8024_v2  ;;  %5683 = vmatpush1.bf16.msra.mxu1 %v8026_v5 }
 0x854   :  { %5653 = vmatprep.subr.bf16.mxu0 %v8036_v22  ;;  %5685 = vmatprep.subr.bf16.mxu1 %v8038_v28 }
 0x857   :  { %5655 = vmatpush1.bf16.msra.mxu0 %v8060_v51  ;;  %5687 = vmatpush1.bf16.msra.mxu1 %v8062_v62 }
 0x858   :  { %5657 = vmatprep.subr.bf16.mxu0 %v8072_v8  ;;  %5689 = vmatprep.subr.bf16.mxu1 %v8074_v38 }
 0x85b   :  { %5659 = vmatpush1.bf16.msra.mxu0 %v8096_v54  ;;  %5691 = vmatpush1.bf16.msra.mxu1 %v8098_v3 }
 0x85c   :  { %5661 = vmatprep.subr.bf16.mxu0 %v8108_v27  ;;  %5693 = vmatprep.subr.bf16.mxu1 %v8110_v0 }
 0x85f   :  { %5663 = vmatpush1.bf16.msra.mxu0 %v8132_v56  ;;  %5695 = vmatpush1.bf16.msra.mxu1 %v8134_v21 }
 0x860   :  { %5665 = vmatprep.subr.bf16.mxu0 %v8144_v40  ;;  %5697 = vmatprep.subr.bf16.mxu1 %v8146_v48 }
 0x863   :  { %5667 = vmatpush1.bf16.msra.mxu0 %v8168_v39  ;;  %5699 = vmatpush1.bf16.msra.mxu1 %v8170_v41 }
 0x864   :  { %5669 = vmatprep.subr.bf16.mxu0 %v8177_v63  ;;  %5701 = vmatprep.subr.bf16.mxu1 %v8179_v7 }
 0x867   :  { %5671 = vmatpush1.bf16.msra.mxu0 %v8192_v36  ;;  %5703 = vmatpush1.bf16.msra.mxu1 %v8194_v15 }
 0x868   :  { %5705 = vmatprep.subr.bf16.mxu0 %v7907_v1  ;;  %5737 = vmatprep.subr.bf16.mxu1 %v7912_v13 }
 0x8fd   :  { %v1938_v4 = vpop.f32.mrb[26].mxu0  ;;  %v2009_v55 = vpop.f32.mrb[20].mxu1 }
 0x8fe   :  { %v2018_v23 = vrot.slane %v1938_v4, 6  ;;  %v1940_v49 = vpop.f32.mrb[27].mxu0  ;;  %v2011_v42 = vpop.f32.mrb[21].mxu1  ;;  %v2020_v14 = vrot.slane %v2009_v55, 6 }
 0x8ff   :  { %v2019_v53 = vrot.slane %v1940_v49, 6  ;;  %v2021_v33 = vrot.slane %v2011_v42, 6 }
 0x900   :  { %v2026_v30 = vadd.f32 %v2018_v23, %v7680_v57  ;;  %v2028_v29 = vadd.f32 %v2020_v14, %v7688_v11  ;;  %v8245_v11 = vadd.f32 %v7704_v10, %v7693_v31  ;;  %v9570_v31 = vld [vmem:[#allocation8_spill] sm:$0xff]  ;;  %v9571_v10 = vld [vmem:[#allocation14_spill] sm:$0xff] }
 0x901   :  { %v2027_v58 = vadd.f32 %v2019_v53, %v7684_v60  ;;  %v2029_v52 = vadd.f32 %v2021_v33, %v7690_v17 }
 0x902   :  { %v4925_v44 = vmul.f32 -1.442695, %v2026_v30 }
 0x903   :  { %v4926_v24 = vmul.f32 -1.442695, %v2027_v58  ;;  %v4927_v20 = vmul.f32 -1.442695, %v2029_v52 }
 0x904   :  { %6613 = vpow2.f32 %v4925_v44  ;;  %v9569_v44 = vld [vmem:[#allocation17_spill] sm:$0xff] }
 0x905   :  { %6615 = vpow2.f32 %v4926_v24  ;;  %v8249_v24 = vadd.f32 %v9569_v44, %v7696_v45 }
 0x906   :  { %6617 = vpow2.f32 %v4927_v20 }
 0x907   :  { %6619 = vtanh.f32 %v2028_v29 }
 0x90e   :  { %v6614_v34 = vpop.eup %6613 }
 0x90f   :  { %v6616_v35 = vpop.eup %6615  ;;  %v2033_v50 = vadd.f32 1.0, %v6614_v34 }
 0x910   :  { %v2039_v26 = vadd.f32 1.0, %v6616_v35  ;;  %v6618_v57 = vpop.eup %6617  ;;  %v8255_v35 = vadd.f32 %v9571_v10, %v9570_v31 }
 0x911   :  { %6621 = vrcp.f32 %v2033_v50  ;;  %v6620_v60 = vpop.eup %6619  ;;  %v2046_v17 = vadd.f32 1.0, %v6618_v57  ;;  %v9572_v57 = vld [vmem:[#allocation7_spill] sm:$0xff] }
 0x912   :  { %6623 = vrcp.f32 %v2039_v26 }
 0x913   :  { %6625 = vrcp.f32 %v2046_v17 }
 0x91b   :  { %v6622_v32 = vpop.eup %6621 }
 0x91c   :  { %v6624_v4 = vpop.eup %6623  ;;  %v2053_v23 = vmul.f32 %v6622_v32, %v6620_v60  ;;  %v9573_v60 = vld [vmem:[#allocation13_spill] sm:$0xff] }
 0x91d   :  { %v2052_v55 = vmul.f32 %v6624_v4, %v2050_v46  ;;  %v2187_v49 = vpop.f32.mrb[28].mxu0  ;;  %v2258_v42 = vpop.f32.mrb[22].mxu1  ;;  %v8260_v32 = vadd.f32 %v9573_v60, %v9572_v57 }
 0x91e   :  { %v2267_v53 = vrot.slane %v2187_v49, 6  ;;  %v2189_v30 = vpop.f32.mrb[29].mxu0  ;;  %v2260_v58 = vpop.f32.mrb[23].mxu1  ;;  %v2269_v50 = vrot.slane %v2258_v42, 6 }
 0x91f   :  { %v2268_v33 = vrot.slane %v2189_v30, 6  ;;  %v2054_v52 = vadd.f32 %v2053_v23, %v2052_v55  ;;  %v2270_v34 = vrot.slane %v2260_v58, 6  ;;  %v6626_v26 = vpop.eup %6625 }
 0x920   :  { %v2275_v12 = vadd.f32 %v2267_v53, %v8245_v11  ;;  %v2277_v23 = vadd.f32 %v2269_v50, %v8260_v32 }
 0x921   :  { %v2276_v14 = vadd.f32 %v2268_v33, %v8249_v24  ;;  %6627 = vtanh.f32 %v2054_v52  ;;  %v2278_v45 = vadd.f32 %v2270_v34, %v8255_v35 }
 0x922   :  { %v4928_v20 = vmul.f32 -1.442695, %v2275_v12 }
 0x923   :  { %v4929_v29 = vmul.f32 -1.442695, %v2276_v14  ;;  %v4930_v4 = vmul.f32 -1.442695, %v2278_v45 }
 0x924   :  { %6629 = vpow2.f32 %v4928_v20 }
 0x925   :  { %6631 = vpow2.f32 %v4929_v29 }
 0x926   :  { %6633 = vpow2.f32 %v4930_v4 }
 0x927   :  { %6635 = vtanh.f32 %v2277_v23 }
 0x92b   :  { %v6628_v46 = vpop.eup %6627 }
 0x92c   :  { %v8263_v17 = vmul.f32 %v6628_v46, %v6626_v26 }
 0x92e   :  { %v6630_v55 = vpop.eup %6629 }
 0x92f   :  { %v6632_v49 = vpop.eup %6631  ;;  %v2282_v53 = vadd.f32 1.0, %v6630_v55 }
 0x930   :  { %v2288_v30 = vadd.f32 1.0, %v6632_v49  ;;  %v6634_v42 = vpop.eup %6633 }
 0x931   :  { %6637 = vrcp.f32 %v2282_v53  ;;  %v6636_v58 = vpop.eup %6635  ;;  %v2295_v12 = vadd.f32 1.0, %v6634_v42 }
 0x932   :  { %6639 = vrcp.f32 %v2288_v30 }
 0x933   :  { %6641 = vrcp.f32 %v2295_v12 }
 0x93b   :  { %v6638_v44 = vpop.eup %6637 }
 0x93c   :  { %v6640_v33 = vpop.eup %6639  ;;  %v2299_v52 = vmul.f32 %v6638_v44, %v6636_v58 }
 0x93d   :  { %v2298_v14 = vmul.f32 0.0, %v6640_v33  ;;  %v6642_v29 = vpop.eup %6641 }
 0x93f   :  { %v8265_v20 = vadd.f32 %v2299_v52, %v2298_v14 }
 0x941   :  { %6643 = vtanh.f32 %v8265_v20  ;;  %v2472_v52 = vrot.slane %v8265_v20, 2 }
 0x94b   :  { %v6644_v34 = vpop.eup %6643 }
 0x94c   :  { %v8268_v31 = vmul.f32 %v6644_v34, %v6642_v29 }
 0x94e   :  { %v2304_v10 = vrot.slane %v8268_v31, 2 }
 0x950   :  { %2371 = vmatmul.mubr.f32.vlgmr.msra.gmra.mrb[30].mxu0 %v2304_v10  ;;  %2442 = vmatmul.mubr.f32.vlgmr.msra.gmra.mrb[24].mxu1 %v2304_v10 }
 0x951   :  { %5707 = vmatpush1.bf16.msra.mxu0 %v7948_v59  ;;  %5739 = vmatpush1.bf16.msra.mxu1 %v7950_v16 }
 0x952   :  { %5709 = vmatprep.subr.bf16.mxu0 %v7960_v47  ;;  %5741 = vmatprep.subr.bf16.mxu1 %v7962_v18 }
 0x953   :  { %2543 = vmatprep.mubr.f32.mxu0 %v9568_v25  ;;  %2614 = vmatprep.mubr.f32.mxu1 %v9568_v25 }
 0x955   :  { %5711 = vmatpush1.bf16.msra.mxu0 %v7986_v37  ;;  %5743 = vmatpush1.bf16.msra.mxu1 %v7988_v19 }
 0x956   :  { %5713 = vmatprep.subr.bf16.mxu0 %v7998_v61  ;;  %5745 = vmatprep.subr.bf16.mxu1 %v8000_v9 }
 0x959   :  { %5715 = vmatpush1.bf16.msra.mxu0 %v8024_v2  ;;  %5747 = vmatpush1.bf16.msra.mxu1 %v8026_v5 }
 0x95a   :  { %5717 = vmatprep.subr.bf16.mxu0 %v8036_v22  ;;  %5749 = vmatprep.subr.bf16.mxu1 %v8038_v28 }
 0x95d   :  { %5719 = vmatpush1.bf16.msra.mxu0 %v8060_v51  ;;  %5751 = vmatpush1.bf16.msra.mxu1 %v8062_v62 }
 0x95e   :  { %5721 = vmatprep.subr.bf16.mxu0 %v8072_v8  ;;  %5753 = vmatprep.subr.bf16.mxu1 %v8074_v38 }
 0x961   :  { %5723 = vmatpush1.bf16.msra.mxu0 %v8096_v54  ;;  %5755 = vmatpush1.bf16.msra.mxu1 %v8098_v3 }
 0x962   :  { %5725 = vmatprep.subr.bf16.mxu0 %v8108_v27  ;;  %5757 = vmatprep.subr.bf16.mxu1 %v8110_v0 }
 0x965   :  { %5727 = vmatpush1.bf16.msra.mxu0 %v8132_v56  ;;  %5759 = vmatpush1.bf16.msra.mxu1 %v8134_v21 }
 0x966   :  { %5729 = vmatprep.subr.bf16.mxu0 %v8144_v40  ;;  %5761 = vmatprep.subr.bf16.mxu1 %v8146_v48 }
 0x969   :  { %5731 = vmatpush1.bf16.msra.mxu0 %v8168_v39  ;;  %5763 = vmatpush1.bf16.msra.mxu1 %v8170_v41 }
 0x96a   :  { %5733 = vmatprep.subr.bf16.mxu0 %v8177_v63  ;;  %5765 = vmatprep.subr.bf16.mxu1 %v8179_v7 }
 0x96d   :  { %5735 = vmatpush1.bf16.msra.mxu0 %v8192_v36  ;;  %5767 = vmatpush1.bf16.msra.mxu1 %v8194_v15 }
 0x96e   :  { %5769 = vmatprep.subr.bf16.mxu0 %v7907_v1  ;;  %5801 = vmatprep.subr.bf16.mxu1 %v7912_v13 }
 0xa23   :  { %v2372_v45 = vpop.f32.mrb[30].mxu0  ;;  %v2443_v50 = vpop.f32.mrb[24].mxu1 }
 0xa24   :  { %v2448_v26 = vadd.f32 %v2372_v45, %v8245_v11  ;;  %v2374_v57 = vpop.f32.mrb[31].mxu0  ;;  %v2445_v60 = vpop.f32.mrb[25].mxu1  ;;  %v2450_v53 = vadd.f32 %v2443_v50, %v8260_v32 }
 0xa25   :  { %v2449_v46 = vadd.f32 %v2374_v57, %v8249_v24  ;;  %v2451_v55 = vadd.f32 %v2445_v60, %v8255_v35 }
 0xa26   :  { %v4931_v4 = vmul.f32 -1.442695, %v2448_v26 }
 0xa27   :  { %v4932_v23 = vmul.f32 -1.442695, %v2449_v46  ;;  %v4933_v49 = vmul.f32 -1.442695, %v2451_v55  ;;  %v9575_v55 = vld [vmem:[#allocation16_spill] sm:$0xff] }
 0xa28   :  { %6645 = vpow2.f32 %v4931_v4  ;;  %v9574_v4 = vld [vmem:[#allocation15_spill] sm:$0xff] }
 0xa29   :  { %6647 = vpow2.f32 %v4932_v23 }
 0xa2a   :  { %6649 = vpow2.f32 %v4933_v49 }
 0xa2b   :  { %6651 = vtanh.f32 %v2450_v53 }
 0xa32   :  { %v6646_v30 = vpop.eup %6645 }
 0xa33   :  { %v6648_v42 = vpop.eup %6647  ;;  %v2455_v58 = vadd.f32 1.0, %v6646_v30 }
 0xa34   :  { %v2461_v44 = vadd.f32 1.0, %v6648_v42  ;;  %v6650_v11 = vpop.eup %6649 }
 0xa35   :  { %6653 = vrcp.f32 %v2455_v58  ;;  %v6652_v33 = vpop.eup %6651  ;;  %v2468_v29 = vadd.f32 1.0, %v6650_v11  ;;  %v9576_v58 = vld [vmem:[#allocation12_spill] sm:$0xff] }
 0xa36   :  { %6655 = vrcp.f32 %v2461_v44 }
 0xa37   :  { %6657 = vrcp.f32 %v2468_v29 }
 0xa3f   :  { %v6654_v24 = vpop.eup %6653 }
 0xa40   :  { %v6656_v12 = vpop.eup %6655  ;;  %v2475_v14 = vmul.f32 %v6654_v24, %v6652_v33  ;;  %v9577_v24 = vld [vmem:[#allocation11_spill] sm:$0xff] }
 0xa41   :  { %v2474_v35 = vmul.f32 %v6656_v12, %v2472_v52  ;;  %v6658_v32 = vpop.eup %6657 }
 0xa43   :  { %v8310_v34 = vadd.f32 %v2475_v14, %v2474_v35 }
 0xa45   :  { %6659 = vtanh.f32 %v8310_v34 }
 0xa4f   :  { %v6660_v10 = vpop.eup %6659 }
 0xa50   :  { %v8313_v45 = vmul.f32 %v6660_v10, %v6658_v32 }
 0xa52   :  { %2544 = vmatmul.mubr.f32.vlgmr.msra.gmra.mrb[32].mxu0 %v8313_v45  ;;  %2615 = vmatmul.mubr.f32.vlgmr.msra.gmra.mrb[26].mxu1 %v8313_v45 }
 0xa53   :  { %5771 = vmatpush1.bf16.msra.mxu0 %v7948_v59  ;;  %5803 = vmatpush1.bf16.msra.mxu1 %v7950_v16 }
 0xa54   :  { %5773 = vmatprep.subr.bf16.mxu0 %v7960_v47  ;;  %5805 = vmatprep.subr.bf16.mxu1 %v7962_v18 }
 0xa55   :  { %2731 = vmatprep.mubr.f32.mxu0 %v9568_v25  ;;  %2802 = vmatprep.mubr.f32.mxu1 %v9568_v25 }
 0xa57   :  { %5775 = vmatpush1.bf16.msra.mxu0 %v7986_v37  ;;  %5807 = vmatpush1.bf16.msra.mxu1 %v7988_v19 }
 0xa58   :  { %5777 = vmatprep.subr.bf16.mxu0 %v7998_v61  ;;  %5809 = vmatprep.subr.bf16.mxu1 %v8000_v9 }
 0xa5b   :  { %5779 = vmatpush1.bf16.msra.mxu0 %v8024_v2  ;;  %5811 = vmatpush1.bf16.msra.mxu1 %v8026_v5 }
 0xa5c   :  { %5781 = vmatprep.subr.bf16.mxu0 %v8036_v22  ;;  %5813 = vmatprep.subr.bf16.mxu1 %v8038_v28 }
 0xa5f   :  { %5783 = vmatpush1.bf16.msra.mxu0 %v8060_v51  ;;  %5815 = vmatpush1.bf16.msra.mxu1 %v8062_v62 }
 0xa60   :  { %5785 = vmatprep.subr.bf16.mxu0 %v8072_v8  ;;  %5817 = vmatprep.subr.bf16.mxu1 %v8074_v38 }
 0xa63   :  { %5787 = vmatpush1.bf16.msra.mxu0 %v8096_v54  ;;  %5819 = vmatpush1.bf16.msra.mxu1 %v8098_v3 }
 0xa64   :  { %5789 = vmatprep.subr.bf16.mxu0 %v8108_v27  ;;  %5821 = vmatprep.subr.bf16.mxu1 %v8110_v0 }
 0xa67   :  { %5791 = vmatpush1.bf16.msra.mxu0 %v8132_v56  ;;  %5823 = vmatpush1.bf16.msra.mxu1 %v8134_v21 }
 0xa68   :  { %5793 = vmatprep.subr.bf16.mxu0 %v8144_v40  ;;  %5825 = vmatprep.subr.bf16.mxu1 %v8146_v48 }
 0xa6b   :  { %5795 = vmatpush1.bf16.msra.mxu0 %v8168_v39  ;;  %5827 = vmatpush1.bf16.msra.mxu1 %v8170_v41 }
 0xa6c   :  { %5797 = vmatprep.subr.bf16.mxu0 %v8177_v63  ;;  %5829 = vmatprep.subr.bf16.mxu1 %v8179_v7 }
 0xa6f   :  { %5799 = vmatpush1.bf16.msra.mxu0 %v8192_v36  ;;  %5831 = vmatpush1.bf16.msra.mxu1 %v8194_v15 }
 0xa70   :  { %5833 = vmatprep.subr.bf16.mxu0 %v7907_v1  ;;  %5865 = vmatprep.subr.bf16.mxu1 %v7912_v13 }
 0xb25   :  { %v2545_v20 = vpop.f32.mrb[32].mxu0  ;;  %v2616_v50 = vpop.f32.mrb[26].mxu1 }
 0xb26   :  { %v2625_v26 = vrot.slane %v2545_v20, 2  ;;  %v2547_v57 = vpop.f32.mrb[33].mxu0  ;;  %v2618_v60 = vpop.f32.mrb[27].mxu1  ;;  %v2627_v11 = vrot.slane %v2616_v50, 2 }
 0xb27   :  { %v2626_v46 = vrot.slane %v2547_v57, 2  ;;  %v2628_v42 = vrot.slane %v2618_v60, 2 }
 0xb28   :  { %v2633_v23 = vadd.f32 %v2625_v26, %v9574_v4  ;;  %v2635_v52 = vadd.f32 %v2627_v11, %v9577_v24  ;;  %v2657_v26 = vrot.slane %v8310_v34, 2 }
 0xb29   :  { %v2634_v49 = vadd.f32 %v2626_v46, %v9575_v55  ;;  %v2636_v44 = vadd.f32 %v2628_v42, %v9576_v58 }
 0xb2a   :  { %v4934_v53 = vmul.f32 -1.442695, %v2633_v23 }
 0xb2b   :  { %v4935_v30 = vmul.f32 -1.442695, %v2634_v49  ;;  %v4936_v33 = vmul.f32 -1.442695, %v2636_v44 }
 0xb2c   :  { %6661 = vpow2.f32 %v4934_v53 }
 0xb2d   :  { %6663 = vpow2.f32 %v4935_v30 }
 0xb2e   :  { %6665 = vpow2.f32 %v4936_v33 }
 0xb2f   :  { %6667 = vtanh.f32 %v2635_v52 }
 0xb36   :  { %v6662_v12 = vpop.eup %6661 }
 0xb37   :  { %v6664_v14 = vpop.eup %6663  ;;  %v2640_v29 = vadd.f32 1.0, %v6662_v12 }
 0xb38   :  { %v2646_v35 = vadd.f32 1.0, %v6664_v14  ;;  %v6666_v32 = vpop.eup %6665 }
 0xb39   :  { %6669 = vrcp.f32 %v2640_v29  ;;  %v6668_v10 = vpop.eup %6667  ;;  %v2653_v46 = vadd.f32 1.0, %v6666_v32 }
 0xb3a   :  { %6671 = vrcp.f32 %v2646_v35 }
 0xb3b   :  { %6673 = vrcp.f32 %v2653_v46 }
 0xb43   :  { %v6670_v20 = vpop.eup %6669 }
 0xb44   :  { %v6672_v57 = vpop.eup %6671  ;;  %v2660_v60 = vmul.f32 %v6670_v20, %v6668_v10 }
 0xb45   :  { %v2659_v50 = vmul.f32 %v6672_v57, %v2657_v26  ;;  %v6674_v49 = vpop.eup %6673 }
 0xb47   :  { %v8356_v23 = vadd.f32 %v2660_v60, %v2659_v50 }
 0xb49   :  { %6675 = vtanh.f32 %v8356_v23 }
 0xb53   :  { %v6676_v53 = vpop.eup %6675 }
 0xb54   :  { %v8359_v30 = vmul.f32 %v6676_v53, %v6674_v49 }
 0xb56   :  { %v2665_v42 = vrot.slane %v8359_v30, 6 }
 0xb58   :  { %2732 = vmatmul.mubr.f32.vlgmr.msra.gmra.mrb[34].mxu0 %v2665_v42  ;;  %2803 = vmatmul.mubr.f32.vlgmr.msra.gmra.mrb[28].mxu1 %v2665_v42 }
 0xb59   :  { %5835 = vmatpush1.bf16.msra.mxu0 %v7948_v59  ;;  %5867 = vmatpush1.bf16.msra.mxu1 %v7950_v16 }
 0xb5a   :  { %5837 = vmatprep.subr.bf16.mxu0 %v7960_v47  ;;  %5869 = vmatprep.subr.bf16.mxu1 %v7962_v18 }
 0xb5b   :  { %2919 = vmatprep.mubr.f32.mxu0 %v9568_v25  ;;  %2990 = vmatprep.mubr.f32.mxu1 %v9568_v25 }
 0xb5d   :  { %5839 = vmatpush1.bf16.msra.mxu0 %v7986_v37  ;;  %5871 = vmatpush1.bf16.msra.mxu1 %v7988_v19 }
 0xb5e   :  { %5841 = vmatprep.subr.bf16.mxu0 %v7998_v61  ;;  %5873 = vmatprep.subr.bf16.mxu1 %v8000_v9 }
 0xb61   :  { %5843 = vmatpush1.bf16.msra.mxu0 %v8024_v2  ;;  %5875 = vmatpush1.bf16.msra.mxu1 %v8026_v5 }
 0xb62   :  { %5845 = vmatprep.subr.bf16.mxu0 %v8036_v22  ;;  %5877 = vmatprep.subr.bf16.mxu1 %v8038_v28 }
 0xb65   :  { %5847 = vmatpush1.bf16.msra.mxu0 %v8060_v51  ;;  %5879 = vmatpush1.bf16.msra.mxu1 %v8062_v62 }
 0xb66   :  { %5849 = vmatprep.subr.bf16.mxu0 %v8072_v8  ;;  %5881 = vmatprep.subr.bf16.mxu1 %v8074_v38 }
 0xb69   :  { %5851 = vmatpush1.bf16.msra.mxu0 %v8096_v54  ;;  %5883 = vmatpush1.bf16.msra.mxu1 %v8098_v3 }
 0xb6a   :  { %5853 = vmatprep.subr.bf16.mxu0 %v8108_v27  ;;  %5885 = vmatprep.subr.bf16.mxu1 %v8110_v0 }
 0xb6d   :  { %5855 = vmatpush1.bf16.msra.mxu0 %v8132_v56  ;;  %5887 = vmatpush1.bf16.msra.mxu1 %v8134_v21 }
 0xb6e   :  { %5857 = vmatprep.subr.bf16.mxu0 %v8144_v40  ;;  %5889 = vmatprep.subr.bf16.mxu1 %v8146_v48 }
 0xb71   :  { %5859 = vmatpush1.bf16.msra.mxu0 %v8168_v39  ;;  %5891 = vmatpush1.bf16.msra.mxu1 %v8170_v41 }
 0xb72   :  { %5861 = vmatprep.subr.bf16.mxu0 %v8177_v63  ;;  %5893 = vmatprep.subr.bf16.mxu1 %v8179_v7 }
 0xb75   :  { %5863 = vmatpush1.bf16.msra.mxu0 %v8192_v36  ;;  %5895 = vmatpush1.bf16.msra.mxu1 %v8194_v15 }
 0xb76   :  { %5897 = vmatprep.subr.bf16.mxu0 %v7907_v1  ;;  %5929 = vmatprep.subr.bf16.mxu1 %v7912_v13 }
 0xc2b   :  { %v2733_v34 = vpop.f32.mrb[34].mxu0  ;;  %v2804_v44 = vpop.f32.mrb[28].mxu1 }
 0xc2c   :  { %v2813_v11 = vrot.slane %v2733_v34, 4  ;;  %v2735_v33 = vpop.f32.mrb[35].mxu0  ;;  %v2806_v52 = vpop.f32.mrb[29].mxu1  ;;  %v2815_v1 = vrot.slane %v2804_v44, 4  ;;  %v2845_v34 = vrot.slane %v8356_v23, 2 }
 0xc2d   :  { %v2814_v12 = vrot.slane %v2735_v33, 4  ;;  %v2816_v10 = vrot.slane %v2806_v52, 4 }
 0xc2e   :  { %v2821_v14 = vadd.f32 %v2813_v11, %v9574_v4  ;;  %v2823_v13 = vadd.f32 %v2815_v1, %v9577_v24 }
 0xc2f   :  { %v2822_v29 = vadd.f32 %v2814_v12, %v9575_v55  ;;  %v2824_v20 = vadd.f32 %v2816_v10, %v9576_v58 }
 0xc30   :  { %v4937_v35 = vmul.f32 -1.442695, %v2821_v14 }
 0xc31   :  { %v4938_v32 = vmul.f32 -1.442695, %v2822_v29  ;;  %v4939_v26 = vmul.f32 -1.442695, %v2824_v20 }
 0xc32   :  { %6677 = vpow2.f32 %v4937_v35 }
 0xc33   :  { %6679 = vpow2.f32 %v4938_v32 }
 0xc34   :  { %6681 = vpow2.f32 %v4939_v26  ;;  %v3224_v26 = vld [vmem:[%s9525_s11] sm:$0xff] }
 0xc35   :  { %6683 = vtanh.f32 %v2823_v13  ;;  %v3228_v13 = vld [vmem:[%s9525_s11 + $0x20] sm:$0xff] }
 0xc3c   :  { %v6678_v57 = vpop.eup %6677 }
 0xc3d   :  { %v6680_v60 = vpop.eup %6679  ;;  %v2828_v46 = vadd.f32 1.0, %v6678_v57 }
 0xc3e   :  { %v2834_v50 = vadd.f32 1.0, %v6680_v60  ;;  %v6682_v49 = vpop.eup %6681  ;;  %v3226_v60 = vld [vmem:[%s9525_s11 + $0x10] sm:$0xff] }
 0xc3f   :  { %6685 = vrcp.f32 %v2828_v46  ;;  %v6684_v53 = vpop.eup %6683  ;;  %v2841_v52 = vadd.f32 1.0, %v6682_v49  ;;  %v3230_v46 = vld [vmem:[%s9525_s11 + $0x30] sm:$0xff] }
 0xc40   :  { %6687 = vrcp.f32 %v2834_v50  ;;  %v3233_v50 = vld [vmem:[%s9525_s11 + $0x48] sm:$0xff] }
 0xc41   :  { %6689 = vrcp.f32 %v2841_v52  ;;  %v6026_v52 = vpack.c.bf16 %v3230_v46, %v3226_v60  ;;  %v3258_v46 = vld [vmem:[%s9525_s11 + $0x110] sm:$0xff] }
 0xc49   :  { %v6686_v42 = vpop.eup %6685 }
 0xc4a   :  { %v6688_v11 = vpop.eup %6687  ;;  %v2848_v33 = vmul.f32 %v6686_v42, %v6684_v53  ;;  %v3237_v53 = vld [vmem:[%s9525_s11 + $0x68] sm:$0xff]  ;;  %v3235_v42 = vld [vmem:[%s9525_s11 + $0x58] sm:$0xff] }
 0xc4b   :  { %v2847_v44 = vmul.f32 %v6688_v11, %v2845_v34  ;;  %v6690_v14 = vpop.eup %6689  ;;  %v3239_v34 = vld [vmem:[%s9525_s11 + $0x78] sm:$0xff] }
 0xc4d   :  { %v8401_v12 = vadd.f32 %v2848_v33, %v2847_v44  ;;  %v5962_v33 = vpack.c.bf16 %v3228_v13, %v3224_v26  ;;  %v3232_v44 = vld [vmem:[%s9525_s11 + $0x40] sm:$0xff] }
 0xc4e   :  { %v3256_v26 = vld [vmem:[%s9525_s11 + $0x100] sm:$0xff] }
 0xc4f   :  { %6691 = vtanh.f32 %v8401_v12  ;;  %v3260_v13 = vld [vmem:[%s9525_s11 + $0x120] sm:$0xff] }
 0xc50   :  { %v5978_v60 = vpack.c.bf16 %v3260_v13, %v3256_v26 }
 0xc59   :  { %v6692_v29 = vpop.eup %6691 }
 0xc5a   :  { %v8404_v35 = vmul.f32 %v6692_v29, %v6690_v14  ;;  %v5964_v29 = vpack.c.bf16 %v3237_v53, %v3233_v50  ;;  %v3262_v50 = vld [vmem:[%s9525_s11 + $0x130] sm:$0xff]  ;;  %v3265_v53 = vld [vmem:[%s9525_s11 + $0x148] sm:$0xff] }
 0xc5c   :  { %v2853_v32 = vrot.slane %v8404_v35, 4 }
 0xc5e   :  { %2920 = vmatmul.mubr.f32.vlgmr.msra.gmra.mrb[36].mxu0 %v2853_v32  ;;  %2991 = vmatmul.mubr.f32.vlgmr.msra.gmra.mrb[30].mxu1 %v2853_v32  ;;  %v6028_v32 = vpack.c.bf16 %v3239_v34, %v3235_v42  ;;  %v3269_v42 = vld [vmem:[%s9525_s11 + $0x168] sm:$0xff]  ;;  %v3267_v34 = vld [vmem:[%s9525_s11 + $0x158] sm:$0xff] }
 0xc5f   :  { %5899 = vmatpush1.bf16.msra.mxu0 %v7948_v59  ;;  %5931 = vmatpush1.bf16.msra.mxu1 %v7950_v16  ;;  %v3225_v59 = vld [vmem:[%s9525_s11 + $0x8] sm:$0xff] }
 0xc60   :  { %5901 = vmatprep.subr.bf16.mxu0 %v7960_v47  ;;  %5933 = vmatprep.subr.bf16.mxu1 %v7962_v18  ;;  %v3229_v16 = vld [vmem:[%s9525_s11 + $0x28] sm:$0xff]  ;;  %v3227_v47 = vld [vmem:[%s9525_s11 + $0x18] sm:$0xff] }
 0xc61   :  { %3107 = vmatprep.mubr.f32.mxu0 %v9568_v25  ;;  %3178 = vmatprep.mubr.f32.mxu1 %v9568_v25  ;;  %v5960_v18 = vpack.c.bf16 %v3229_v16, %v3225_v59  ;;  %v3234_v59 = vld [vmem:[%s9525_s11 + $0x50] sm:$0xff] }
 0xc62   :  { %v3238_v16 = vld [vmem:[%s9525_s11 + $0x70] sm:$0xff] }
 0xc63   :  { %5903 = vmatpush1.bf16.msra.mxu0 %v7986_v37  ;;  %5935 = vmatpush1.bf16.msra.mxu1 %v7988_v19  ;;  %v3231_v37 = vld [vmem:[%s9525_s11 + $0x38] sm:$0xff] }
 0xc64   :  { %5905 = vmatprep.subr.bf16.mxu0 %v7998_v61  ;;  %5937 = vmatprep.subr.bf16.mxu1 %v8000_v9  ;;  %v6024_v19 = vpack.c.bf16 %v3231_v37, %v3227_v47  ;;  %v3241_v47 = vld [vmem:[%s9525_s11 + $0x88] sm:$0xff]  ;;  %v3243_v37 = vld [vmem:[%s9525_s11 + $0x98] sm:$0xff] }
 0xc67   :  { %5907 = vmatpush1.bf16.msra.mxu0 %v8024_v2  ;;  %5939 = vmatpush1.bf16.msra.mxu1 %v8026_v5 }
 0xc68   :  { %5909 = vmatprep.subr.bf16.mxu0 %v8036_v22  ;;  %5941 = vmatprep.subr.bf16.mxu1 %v8038_v28 }
 0xc6b   :  { %5911 = vmatpush1.bf16.msra.mxu0 %v8060_v51  ;;  %5943 = vmatpush1.bf16.msra.mxu1 %v8062_v62 }
 0xc6c   :  { %5913 = vmatprep.subr.bf16.mxu0 %v8072_v8  ;;  %5945 = vmatprep.subr.bf16.mxu1 %v8074_v38 }
 0xc6f   :  { %5915 = vmatpush1.bf16.msra.mxu0 %v8096_v54  ;;  %5947 = vmatpush1.bf16.msra.mxu1 %v8098_v3 }
 0xc70   :  { %5917 = vmatprep.subr.bf16.mxu0 %v8108_v27  ;;  %5949 = vmatprep.subr.bf16.mxu1 %v8110_v0 }
 0xc73   :  { %5919 = vmatpush1.bf16.msra.mxu0 %v8132_v56  ;;  %5951 = vmatpush1.bf16.msra.mxu1 %v8134_v21 }
 0xc74   :  { %5921 = vmatprep.subr.bf16.mxu0 %v8144_v40  ;;  %5953 = vmatprep.subr.bf16.mxu1 %v8146_v48 }
 0xc77   :  { %5923 = vmatpush1.bf16.msra.mxu0 %v8168_v39  ;;  %5955 = vmatpush1.bf16.msra.mxu1 %v8170_v41 }
 0xc78   :  { %5925 = vmatprep.subr.bf16.mxu0 %v8177_v63  ;;  %5957 = vmatprep.subr.bf16.mxu1 %v8179_v7 }
 0xc7b   :  { %5927 = vmatpush1.bf16.msra.mxu0 %v8192_v36  ;;  %5959 = vmatpush1.bf16.msra.mxu1 %v8194_v15  ;;  %v3033_v36 = vrot.slane %v8401_v12, 2  ;;  %v3236_v12 = vld [vmem:[%s9525_s11 + $0x60] sm:$0xff] }
 0xc7c   :  { %5961 = vmatprep.subr.bf16.mxu0 %v5960_v18  ;;  %6025 = vmatprep.subr.bf16.mxu1 %v6024_v19  ;;  %v3245_v18 = vld [vmem:[%s9525_s11 + $0xa8] sm:$0xff]  ;;  %v3247_v19 = vld [vmem:[%s9525_s11 + $0xb8] sm:$0xff] }
 0xd31   :  { %v2921_v61 = vpop.f32.mrb[36].mxu0  ;;  %v2992_v9 = vpop.f32.mrb[30].mxu1 }
 0xd32   :  { %v3001_v2 = vrot.slane %v2921_v61, 6  ;;  %v2923_v5 = vpop.f32.mrb[37].mxu0  ;;  %v2994_v22 = vpop.f32.mrb[31].mxu1  ;;  %v3003_v27 = vrot.slane %v2992_v9, 6  ;;  %v5966_v61 = vpack.c.bf16 %v3236_v12, %v3232_v44  ;;  %v6030_v9 = vpack.c.bf16 %v3238_v16, %v3234_v59  ;;  %v3264_v44 = vld [vmem:[%s9525_s11 + $0x140] sm:$0xff]  ;;  %v3270_v59 = vld [vmem:[%s9525_s11 + $0x170] sm:$0xff] }
 0xd33   :  { %v3002_v28 = vrot.slane %v2923_v5, 6  ;;  %v3004_v54 = vrot.slane %v2994_v22, 6  ;;  %v3244_v5 = vld [vmem:[%s9525_s11 + $0xa0] sm:$0xff]  ;;  %v5968_v22 = vpack.c.bf16 %v3245_v18, %v3241_v47  ;;  %v3273_v47 = vld [vmem:[%s9525_s11 + $0x188] sm:$0xff] }
 0xd34   :  { %v3009_v51 = vadd.f32 %v3001_v2, %v9574_v4  ;;  %v3011_v56 = vadd.f32 %v3003_v27, %v9577_v24  ;;  %v3240_v2 = vld [vmem:[%s9525_s11 + $0x80] sm:$0xff]  ;;  %v3277_v18 = vld [vmem:[%s9525_s11 + $0x1a8] sm:$0xff] }
 0xd35   :  { %v3010_v62 = vadd.f32 %v3002_v28, %v9575_v55  ;;  %v3012_v3 = vadd.f32 %v3004_v54, %v9576_v58  ;;  %v6032_v28 = vpack.c.bf16 %v3247_v19, %v3243_v37  ;;  %v3251_v54 = vld [vmem:[%s9525_s11 + $0xd8] sm:$0xff]  ;;  %v5970_v27 = vpack.c.bf16 %v3244_v5, %v3240_v2  ;;  %v3268_v12 = vld [vmem:[%s9525_s11 + $0x160] sm:$0xff] }
 0xd36   :  { %v4940_v8 = vmul.f32 -1.442695, %v3009_v51  ;;  %v3242_v51 = vld [vmem:[%s9525_s11 + $0x90] sm:$0xff]  ;;  %v3275_v37 = vld [vmem:[%s9525_s11 + $0x198] sm:$0xff]  ;;  %v5984_v19 = vpack.c.bf16 %v3277_v18, %v3273_v47  ;;  %v3276_v2 = vld [vmem:[%s9525_s11 + $0x1a0] sm:$0xff] }
 0xd37   :  { %v4941_v38 = vmul.f32 -1.442695, %v3010_v62  ;;  %v4942_v0 = vmul.f32 -1.442695, %v3012_v3  ;;  %v3246_v62 = vld [vmem:[%s9525_s11 + $0xb0] sm:$0xff]  ;;  %v3255_v3 = vld [vmem:[%s9525_s11 + $0xf8] sm:$0xff] }
 0xd38   :  { %6693 = vpow2.f32 %v4940_v8  ;;  %v3249_v8 = vld [vmem:[%s9525_s11 + $0xc8] sm:$0xff]  ;;  %v3307_v47 = vld [vmem:[%s9525_s11 + $0x298] sm:$0xff] }
 0xd39   :  { %6695 = vpow2.f32 %v4941_v38  ;;  %v3253_v38 = vld [vmem:[%s9525_s11 + $0xe8] sm:$0xff] }
 0xd3a   :  { %6697 = vpow2.f32 %v4942_v0  ;;  %v6034_v0 = vpack.c.bf16 %v3246_v62, %v3242_v51  ;;  %v3278_v51 = vld [vmem:[%s9525_s11 + $0x1b0] sm:$0xff] }
 0xd3b   :  { %6699 = vtanh.f32 %v3011_v56  ;;  %v3248_v56 = vld [vmem:[%s9525_s11 + $0xc0] sm:$0xff] }
 0xd42   :  { %v6694_v21 = vpop.eup %6693 }
 0xd43   :  { %v6696_v40 = vpop.eup %6695  ;;  %v3016_v48 = vadd.f32 1.0, %v6694_v21  ;;  %v5972_v21 = vpack.c.bf16 %v3253_v38, %v3249_v8  ;;  %v3281_v8 = vld [vmem:[%s9525_s11 + $0x1c8] sm:$0xff] }
 0xd44   :  { %v3022_v39 = vadd.f32 1.0, %v6696_v40  ;;  %v6698_v41 = vpop.eup %6697  ;;  %v6036_v40 = vpack.c.bf16 %v3255_v3, %v3251_v54  ;;  %v3285_v38 = vld [vmem:[%s9525_s11 + $0x1e8] sm:$0xff]  ;;  %v3283_v54 = vld [vmem:[%s9525_s11 + $0x1d8] sm:$0xff] }
 0xd45   :  { %6701 = vrcp.f32 %v3016_v48  ;;  %v6700_v63 = vpop.eup %6699  ;;  %v3029_v10 = vadd.f32 1.0, %v6698_v41  ;;  %v3252_v48 = vld [vmem:[%s9525_s11 + $0xe0] sm:$0xff]  ;;  %v3254_v41 = vld [vmem:[%s9525_s11 + $0xf0] sm:$0xff]  ;;  %v5988_v3 = vpack.c.bf16 %v3285_v38, %v3281_v8  ;;  %v3315_v8 = vld [vmem:[%s9525_s11 + $0x2d8] sm:$0xff] }
 0xd46   :  { %6703 = vrcp.f32 %v3022_v39  ;;  %v3250_v39 = vld [vmem:[%s9525_s11 + $0xd0] sm:$0xff] }
 0xd47   :  { %6705 = vrcp.f32 %v3029_v10 }
 0xd4f   :  { %v6702_v7 = vpop.eup %6701 }
 0xd50   :  { %v6704_v15 = vpop.eup %6703  ;;  %v3036_v23 = vmul.f32 %v6702_v7, %v6700_v63  ;;  %v5974_v63 = vpack.c.bf16 %v3252_v48, %v3248_v56  ;;  %v6038_v7 = vpack.c.bf16 %v3254_v41, %v3250_v39  ;;  %v3284_v56 = vld [vmem:[%s9525_s11 + $0x1e0] sm:$0xff]  ;;  %v3282_v48 = vld [vmem:[%s9525_s11 + $0x1d0] sm:$0xff] }
 0xd51   :  { %v3035_v20 = vmul.f32 %v6704_v15, %v3033_v36  ;;  %v6706_v57 = vpop.eup %6705  ;;  %v3257_v36 = vld [vmem:[%s9525_s11 + $0x108] sm:$0xff]  ;;  %v3286_v39 = vld [vmem:[%s9525_s11 + $0x1f0] sm:$0xff] }
 0xd52   :  { %v3261_v15 = vld [vmem:[%s9525_s11 + $0x128] sm:$0xff]  ;;  %v6054_v41 = vpack.c.bf16 %v3286_v39, %v3282_v48 }
 0xd53   :  { %v8456_v1 = vadd.f32 %v3036_v23, %v3035_v20  ;;  %v3259_v23 = vld [vmem:[%s9525_s11 + $0x118] sm:$0xff]  ;;  %v5976_v10 = vpack.c.bf16 %v3261_v15, %v3257_v36  ;;  %v3321_v39 = vld [vmem:[%s9525_s11 + $0x308] sm:$0xff] }
 0xd54   :  { %v3263_v20 = vld [vmem:[%s9525_s11 + $0x138] sm:$0xff] }
 0xd55   :  { %6707 = vtanh.f32 %v8456_v1  ;;  %v3291_v36 = vld [vmem:[%s9525_s11 + $0x218] sm:$0xff] }
 0xd5f   :  { %v6708_v49 = vpop.eup %6707 }
 0xd60   :  { %v8483_v11 = vmul.f32 %v6708_v49, %v6706_v57  ;;  %v6040_v57 = vpack.c.bf16 %v3263_v20, %v3259_v23  ;;  %v6042_v49 = vpack.c.bf16 %v3262_v50, %v3258_v46  ;;  %v3295_v23 = vld [vmem:[%s9525_s11 + $0x238] sm:$0xff]  ;;  %v3292_v20 = vld [vmem:[%s9525_s11 + $0x220] sm:$0xff]  ;;  %v3297_v50 = vld [vmem:[%s9525_s11 + $0x248] sm:$0xff] }
 0xd61   :  { %v6056_v26 = vpack.c.bf16 %v3295_v23, %v3291_v36  ;;  %v3327_v36 = vld [vmem:[%s9525_s11 + $0x338] sm:$0xff]  ;;  %v3324_v23 = vld [vmem:[%s9525_s11 + $0x320] sm:$0xff] }
 0xd62   :  { %v3041_v14 = vrot.slane %v8483_v11, 2 }
 0xd64   :  { %3108 = vmatmul.mubr.f32.vlgmr.msra.gmra.mrb[38].mxu0 %v3041_v14  ;;  %3179 = vmatmul.mubr.f32.vlgmr.msra.gmra.mrb[32].mxu1 %v3041_v14 }
 0xd65   :  { %5963 = vmatpush1.bf16.msra.mxu0 %v5962_v33  ;;  %6027 = vmatpush1.bf16.msra.mxu1 %v6026_v52  ;;  %v5980_v33 = vpack.c.bf16 %v3269_v42, %v3265_v53  ;;  %v3271_v52 = vld [vmem:[%s9525_s11 + $0x178] sm:$0xff] }
 0xd66   :  { %5965 = vmatprep.subr.bf16.mxu0 %v5964_v29  ;;  %6029 = vmatprep.subr.bf16.mxu1 %v6028_v32  ;;  %v6044_v14 = vpack.c.bf16 %v3271_v52, %v3267_v34  ;;  %v5982_v29 = vpack.c.bf16 %v3268_v12, %v3264_v44  ;;  %v3266_v32 = vld [vmem:[%s9525_s11 + $0x150] sm:$0xff]  ;;  %v3299_v53 = vld [vmem:[%s9525_s11 + $0x258] sm:$0xff]  ;;  %v3300_v52 = vld [vmem:[%s9525_s11 + $0x260] sm:$0xff] }
 0xd67   :  { %v6046_v16 = vpack.c.bf16 %v3270_v59, %v3266_v32  ;;  %v3303_v34 = vld [vmem:[%s9525_s11 + $0x278] sm:$0xff]  ;;  %v3305_v59 = vld [vmem:[%s9525_s11 + $0x288] sm:$0xff] }
 0xd68   :  { %v6060_v44 = vpack.c.bf16 %v3303_v34, %v3299_v53  ;;  %v3328_v34 = vld [vmem:[%s9525_s11 + $0x340] sm:$0xff] }
 0xd69   :  { %5967 = vmatpush1.bf16.msra.mxu0 %v5966_v61  ;;  %6031 = vmatpush1.bf16.msra.mxu1 %v6030_v9  ;;  %v3279_v61 = vld [vmem:[%s9525_s11 + $0x1b8] sm:$0xff]  ;;  %v3272_v9 = vld [vmem:[%s9525_s11 + $0x180] sm:$0xff] }
 0xd6a   :  { %5969 = vmatprep.subr.bf16.mxu0 %v5968_v22  ;;  %6033 = vmatprep.subr.bf16.mxu1 %v6032_v28  ;;  %v6048_v5 = vpack.c.bf16 %v3279_v61, %v3275_v37  ;;  %v5986_v22 = vpack.c.bf16 %v3276_v2, %v3272_v9  ;;  %v3274_v28 = vld [vmem:[%s9525_s11 + $0x190] sm:$0xff]  ;;  %v3311_v37 = vld [vmem:[%s9525_s11 + $0x2b8] sm:$0xff]  ;;  %v3308_v61 = vld [vmem:[%s9525_s11 + $0x2a0] sm:$0xff] }
 0xd6b   :  { %v6050_v62 = vpack.c.bf16 %v3278_v51, %v3274_v28  ;;  %v6064_v9 = vpack.c.bf16 %v3311_v37, %v3307_v47  ;;  %v3313_v51 = vld [vmem:[%s9525_s11 + $0x2c8] sm:$0xff]  ;;  %v3343_v47 = vld [vmem:[%s9525_s11 + $0x3b8] sm:$0xff] }
 0xd6d   :  { %5971 = vmatpush1.bf16.msra.mxu0 %v5970_v27  ;;  %6035 = vmatpush1.bf16.msra.mxu1 %v6034_v0  ;;  %v3287_v27 = vld [vmem:[%s9525_s11 + $0x1f8] sm:$0xff]  ;;  %v3280_v0 = vld [vmem:[%s9525_s11 + $0x1c0] sm:$0xff] }
 0xd6e   :  { %5973 = vmatprep.subr.bf16.mxu0 %v5972_v21  ;;  %6037 = vmatprep.subr.bf16.mxu1 %v6036_v40  ;;  %v6052_v21 = vpack.c.bf16 %v3287_v27, %v3283_v54  ;;  %v5990_v40 = vpack.c.bf16 %v3284_v56, %v3280_v0  ;;  %v3319_v54 = vld [vmem:[%s9525_s11 + $0x2f8] sm:$0xff]  ;;  %v3316_v27 = vld [vmem:[%s9525_s11 + $0x2e0] sm:$0xff] }
 0xd6f   :  { %v6068_v0 = vpack.c.bf16 %v3319_v54, %v3315_v8  ;;  %v3351_v8 = vld [vmem:[%s9525_s11 + $0x3f8] sm:$0xff]  ;;  %v3348_v54 = vld [vmem:[%s9525_s11 + $0x3e0] sm:$0xff] }
 0xd71   :  { %5975 = vmatpush1.bf16.msra.mxu0 %v5974_v63  ;;  %6039 = vmatpush1.bf16.msra.mxu1 %v6038_v7  ;;  %v3289_v63 = vld [vmem:[%s9525_s11 + $0x208] sm:$0xff] }
 0xd72   :  { %5977 = vmatprep.subr.bf16.mxu0 %v5976_v10  ;;  %6041 = vmatprep.subr.bf16.mxu1 %v6040_v57  ;;  %v3293_v7 = vld [vmem:[%s9525_s11 + $0x228] sm:$0xff]  ;;  %v3288_v10 = vld [vmem:[%s9525_s11 + $0x200] sm:$0xff]  ;;  %v3290_v57 = vld [vmem:[%s9525_s11 + $0x210] sm:$0xff] }
 0xd73   :  { %v5992_v15 = vpack.c.bf16 %v3293_v7, %v3289_v63  ;;  %v5994_v13 = vpack.c.bf16 %v3292_v20, %v3288_v10  ;;  %v3323_v63 = vld [vmem:[%s9525_s11 + $0x318] sm:$0xff] }
 0xd74   :  { %v6072_v10 = vpack.c.bf16 %v3327_v36, %v3323_v63  ;;  %v3535_v63 = vld [vmem:[%s9526_s12 + $0x38] sm:$0xff] }
 0xd75   :  { %5979 = vmatpush1.bf16.msra.mxu0 %v5978_v60  ;;  %6043 = vmatpush1.bf16.msra.mxu1 %v6042_v49  ;;  %v3294_v60 = vld [vmem:[%s9525_s11 + $0x230] sm:$0xff]  ;;  %v3301_v49 = vld [vmem:[%s9525_s11 + $0x268] sm:$0xff] }
 0xd76   :  { %5981 = vmatprep.subr.bf16.mxu0 %v5980_v33  ;;  %6045 = vmatprep.subr.bf16.mxu1 %v6044_v14  ;;  %v6058_v46 = vpack.c.bf16 %v3294_v60, %v3290_v57  ;;  %v5996_v42 = vpack.c.bf16 %v3301_v49, %v3297_v50  ;;  %v3296_v33 = vld [vmem:[%s9525_s11 + $0x240] sm:$0xff]  ;;  %v3298_v14 = vld [vmem:[%s9525_s11 + $0x250] sm:$0xff]  ;;  %v3329_v57 = vld [vmem:[%s9525_s11 + $0x348] sm:$0xff] }
 0xd77   :  { %v5998_v12 = vpack.c.bf16 %v3300_v52, %v3296_v33  ;;  %v3331_v50 = vld [vmem:[%s9525_s11 + $0x358] sm:$0xff]  ;;  %v3332_v33 = vld [vmem:[%s9525_s11 + $0x360] sm:$0xff]  ;;  %v3330_v52 = vld [vmem:[%s9525_s11 + $0x350] sm:$0xff] }
 0xd78   :  { %v3335_v49 = vld [vmem:[%s9525_s11 + $0x378] sm:$0xff] }
 0xd79   :  { %5983 = vmatpush1.bf16.msra.mxu0 %v5982_v29  ;;  %6047 = vmatpush1.bf16.msra.mxu1 %v6046_v16  ;;  %v3302_v29 = vld [vmem:[%s9525_s11 + $0x270] sm:$0xff]  ;;  %v3309_v16 = vld [vmem:[%s9525_s11 + $0x2a8] sm:$0xff] }
 0xd7a   :  { %5985 = vmatprep.subr.bf16.mxu0 %v5984_v19  ;;  %6049 = vmatprep.subr.bf16.mxu1 %v6048_v5  ;;  %v6062_v32 = vpack.c.bf16 %v3302_v29, %v3298_v14  ;;  %v6000_v18 = vpack.c.bf16 %v3309_v16, %v3305_v59  ;;  %v3304_v19 = vld [vmem:[%s9525_s11 + $0x280] sm:$0xff]  ;;  %v3306_v5 = vld [vmem:[%s9525_s11 + $0x290] sm:$0xff]  ;;  %v3337_v14 = vld [vmem:[%s9525_s11 + $0x388] sm:$0xff] }
 0xd7b   :  { %v6002_v2 = vpack.c.bf16 %v3308_v61, %v3304_v19  ;;  %v3341_v29 = vld [vmem:[%s9525_s11 + $0x3a8] sm:$0xff]  ;;  %v3339_v16 = vld [vmem:[%s9525_s11 + $0x398] sm:$0xff]  ;;  %v3340_v19 = vld [vmem:[%s9525_s11 + $0x3a0] sm:$0xff] }
 0xd7c   :  { %v6016_v59 = vpack.c.bf16 %v3341_v29, %v3337_v14  ;;  %v6080_v37 = vpack.c.bf16 %v3343_v47, %v3339_v16  ;;  %v3338_v61 = vld [vmem:[%s9525_s11 + $0x390] sm:$0xff]  ;;  %v3532_v47 = vld [vmem:[%s9526_s12 + $0x20] sm:$0xff] }
 0xd7d   :  { %5987 = vmatpush1.bf16.msra.mxu0 %v5986_v22  ;;  %6051 = vmatpush1.bf16.msra.mxu1 %v6050_v62  ;;  %v3310_v22 = vld [vmem:[%s9525_s11 + $0x2b0] sm:$0xff]  ;;  %v3317_v62 = vld [vmem:[%s9525_s11 + $0x2e8] sm:$0xff] }
 0xd7e   :  { %5989 = vmatprep.subr.bf16.mxu0 %v5988_v3  ;;  %6053 = vmatprep.subr.bf16.mxu1 %v6052_v21  ;;  %v6066_v28 = vpack.c.bf16 %v3310_v22, %v3306_v5  ;;  %v6004_v38 = vpack.c.bf16 %v3317_v62, %v3313_v51  ;;  %v3312_v3 = vld [vmem:[%s9525_s11 + $0x2c0] sm:$0xff]  ;;  %v3314_v21 = vld [vmem:[%s9525_s11 + $0x2d0] sm:$0xff]  ;;  %v3345_v5 = vld [vmem:[%s9525_s11 + $0x3c8] sm:$0xff] }
 0xd7f   :  { %v6006_v56 = vpack.c.bf16 %v3316_v27, %v3312_v3  ;;  %v3349_v22 = vld [vmem:[%s9525_s11 + $0x3e8] sm:$0xff]  ;;  %v3346_v27 = vld [vmem:[%s9525_s11 + $0x3d0] sm:$0xff] }
 0xd80   :  { %v6020_v62 = vpack.c.bf16 %v3349_v22, %v3345_v5 }
 0xd81   :  { %5991 = vmatpush1.bf16.msra.mxu0 %v5990_v40  ;;  %6055 = vmatpush1.bf16.msra.mxu1 %v6054_v41  ;;  %v3318_v40 = vld [vmem:[%s9525_s11 + $0x2f0] sm:$0xff]  ;;  %v3325_v41 = vld [vmem:[%s9525_s11 + $0x328] sm:$0xff] }
 0xd82   :  { %5993 = vmatprep.subr.bf16.mxu0 %v5992_v15  ;;  %6057 = vmatprep.subr.bf16.mxu1 %v6056_v26  ;;  %v6070_v48 = vpack.c.bf16 %v3318_v40, %v3314_v21  ;;  %v6008_v7 = vpack.c.bf16 %v3325_v41, %v3321_v39  ;;  %v3320_v15 = vld [vmem:[%s9525_s11 + $0x300] sm:$0xff]  ;;  %v3322_v26 = vld [vmem:[%s9525_s11 + $0x310] sm:$0xff]  ;;  %v3529_v40 = vld [vmem:[%s9526_s12 + $0x8] sm:$0xff] }
 0xd83   :  { %v6010_v20 = vpack.c.bf16 %v3324_v23, %v3320_v15  ;;  %v3531_v39 = vld [vmem:[%s9526_s12 + $0x18] sm:$0xff] }
 0xd85   :  { %5995 = vmatpush1.bf16.msra.mxu0 %v5994_v13  ;;  %6059 = vmatpush1.bf16.msra.mxu1 %v6058_v46  ;;  %v3326_v13 = vld [vmem:[%s9525_s11 + $0x330] sm:$0xff]  ;;  %v3333_v46 = vld [vmem:[%s9525_s11 + $0x368] sm:$0xff] }
 0xd86   :  { %5997 = vmatprep.subr.bf16.mxu0 %v5996_v42  ;;  %6061 = vmatprep.subr.bf16.mxu1 %v6060_v44  ;;  %v6074_v60 = vpack.c.bf16 %v3326_v13, %v3322_v26  ;;  %v6012_v53 = vpack.c.bf16 %v3333_v46, %v3329_v57  ;;  %v6076_v42 = vpack.c.bf16 %v3335_v49, %v3331_v50 }
 0xd87   :  { %v6014_v44 = vpack.c.bf16 %v3332_v33, %v3328_v34 }
 0xd89   :  { %5999 = vmatpush1.bf16.msra.mxu0 %v5998_v12  ;;  %6063 = vmatpush1.bf16.msra.mxu1 %v6062_v32  ;;  %v3334_v12 = vld [vmem:[%s9525_s11 + $0x370] sm:$0xff] }
 0xd8a   :  { %6001 = vmatprep.subr.bf16.mxu0 %v6000_v18  ;;  %6065 = vmatprep.subr.bf16.mxu1 %v6064_v9  ;;  %v6078_v32 = vpack.c.bf16 %v3334_v12, %v3330_v52  ;;  %v3336_v18 = vld [vmem:[%s9525_s11 + $0x380] sm:$0xff]  ;;  %v3342_v9 = vld [vmem:[%s9525_s11 + $0x3b0] sm:$0xff]  ;;  %v3209_v52 = vrot.slane %v8456_v1, 2 }
 0xd8b   :  { %v6082_v51 = vpack.c.bf16 %v3342_v9, %v3338_v61  ;;  %v3530_v1 = vld [vmem:[%s9526_s12 + $0x10] sm:$0xff]  ;;  %v3541_v61 = vld [vmem:[%s9526_s12 + $0x68] sm:$0xff]  ;;  %v3539_v9 = vld [vmem:[%s9526_s12 + $0x58] sm:$0xff] }
 0xd8d   :  { %6003 = vmatpush1.bf16.msra.mxu0 %v6002_v2  ;;  %6067 = vmatpush1.bf16.msra.mxu1 %v6066_v28  ;;  %v6018_v2 = vpack.c.bf16 %v3340_v19, %v3336_v18  ;;  %v3347_v28 = vld [vmem:[%s9525_s11 + $0x3d8] sm:$0xff]  ;;  %v3534_v18 = vld [vmem:[%s9526_s12 + $0x30] sm:$0xff] }
 0xd8e   :  { %6005 = vmatprep.subr.bf16.mxu0 %v6004_v38  ;;  %6069 = vmatprep.subr.bf16.mxu1 %v6068_v0  ;;  %v3344_v38 = vld [vmem:[%s9525_s11 + $0x3c0] sm:$0xff]  ;;  %v6084_v3 = vpack.c.bf16 %v3351_v8, %v3347_v28  ;;  %v3350_v0 = vld [vmem:[%s9525_s11 + $0x3f0] sm:$0xff]  ;;  %v8887_v28 = vpack.c.bf16 %v3534_v18, %v3530_v1 }
 0xd8f   :  { %v6086_v21 = vpack.c.bf16 %v3350_v0, %v3346_v27  ;;  %v3538_v8 = vld [vmem:[%s9526_s12 + $0x50] sm:$0xff]  ;;  %v3547_v27 = vld [vmem:[%s9526_s12 + $0x98] sm:$0xff]  ;;  %v3568_v1 = vld [vmem:[%s9526_s12 + $0x140] sm:$0xff] }
 0xd90   :  { %v3551_v0 = vld [vmem:[%s9526_s12 + $0xb8] sm:$0xff]  ;;  %v3572_v18 = vld [vmem:[%s9526_s12 + $0x160] sm:$0xff] }
 0xd91   :  { %6007 = vmatpush1.bf16.msra.mxu0 %v6006_v56  ;;  %6071 = vmatpush1.bf16.msra.mxu1 %v6070_v48  ;;  %v6022_v56 = vpack.c.bf16 %v3348_v54, %v3344_v38  ;;  %v3533_v48 = vld [vmem:[%s9526_s12 + $0x28] sm:$0xff] }
 0xd92   :  { %6009 = vmatprep.subr.bf16.mxu0 %v6008_v7  ;;  %6073 = vmatprep.subr.bf16.mxu1 %v6072_v10  ;;  %v8843_v41 = vpack.c.bf16 %v3533_v48, %v3529_v40  ;;  %v8848_v7 = vpack.c.bf16 %v3535_v63, %v3531_v39  ;;  %v3545_v38 = vld [vmem:[%s9526_s12 + $0x88] sm:$0xff]  ;;  %v3544_v48 = vld [vmem:[%s9526_s12 + $0x80] sm:$0xff]  ;;  %v8938_v63 = vpack.c.bf16 %v3551_v0, %v3547_v27  ;;  %v3578_v0 = vld [vmem:[%s9526_s12 + $0x190] sm:$0xff] }
 0xd95   :  { %6011 = vmatpush1.bf16.msra.mxu0 %v6010_v20  ;;  %6075 = vmatpush1.bf16.msra.mxu1 %v6074_v60 }
 0xd96   :  { %6013 = vmatprep.subr.bf16.mxu0 %v6012_v53  ;;  %6077 = vmatprep.subr.bf16.mxu1 %v6076_v42 }
 0xd99   :  { %6015 = vmatpush1.bf16.msra.mxu0 %v6014_v44  ;;  %6079 = vmatpush1.bf16.msra.mxu1 %v6078_v32 }
 0xd9a   :  { %6017 = vmatprep.subr.bf16.mxu0 %v6016_v59  ;;  %6081 = vmatprep.subr.bf16.mxu1 %v6080_v37  ;;  %v3528_v59 = vld [vmem:[%s9526_s12] sm:$0xff]  ;;  %v3537_v37 = vld [vmem:[%s9526_s12 + $0x48] sm:$0xff] }
 0xd9b   :  { %v8885_v22 = vpack.c.bf16 %v3532_v47, %v3528_v59  ;;  %v8906_v54 = vpack.c.bf16 %v3541_v61, %v3537_v37  ;;  %v3575_v59 = vld [vmem:[%s9526_s12 + $0x178] sm:$0xff]  ;;  %v3570_v61 = vld [vmem:[%s9526_s12 + $0x150] sm:$0xff] }
 0xd9d   :  { %6019 = vmatpush1.bf16.msra.mxu0 %v6018_v2  ;;  %6083 = vmatpush1.bf16.msra.mxu1 %v6082_v51  ;;  %v3543_v2 = vld [vmem:[%s9526_s12 + $0x78] sm:$0xff]  ;;  %v3540_v51 = vld [vmem:[%s9526_s12 + $0x60] sm:$0xff] }
 0xd9e   :  { %6021 = vmatprep.subr.bf16.mxu0 %v6020_v62  ;;  %6085 = vmatprep.subr.bf16.mxu1 %v6084_v3  ;;  %v8908_v3 = vpack.c.bf16 %v3543_v2, %v3539_v9  ;;  %v3574_v9 = vld [vmem:[%s9526_s12 + $0x170] sm:$0xff]  ;;  %v3577_v2 = vld [vmem:[%s9526_s12 + $0x188] sm:$0xff] }
 0xda1   :  { %6023 = vmatpush1.bf16.msra.mxu0 %v6022_v56  ;;  %6087 = vmatpush1.bf16.msra.mxu1 %v6086_v21  ;;  %v3223_v56 = vsel %vm474_vm10, %v8313_v45, %v8268_v31  ;;  %v3546_v31 = vld [vmem:[%s9526_s12 + $0x90] sm:$0xff] }
 0xda2   :  { %6089 = vmatprep.subr.bf16.mxu0 %v8843_v41  ;;  %6121 = vmatprep.subr.bf16.mxu1 %v8848_v7  ;;  %v3550_v45 = vld [vmem:[%s9526_s12 + $0xb0] sm:$0xff] }
 0xe37   :  { %v3109_v36 = vpop.f32.mrb[38].mxu0  ;;  %v3180_v15 = vpop.f32.mrb[32].mxu1 }
 0xe38   :  { %v3185_v23 = vadd.f32 %v3109_v36, %v9574_v4  ;;  %v3111_v10 = vpop.f32.mrb[39].mxu0  ;;  %v3182_v20 = vpop.f32.mrb[33].mxu1  ;;  %v3187_v50 = vadd.f32 %v3180_v15, %v9577_v24  ;;  %v3553_v36 = vld [vmem:[%s9526_s12 + $0xc8] sm:$0xff]  ;;  %v3222_v15 = vsel %vm474_vm10, %v7958_v6, %v8263_v17  ;;  %v8967_v6 = vpack.c.bf16 %v3550_v45, %v3546_v31  ;;  %v3552_v17 = vld [vmem:[%s9526_s12 + $0xc0] sm:$0xff]  ;;  %v3587_v31 = vld [vmem:[%s9526_s12 + $0x1d8] sm:$0xff] }
 0xe39   :  { %v3186_v26 = vadd.f32 %v3111_v10, %v9575_v55  ;;  %v3188_v60 = vadd.f32 %v3182_v20, %v9576_v58  ;;  %v3555_v10 = vld [vmem:[%s9526_s12 + $0xd8] sm:$0xff] }
 0xe3a   :  { %v4943_v13 = vmul.f32 -1.442695, %v3185_v23  ;;  %v3557_v23 = vld [vmem:[%s9526_s12 + $0xe8] sm:$0xff]  ;;  %v3559_v20 = vld [vmem:[%s9526_s12 + $0xf8] sm:$0xff] }
 0xe3b   :  { %v4944_v57 = vmul.f32 -1.442695, %v3186_v26  ;;  %v4945_v46 = vmul.f32 -1.442695, %v3188_v60  ;;  %v8979_v60 = vpack.c.bf16 %v3559_v20, %v3555_v10  ;;  %v3591_v45 = vld [vmem:[%s9526_s12 + $0x1f8] sm:$0xff] }
 0xe3c   :  { %6709 = vpow2.f32 %v4943_v13  ;;  %v3556_v13 = vld [vmem:[%s9526_s12 + $0xe0] sm:$0xff]  ;;  %v9122_v20 = vpack.c.bf16 %v3591_v45, %v3587_v31 }
 0xe3d   :  { %6711 = vpow2.f32 %v4944_v57  ;;  %v8977_v57 = vpack.c.bf16 %v3557_v23, %v3553_v36  ;;  %v3584_v23 = vld [vmem:[%s9526_s12 + $0x1c0] sm:$0xff] }
 0xe3e   :  { %6713 = vpow2.f32 %v4945_v46  ;;  %v3554_v46 = vld [vmem:[%s9526_s12 + $0xd0] sm:$0xff] }
 0xe3f   :  { %6715 = vtanh.f32 %v3187_v50  ;;  %v3558_v50 = vld [vmem:[%s9526_s12 + $0xf0] sm:$0xff] }
 0xe46   :  { %v6710_v49 = vpop.eup %6709 }
 0xe47   :  { %v6712_v53 = vpop.eup %6711  ;;  %v3192_v42 = vadd.f32 1.0, %v6710_v49  ;;  %v3561_v49 = vld [vmem:[%s9526_s12 + $0x108] sm:$0xff] }
 0xe48   :  { %v3198_v34 = vadd.f32 1.0, %v6712_v53  ;;  %v6714_v4 = vpop.eup %6713  ;;  %v3565_v53 = vld [vmem:[%s9526_s12 + $0x128] sm:$0xff] }
 0xe49   :  { %6717 = vrcp.f32 %v3192_v42  ;;  %v6716_v33 = vpop.eup %6715  ;;  %v3205_v14 = vadd.f32 1.0, %v6714_v4  ;;  %v3563_v42 = vld [vmem:[%s9526_s12 + $0x118] sm:$0xff]  ;;  %v9003_v4 = vpack.c.bf16 %v3556_v13, %v3552_v17  ;;  %v3588_v17 = vld [vmem:[%s9526_s12 + $0x1e0] sm:$0xff]  ;;  %v3586_v13 = vld [vmem:[%s9526_s12 + $0x1d0] sm:$0xff] }
 0xe4a   :  { %6719 = vrcp.f32 %v3198_v34  ;;  %v3567_v34 = vld [vmem:[%s9526_s12 + $0x138] sm:$0xff] }
 0xe4b   :  { %6721 = vrcp.f32 %v3205_v14  ;;  %v3562_v14 = vld [vmem:[%s9526_s12 + $0x110] sm:$0xff] }
 0xe53   :  { %v6718_v55 = vpop.eup %6717 }
 0xe54   :  { %v6720_v44 = vpop.eup %6719  ;;  %v3212_v12 = vmul.f32 %v6718_v55, %v6716_v33  ;;  %v9005_v33 = vpack.c.bf16 %v3558_v50, %v3554_v46  ;;  %v3560_v55 = vld [vmem:[%s9526_s12 + $0x100] sm:$0xff]  ;;  %v3590_v46 = vld [vmem:[%s9526_s12 + $0x1f0] sm:$0xff]  ;;  %v9135_v50 = vpack.c.bf16 %v3588_v17, %v3584_v23 }
 0xe55   :  { %v3211_v58 = vmul.f32 %v6720_v44, %v3209_v52  ;;  %v6722_v24 = vpop.eup %6721  ;;  %v3564_v52 = vld [vmem:[%s9526_s12 + $0x120] sm:$0xff]  ;;  %v9015_v44 = vpack.c.bf16 %v3565_v53, %v3561_v49  ;;  %v9137_v49 = vpack.c.bf16 %v3590_v46, %v3586_v13 }
 0xe56   :  { %v3352_v53 = vld [vmem:[%s9527_s13] sm:$0xf] }
 0xe57   :  { %v3213_v29 = vadd.f32 %v3212_v12, %v3211_v58  ;;  %v9017_v12 = vpack.c.bf16 %v3567_v34, %v3563_v42  ;;  %v3566_v58 = vld [vmem:[%s9526_s12 + $0x130] sm:$0xff]  ;;  %v9578_v42 = vld [vmem:[#allocation9_spill] sm:$0xff] }
 0xe58   :  { %v9041_v47 = vpack.c.bf16 %v3566_v58, %v3562_v14  ;;  %v3357_v34 = vrot.slane %v3352_v53, %v9578_v42  ;;  %v9580_v14 = vld [vmem:[#allocation10_spill] sm:$0xff] }
 0xe59   :  { %6723 = vtanh.f32 %v3213_v29  ;;  %v3569_v29 = vld [vmem:[%s9526_s12 + $0x148] sm:$0xff]  ;;  %v3361_v58 = vrot.slane %v3352_v53, %v9580_v14 }
 0xe63   :  { %v6724_v32 = vpop.eup %6723 }
 0xe64   :  { %v3215_v16 = vmul.f32 %v6724_v32, %v6722_v24  ;;  %v3573_v24 = vld [vmem:[%s9526_s12 + $0x168] sm:$0xff]  ;;  %v3571_v32 = vld [vmem:[%s9526_s12 + $0x158] sm:$0xff] }
 0xe65   :  { %v9051_v37 = vpack.c.bf16 %v3573_v24, %v3569_v29  ;;  %v9581_v29 = vld [vmem:[#allocation6_spill] sm:$0xff] }
 0xe66   :  { %v3217_v19 = vsel %vm474_vm10, %v3215_v16, %v8483_v11  ;;  %v3536_v11 = vld [vmem:[%s9526_s12 + $0x40] sm:$0xff]  ;;  %v9039_v16 = vpack.c.bf16 %v3564_v52, %v3560_v55  ;;  %v3369_v24 = vrot.slane %v3352_v53, %v9581_v29 }
 0xe67   :  { %v3219_v5 = vsel %vm144_vm2, %v3217_v19, %v8404_v35  ;;  %v3542_v35 = vld [vmem:[%s9526_s12 + $0x70] sm:$0xff]  ;;  %v8926_v21 = vpack.c.bf16 %v3540_v51, %v3536_v11  ;;  %v9053_v19 = vpack.c.bf16 %v3575_v59, %v3571_v32  ;;  %v3579_v11 = vld [vmem:[%s9526_s12 + $0x198] sm:$0xff]  ;;  %v9579_v55 = vld [vmem:[#allocation5_spill] sm:$0xff] }
 0xe68   :  { %v3221_v62 = vsel %vm74_vm1, %v3219_v5, %v8359_v30  ;;  %v3549_v30 = vld [vmem:[%s9526_s12 + $0xa8] sm:$0xff]  ;;  %v8928_v40 = vpack.c.bf16 %v3542_v35, %v3538_v8  ;;  %v3583_v51 = vld [vmem:[%s9526_s12 + $0x1b8] sm:$0xff]  ;;  %v9077_v8 = vpack.c.bf16 %v3574_v9, %v3570_v61  ;;  %v3576_v35 = vld [vmem:[%s9526_s12 + $0x180] sm:$0xff]  ;;  %v3365_v52 = vrot.slane %v3352_v53, %v9579_v55 }
 0xe69   :  { %3438 = vmatprep.mubr.f32.mxu0 %v3221_v62  ;;  %3515 = vmatprep.mubr.f32.mxu1 %v3221_v62  ;;  %v8936_v39 = vpack.c.bf16 %v3549_v30, %v3545_v38  ;;  %v3581_v5 = vld [vmem:[%s9526_s12 + $0x1a8] sm:$0xff]  ;;  %v9075_v62 = vpack.c.bf16 %v3572_v18, %v3568_v1  ;;  %v3580_v38 = vld [vmem:[%s9526_s12 + $0x1a0] sm:$0xff]  ;;  %v9089_v27 = vpack.c.bf16 %v3583_v51, %v3579_v11 }
 0xe6a   :  { %3439 = vmatmul.mubr.f32.vlgmr.msra.gmra.mrb[40].mxu0 %v7864_v43  ;;  %3516 = vmatmul.mubr.f32.vlgmr.msra.gmra.mrb[34].mxu1 %v7864_v43  ;;  %v3548_v43 = vld [vmem:[%s9526_s12 + $0xa0] sm:$0xff]  ;;  %v9087_v30 = vpack.c.bf16 %v3581_v5, %v3577_v2  ;;  %v9111_v36 = vpack.c.bf16 %v3580_v38, %v3576_v35 }
 0xe6b   :  { %6091 = vmatpush1.bf16.msra.mxu0 %v8885_v22  ;;  %6123 = vmatpush1.bf16.msra.mxu1 %v8887_v28  ;;  %v8965_v26 = vpack.c.bf16 %v3548_v43, %v3544_v48  ;;  %v3585_v48 = vld [vmem:[%s9526_s12 + $0x1c8] sm:$0xff] }
 0xe6c   :  { %3444 = vmatprep.mubr.f32.mxu0 %v3223_v56  ;;  %3521 = vmatprep.mubr.f32.mxu1 %v3223_v56  ;;  %v3582_v56 = vld [vmem:[%s9526_s12 + $0x1b0] sm:$0xff]  ;;  %v3589_v43 = vld [vmem:[%s9526_s12 + $0x1e8] sm:$0xff] }
 0xe6d   :  { %6093 = vmatprep.subr.bf16.mxu0 %v8906_v54  ;;  %6125 = vmatprep.subr.bf16.mxu1 %v8908_v3  ;;  %v9120_v10 = vpack.c.bf16 %v3589_v43, %v3585_v48 }
 0xe6e   :  { %3445 = vmatmul.mubr.f32.gmra.mrb[42].mxu0 %v3222_v15  ;;  %3522 = vmatmul.mubr.f32.gmra.mrb[36].mxu1 %v3222_v15  ;;  %v9113_v15 = vpack.c.bf16 %v3582_v56, %v3578_v0 }
 0xe6f   :  { %6095 = vmatpush1.bf16.msra.mxu0 %v8926_v21  ;;  %6127 = vmatpush1.bf16.msra.mxu1 %v8928_v40 }
 0xe70   :  { %6097 = vmatprep.subr.bf16.mxu0 %v8936_v39  ;;  %6129 = vmatprep.subr.bf16.mxu1 %v8938_v63 }
 0xe71   :  { %3656 = vmatprep.mubr.f32.mxu0 %v9568_v25  ;;  %3727 = vmatprep.mubr.f32.mxu1 %v9568_v25 }
 0xe73   :  { %6099 = vmatpush1.bf16.msra.mxu0 %v8965_v26  ;;  %6131 = vmatpush1.bf16.msra.mxu1 %v8967_v6 }
 0xe74   :  { %6101 = vmatprep.subr.bf16.mxu0 %v8977_v57  ;;  %6133 = vmatprep.subr.bf16.mxu1 %v8979_v60 }
 0xe77   :  { %6103 = vmatpush1.bf16.msra.mxu0 %v9003_v4  ;;  %6135 = vmatpush1.bf16.msra.mxu1 %v9005_v33 }
 0xe78   :  { %6105 = vmatprep.subr.bf16.mxu0 %v9015_v44  ;;  %6137 = vmatprep.subr.bf16.mxu1 %v9017_v12 }
 0xe7b   :  { %6107 = vmatpush1.bf16.msra.mxu0 %v9039_v16  ;;  %6139 = vmatpush1.bf16.msra.mxu1 %v9041_v47 }
 0xe7c   :  { %6109 = vmatprep.subr.bf16.mxu0 %v9051_v37  ;;  %6141 = vmatprep.subr.bf16.mxu1 %v9053_v19 }
 0xe7f   :  { %6111 = vmatpush1.bf16.msra.mxu0 %v9075_v62  ;;  %6143 = vmatpush1.bf16.msra.mxu1 %v9077_v8 }
 0xe80   :  { %6113 = vmatprep.subr.bf16.mxu0 %v9087_v30  ;;  %6145 = vmatprep.subr.bf16.mxu1 %v9089_v27 }
 0xe83   :  { %6115 = vmatpush1.bf16.msra.mxu0 %v9111_v36  ;;  %6147 = vmatpush1.bf16.msra.mxu1 %v9113_v15 }
 0xe84   :  { %6117 = vmatprep.subr.bf16.mxu0 %v9120_v10  ;;  %6149 = vmatprep.subr.bf16.mxu1 %v9122_v20 }
 0xe87   :  { %6119 = vmatpush1.bf16.msra.mxu0 %v9135_v50  ;;  %6151 = vmatpush1.bf16.msra.mxu1 %v9137_v49 }
 0xe88   :  { %6153 = vmatprep.subr.bf16.mxu0 %v8843_v41  ;;  %6185 = vmatprep.subr.bf16.mxu1 %v8848_v7 }
 0xe8a   :  { %3657 = vmatmul.mubr.f32.vlgmr.msra.gmra.mrb[44].mxu0 %v9568_v25  ;;  %3728 = vmatmul.mubr.f32.vlgmr.msra.gmra.mrb[38].mxu1 %v9568_v25 }
 0xe8b   :  { %6155 = vmatpush1.bf16.msra.mxu0 %v8885_v22  ;;  %6187 = vmatpush1.bf16.msra.mxu1 %v8887_v28 }
 0xe8c   :  { %6157 = vmatprep.subr.bf16.mxu0 %v8906_v54  ;;  %6189 = vmatprep.subr.bf16.mxu1 %v8908_v3 }
 0xe8d   :  { %3841 = vmatprep.mubr.f32.mxu0 %v9568_v25  ;;  %3912 = vmatprep.mubr.f32.mxu1 %v9568_v25 }
 0xe8f   :  { %6159 = vmatpush1.bf16.msra.mxu0 %v8926_v21  ;;  %6191 = vmatpush1.bf16.msra.mxu1 %v8928_v40 }
 0xe90   :  { %6161 = vmatprep.subr.bf16.mxu0 %v8936_v39  ;;  %6193 = vmatprep.subr.bf16.mxu1 %v8938_v63 }
 0xe93   :  { %6163 = vmatpush1.bf16.msra.mxu0 %v8965_v26  ;;  %6195 = vmatpush1.bf16.msra.mxu1 %v8967_v6 }
 0xe94   :  { %6165 = vmatprep.subr.bf16.mxu0 %v8977_v57  ;;  %6197 = vmatprep.subr.bf16.mxu1 %v8979_v60 }
 0xe97   :  { %6167 = vmatpush1.bf16.msra.mxu0 %v9003_v4  ;;  %6199 = vmatpush1.bf16.msra.mxu1 %v9005_v33 }
 0xe98   :  { %6169 = vmatprep.subr.bf16.mxu0 %v9015_v44  ;;  %6201 = vmatprep.subr.bf16.mxu1 %v9017_v12 }
 0xe9b   :  { %6171 = vmatpush1.bf16.msra.mxu0 %v9039_v16  ;;  %6203 = vmatpush1.bf16.msra.mxu1 %v9041_v47 }
 0xe9c   :  { %6173 = vmatprep.subr.bf16.mxu0 %v9051_v37  ;;  %6205 = vmatprep.subr.bf16.mxu1 %v9053_v19 }
 0xe9f   :  { %6175 = vmatpush1.bf16.msra.mxu0 %v9075_v62  ;;  %6207 = vmatpush1.bf16.msra.mxu1 %v9077_v8 }
 0xea0   :  { %6177 = vmatprep.subr.bf16.mxu0 %v9087_v30  ;;  %6209 = vmatprep.subr.bf16.mxu1 %v9089_v27 }
 0xea3   :  { %6179 = vmatpush1.bf16.msra.mxu0 %v9111_v36  ;;  %6211 = vmatpush1.bf16.msra.mxu1 %v9113_v15 }
 0xea4   :  { %6181 = vmatprep.subr.bf16.mxu0 %v9120_v10  ;;  %6213 = vmatprep.subr.bf16.mxu1 %v9122_v20 }
 0xea7   :  { %6183 = vmatpush1.bf16.msra.mxu0 %v9135_v50  ;;  %6215 = vmatpush1.bf16.msra.mxu1 %v9137_v49 }
 0xea8   :  { %6217 = vmatprep.subr.bf16.mxu0 %v8843_v41  ;;  %6249 = vmatprep.subr.bf16.mxu1 %v8848_v7 }
 0xf3d   :  { %v3440_v32 = vpop.f32.mrb[40].mxu0  ;;  %v3517_v59 = vpop.f32.mrb[34].mxu1 }
 0xf3e   :  { %v9188_v1 = vadd.f32 %v3440_v32, %v3357_v34  ;;  %v9190_v18 = vadd.f32 %v3517_v59, %v3365_v52  ;;  %v3442_v61 = vpop.f32.mrb[41].mxu0  ;;  %v3519_v9 = vpop.f32.mrb[35].mxu1 }
 0xf3f   :  { %v9192_v2 = vadd.f32 %v3442_v61, %v3361_v58  ;;  %v9194_v5 = vadd.f32 %v3519_v9, %v3369_v24 }
 0xf41   :  { %v3446_v11 = vpop.f32.mrb[42].mxu0  ;;  %v3523_v51 = vpop.f32.mrb[36].mxu1 }
 0xf42   :  { %v3448_v35 = vpop.f32.mrb[43].mxu0  ;;  %v3525_v38 = vpop.f32.mrb[37].mxu1  ;;  %v9196_v48 = vadd.f32 %v3446_v11, %v3357_v34  ;;  %v9205_v32 = vadd.f32 %v3523_v51, %v3365_v52 }
 0xf43   :  { %v9198_v23 = vadd.f32 %v3448_v35, %v3361_v58  ;;  %v9202_v14 = vadd.f32 %v3525_v38, %v3369_v24 }
 0xf5d   :  { %v3658_v0 = vpop.f32.mrb[44].mxu0  ;;  %v3729_v56 = vpop.f32.mrb[38].mxu1 }
 0xf5e   :  { %v3738_v43 = vrot.slane %v3658_v0, 6  ;;  %v3660_v31 = vpop.f32.mrb[45].mxu0  ;;  %v3731_v45 = vpop.f32.mrb[39].mxu1  ;;  %v3740_v29 = vrot.slane %v3729_v56, 6 }
 0xf5f   :  { %v3739_v17 = vrot.slane %v3660_v31, 6  ;;  %v3741_v55 = vrot.slane %v3731_v45, 6 }
 0xf60   :  { %v3746_v13 = vadd.f32 %v3738_v43, %v9196_v48  ;;  %v3748_v58 = vadd.f32 %v3740_v29, %v9205_v32 }
 0xf61   :  { %v3747_v46 = vadd.f32 %v3739_v17, %v9198_v23  ;;  %v3749_v34 = vadd.f32 %v3741_v55, %v9202_v14 }
 0xf62   :  { %v4946_v53 = vmul.f32 -1.442695, %v3746_v13 }
 0xf63   :  { %v4947_v42 = vmul.f32 -1.442695, %v3747_v46  ;;  %v4948_v59 = vmul.f32 -1.442695, %v3749_v34 }
 0xf64   :  { %6725 = vpow2.f32 %v4946_v53 }
 0xf65   :  { %6727 = vpow2.f32 %v4947_v42 }
 0xf66   :  { %6729 = vpow2.f32 %v4948_v59 }
 0xf67   :  { %6731 = vtanh.f32 %v3748_v58 }
 0xf6e   :  { %v6726_v61 = vpop.eup %6725 }
 0xf6f   :  { %v6728_v9 = vpop.eup %6727  ;;  %v3753_v11 = vadd.f32 1.0, %v6726_v61 }
 0xf70   :  { %v3759_v35 = vadd.f32 1.0, %v6728_v9  ;;  %v6730_v0 = vpop.eup %6729 }
 0xf71   :  { %6733 = vrcp.f32 %v3753_v11  ;;  %v6732_v24 = vpop.eup %6731  ;;  %v3766_v45 = vadd.f32 1.0, %v6730_v0 }
 0xf72   :  { %6735 = vrcp.f32 %v3759_v35 }
 0xf73   :  { %6737 = vrcp.f32 %v3766_v45 }
 0xf7b   :  { %v6734_v38 = vpop.eup %6733 }
 0xf7c   :  { %v6736_v43 = vpop.eup %6735  ;;  %v3770_v31 = vmul.f32 %v6734_v38, %v6732_v24 }
 0xf7d   :  { %v3769_v56 = vmul.f32 0.0, %v6736_v43  ;;  %v6738_v51 = vpop.eup %6737 }
 0xf7f   :  { %v9208_v52 = vadd.f32 %v3770_v31, %v3769_v56 }
 0xf81   :  { %6739 = vtanh.f32 %v9208_v52  ;;  %v3943_v45 = vrot.slane %v9208_v52, 2 }
 0xf8b   :  { %v6740_v17 = vpop.eup %6739 }
 0xf8c   :  { %v3773_v13 = vmul.f32 %v6740_v17, %v6738_v51 }
 0xf8e   :  { %v3775_v46 = vrot.slane %v3773_v13, 2 }
 0xf90   :  { %3842 = vmatmul.mubr.f32.vlgmr.msra.gmra.mrb[46].mxu0 %v3775_v46  ;;  %3913 = vmatmul.mubr.f32.vlgmr.msra.gmra.mrb[40].mxu1 %v3775_v46 }
 0xf91   :  { %6219 = vmatpush1.bf16.msra.mxu0 %v8885_v22  ;;  %6251 = vmatpush1.bf16.msra.mxu1 %v8887_v28 }
 0xf92   :  { %6221 = vmatprep.subr.bf16.mxu0 %v8906_v54  ;;  %6253 = vmatprep.subr.bf16.mxu1 %v8908_v3 }
 0xf93   :  { %4014 = vmatprep.mubr.f32.mxu0 %v9568_v25  ;;  %4085 = vmatprep.mubr.f32.mxu1 %v9568_v25 }
 0xf95   :  { %6223 = vmatpush1.bf16.msra.mxu0 %v8926_v21  ;;  %6255 = vmatpush1.bf16.msra.mxu1 %v8928_v40 }
 0xf96   :  { %6225 = vmatprep.subr.bf16.mxu0 %v8936_v39  ;;  %6257 = vmatprep.subr.bf16.mxu1 %v8938_v63 }
 0xf99   :  { %6227 = vmatpush1.bf16.msra.mxu0 %v8965_v26  ;;  %6259 = vmatpush1.bf16.msra.mxu1 %v8967_v6 }
 0xf9a   :  { %6229 = vmatprep.subr.bf16.mxu0 %v8977_v57  ;;  %6261 = vmatprep.subr.bf16.mxu1 %v8979_v60 }
 0xf9d   :  { %6231 = vmatpush1.bf16.msra.mxu0 %v9003_v4  ;;  %6263 = vmatpush1.bf16.msra.mxu1 %v9005_v33 }
 0xf9e   :  { %6233 = vmatprep.subr.bf16.mxu0 %v9015_v44  ;;  %6265 = vmatprep.subr.bf16.mxu1 %v9017_v12 }
 0xfa1   :  { %6235 = vmatpush1.bf16.msra.mxu0 %v9039_v16  ;;  %6267 = vmatpush1.bf16.msra.mxu1 %v9041_v47 }
 0xfa2   :  { %6237 = vmatprep.subr.bf16.mxu0 %v9051_v37  ;;  %6269 = vmatprep.subr.bf16.mxu1 %v9053_v19 }
 0xfa5   :  { %6239 = vmatpush1.bf16.msra.mxu0 %v9075_v62  ;;  %6271 = vmatpush1.bf16.msra.mxu1 %v9077_v8 }
 0xfa6   :  { %6241 = vmatprep.subr.bf16.mxu0 %v9087_v30  ;;  %6273 = vmatprep.subr.bf16.mxu1 %v9089_v27 }
 0xfa9   :  { %6243 = vmatpush1.bf16.msra.mxu0 %v9111_v36  ;;  %6275 = vmatpush1.bf16.msra.mxu1 %v9113_v15 }
 0xfaa   :  { %6245 = vmatprep.subr.bf16.mxu0 %v9120_v10  ;;  %6277 = vmatprep.subr.bf16.mxu1 %v9122_v20 }
 0xfad   :  { %6247 = vmatpush1.bf16.msra.mxu0 %v9135_v50  ;;  %6279 = vmatpush1.bf16.msra.mxu1 %v9137_v49 }
 0xfae   :  { %6281 = vmatprep.subr.bf16.mxu0 %v8843_v41  ;;  %6313 = vmatprep.subr.bf16.mxu1 %v8848_v7 }
0x1063   :  { %v3843_v53 = vpop.f32.mrb[46].mxu0  ;;  %v3914_v42 = vpop.f32.mrb[40].mxu1 }
0x1064   :  { %v3919_v55 = vadd.f32 %v3843_v53, %v9196_v48  ;;  %v3845_v34 = vpop.f32.mrb[47].mxu0  ;;  %v3916_v29 = vpop.f32.mrb[41].mxu1  ;;  %v3921_v35 = vadd.f32 %v3914_v42, %v9205_v32 }
0x1065   :  { %v3920_v59 = vadd.f32 %v3845_v34, %v9198_v23  ;;  %v3922_v9 = vadd.f32 %v3916_v29, %v9202_v14 }
0x1066   :  { %v4949_v58 = vmul.f32 -1.442695, %v3919_v55 }
0x1067   :  { %v4950_v61 = vmul.f32 -1.442695, %v3920_v59  ;;  %v4951_v11 = vmul.f32 -1.442695, %v3922_v9 }
0x1068   :  { %6741 = vpow2.f32 %v4949_v58 }
0x1069   :  { %6743 = vpow2.f32 %v4950_v61 }
0x106a   :  { %6745 = vpow2.f32 %v4951_v11 }
0x106b   :  { %6747 = vtanh.f32 %v3921_v35 }
0x1072   :  { %v6742_v0 = vpop.eup %6741 }
0x1073   :  { %v6744_v24 = vpop.eup %6743  ;;  %v3926_v38 = vadd.f32 1.0, %v6742_v0 }
0x1074   :  { %v3932_v43 = vadd.f32 1.0, %v6744_v24  ;;  %v6746_v48 = vpop.eup %6745 }
0x1075   :  { %6749 = vrcp.f32 %v3926_v38  ;;  %v6748_v31 = vpop.eup %6747  ;;  %v3939_v17 = vadd.f32 1.0, %v6746_v48 }
0x1076   :  { %6751 = vrcp.f32 %v3932_v43 }
0x1077   :  { %6753 = vrcp.f32 %v3939_v17 }
0x107f   :  { %v6750_v23 = vpop.eup %6749 }
0x1080   :  { %v6752_v56 = vpop.eup %6751  ;;  %v3946_v51 = vmul.f32 %v6750_v23, %v6748_v31 }
0x1081   :  { %v3945_v14 = vmul.f32 %v6752_v56, %v3943_v45  ;;  %v6754_v32 = vpop.eup %6753 }
0x1083   :  { %v9250_v13 = vadd.f32 %v3946_v51, %v3945_v14 }
0x1085   :  { %6755 = vtanh.f32 %v9250_v13  ;;  %v4128_v14 = vrot.slane %v9250_v13, 2 }
0x108f   :  { %v6756_v46 = vpop.eup %6755 }
0x1090   :  { %v3949_v53 = vmul.f32 %v6756_v46, %v6754_v32 }
0x1092   :  { %4015 = vmatmul.mubr.f32.vlgmr.msra.gmra.mrb[48].mxu0 %v3949_v53  ;;  %4086 = vmatmul.mubr.f32.vlgmr.msra.gmra.mrb[42].mxu1 %v3949_v53 }
0x1093   :  { %6283 = vmatpush1.bf16.msra.mxu0 %v8885_v22  ;;  %6315 = vmatpush1.bf16.msra.mxu1 %v8887_v28 }
0x1094   :  { %6285 = vmatprep.subr.bf16.mxu0 %v8906_v54  ;;  %6317 = vmatprep.subr.bf16.mxu1 %v8908_v3 }
0x1095   :  { %4202 = vmatprep.mubr.f32.mxu0 %v9568_v25  ;;  %4273 = vmatprep.mubr.f32.mxu1 %v9568_v25 }
0x1097   :  { %6287 = vmatpush1.bf16.msra.mxu0 %v8926_v21  ;;  %6319 = vmatpush1.bf16.msra.mxu1 %v8928_v40 }
0x1098   :  { %6289 = vmatprep.subr.bf16.mxu0 %v8936_v39  ;;  %6321 = vmatprep.subr.bf16.mxu1 %v8938_v63 }
0x109b   :  { %6291 = vmatpush1.bf16.msra.mxu0 %v8965_v26  ;;  %6323 = vmatpush1.bf16.msra.mxu1 %v8967_v6 }
0x109c   :  { %6293 = vmatprep.subr.bf16.mxu0 %v8977_v57  ;;  %6325 = vmatprep.subr.bf16.mxu1 %v8979_v60 }
0x109f   :  { %6295 = vmatpush1.bf16.msra.mxu0 %v9003_v4  ;;  %6327 = vmatpush1.bf16.msra.mxu1 %v9005_v33 }
0x10a0   :  { %6297 = vmatprep.subr.bf16.mxu0 %v9015_v44  ;;  %6329 = vmatprep.subr.bf16.mxu1 %v9017_v12 }
0x10a3   :  { %6299 = vmatpush1.bf16.msra.mxu0 %v9039_v16  ;;  %6331 = vmatpush1.bf16.msra.mxu1 %v9041_v47 }
0x10a4   :  { %6301 = vmatprep.subr.bf16.mxu0 %v9051_v37  ;;  %6333 = vmatprep.subr.bf16.mxu1 %v9053_v19 }
0x10a7   :  { %6303 = vmatpush1.bf16.msra.mxu0 %v9075_v62  ;;  %6335 = vmatpush1.bf16.msra.mxu1 %v9077_v8 }
0x10a8   :  { %6305 = vmatprep.subr.bf16.mxu0 %v9087_v30  ;;  %6337 = vmatprep.subr.bf16.mxu1 %v9089_v27 }
0x10ab   :  { %6307 = vmatpush1.bf16.msra.mxu0 %v9111_v36  ;;  %6339 = vmatpush1.bf16.msra.mxu1 %v9113_v15 }
0x10ac   :  { %6309 = vmatprep.subr.bf16.mxu0 %v9120_v10  ;;  %6341 = vmatprep.subr.bf16.mxu1 %v9122_v20 }
0x10af   :  { %6311 = vmatpush1.bf16.msra.mxu0 %v9135_v50  ;;  %6343 = vmatpush1.bf16.msra.mxu1 %v9137_v49 }
0x10b0   :  { %6345 = vmatprep.subr.bf16.mxu0 %v8843_v41  ;;  %6377 = vmatprep.subr.bf16.mxu1 %v8848_v7 }
0x1165   :  { %v4016_v52 = vpop.f32.mrb[48].mxu0  ;;  %v4087_v42 = vpop.f32.mrb[42].mxu1 }
0x1166   :  { %v4096_v55 = vrot.slane %v4016_v52, 2  ;;  %v4018_v34 = vpop.f32.mrb[49].mxu0  ;;  %v4089_v29 = vpop.f32.mrb[43].mxu1  ;;  %v4098_v24 = vrot.slane %v4087_v42, 2 }
0x1167   :  { %v4097_v59 = vrot.slane %v4018_v34, 2  ;;  %v4099_v35 = vrot.slane %v4089_v29, 2 }
0x1168   :  { %v4104_v58 = vadd.f32 %v4096_v55, %v9188_v1  ;;  %v4106_v43 = vadd.f32 %v4098_v24, %v9190_v18 }
0x1169   :  { %v4105_v61 = vadd.f32 %v4097_v59, %v9192_v2  ;;  %v4107_v0 = vadd.f32 %v4099_v35, %v9194_v5 }
0x116a   :  { %v4952_v9 = vmul.f32 -1.442695, %v4104_v58 }
0x116b   :  { %v4953_v11 = vmul.f32 -1.442695, %v4105_v61  ;;  %v4954_v38 = vmul.f32 -1.442695, %v4107_v0 }
0x116c   :  { %6757 = vpow2.f32 %v4952_v9 }
0x116d   :  { %6759 = vpow2.f32 %v4953_v11 }
0x116e   :  { %6761 = vpow2.f32 %v4954_v38 }
0x116f   :  { %6763 = vtanh.f32 %v4106_v43 }
0x1176   :  { %v6758_v48 = vpop.eup %6757 }
0x1177   :  { %v6760_v31 = vpop.eup %6759  ;;  %v4111_v23 = vadd.f32 1.0, %v6758_v48 }
0x1178   :  { %v4117_v45 = vadd.f32 1.0, %v6760_v31  ;;  %v6762_v56 = vpop.eup %6761 }
0x1179   :  { %6765 = vrcp.f32 %v4111_v23  ;;  %v6764_v51 = vpop.eup %6763  ;;  %v4124_v53 = vadd.f32 1.0, %v6762_v56 }
0x117a   :  { %6767 = vrcp.f32 %v4117_v45 }
0x117b   :  { %6769 = vrcp.f32 %v4124_v53 }
0x1183   :  { %v6766_v17 = vpop.eup %6765 }
0x1184   :  { %v6768_v32 = vpop.eup %6767  ;;  %v4131_v46 = vmul.f32 %v6766_v17, %v6764_v51 }
0x1185   :  { %v4130_v52 = vmul.f32 %v6768_v32, %v4128_v14  ;;  %v6770_v55 = vpop.eup %6769 }
0x1187   :  { %v9292_v42 = vadd.f32 %v4131_v46, %v4130_v52 }
0x1189   :  { %6771 = vtanh.f32 %v9292_v42  ;;  %v4316_v53 = vrot.slane %v9292_v42, 2 }
0x1193   :  { %v6772_v34 = vpop.eup %6771 }
0x1194   :  { %v4134_v29 = vmul.f32 %v6772_v34, %v6770_v55 }
0x1196   :  { %v4136_v59 = vrot.slane %v4134_v29, 6 }
0x1198   :  { %4203 = vmatmul.mubr.f32.vlgmr.msra.gmra.mrb[50].mxu0 %v4136_v59  ;;  %4274 = vmatmul.mubr.f32.vlgmr.msra.gmra.mrb[44].mxu1 %v4136_v59 }
0x1199   :  { %6347 = vmatpush1.bf16.msra.mxu0 %v8885_v22  ;;  %6379 = vmatpush1.bf16.msra.mxu1 %v8887_v28 }
0x119a   :  { %6349 = vmatprep.subr.bf16.mxu0 %v8906_v54  ;;  %6381 = vmatprep.subr.bf16.mxu1 %v8908_v3 }
0x119b   :  { %4390 = vmatprep.mubr.f32.mxu0 %v9568_v25  ;;  %4461 = vmatprep.mubr.f32.mxu1 %v9568_v25 }
0x119d   :  { %6351 = vmatpush1.bf16.msra.mxu0 %v8926_v21  ;;  %6383 = vmatpush1.bf16.msra.mxu1 %v8928_v40 }
0x119e   :  { %6353 = vmatprep.subr.bf16.mxu0 %v8936_v39  ;;  %6385 = vmatprep.subr.bf16.mxu1 %v8938_v63 }
0x11a1   :  { %6355 = vmatpush1.bf16.msra.mxu0 %v8965_v26  ;;  %6387 = vmatpush1.bf16.msra.mxu1 %v8967_v6 }
0x11a2   :  { %6357 = vmatprep.subr.bf16.mxu0 %v8977_v57  ;;  %6389 = vmatprep.subr.bf16.mxu1 %v8979_v60 }
0x11a5   :  { %6359 = vmatpush1.bf16.msra.mxu0 %v9003_v4  ;;  %6391 = vmatpush1.bf16.msra.mxu1 %v9005_v33 }
0x11a6   :  { %6361 = vmatprep.subr.bf16.mxu0 %v9015_v44  ;;  %6393 = vmatprep.subr.bf16.mxu1 %v9017_v12 }
0x11a9   :  { %6363 = vmatpush1.bf16.msra.mxu0 %v9039_v16  ;;  %6395 = vmatpush1.bf16.msra.mxu1 %v9041_v47 }
0x11aa   :  { %6365 = vmatprep.subr.bf16.mxu0 %v9051_v37  ;;  %6397 = vmatprep.subr.bf16.mxu1 %v9053_v19 }
0x11ad   :  { %6367 = vmatpush1.bf16.msra.mxu0 %v9075_v62  ;;  %6399 = vmatpush1.bf16.msra.mxu1 %v9077_v8 }
0x11ae   :  { %6369 = vmatprep.subr.bf16.mxu0 %v9087_v30  ;;  %6401 = vmatprep.subr.bf16.mxu1 %v9089_v27 }
0x11b1   :  { %6371 = vmatpush1.bf16.msra.mxu0 %v9111_v36  ;;  %6403 = vmatpush1.bf16.msra.mxu1 %v9113_v15 }
0x11b2   :  { %6373 = vmatprep.subr.bf16.mxu0 %v9120_v10  ;;  %6405 = vmatprep.subr.bf16.mxu1 %v9122_v20 }
0x11b5   :  { %6375 = vmatpush1.bf16.msra.mxu0 %v9135_v50  ;;  %6407 = vmatpush1.bf16.msra.mxu1 %v9137_v49 }
0x11b6   :  { %6409 = vmatprep.subr.bf16.mxu0 %v8843_v41  ;;  %6441 = vmatprep.subr.bf16.mxu1 %v8848_v7 }
0x126b   :  { %v4204_v13 = vpop.f32.mrb[50].mxu0  ;;  %v4275_v58 = vpop.f32.mrb[44].mxu1 }
0x126c   :  { %v4284_v61 = vrot.slane %v4204_v13, 4  ;;  %v4206_v9 = vpop.f32.mrb[51].mxu0  ;;  %v4277_v11 = vpop.f32.mrb[45].mxu1  ;;  %v4286_v41 = vrot.slane %v4275_v58, 4 }
0x126d   :  { %v4285_v35 = vrot.slane %v4206_v9, 4  ;;  %v4287_v48 = vrot.slane %v4277_v11, 4 }
0x126e   :  { %v4292_v0 = vadd.f32 %v4284_v61, %v9188_v1  ;;  %v4294_v7 = vadd.f32 %v4286_v41, %v9190_v18  ;;  %v4691_v41 = vld [vmem:[%s9528_s14 + $0x20] sm:$0xff] }
0x126f   :  { %v4293_v24 = vadd.f32 %v4285_v35, %v9192_v2  ;;  %v4295_v31 = vadd.f32 %v4287_v48, %v9194_v5  ;;  %v4690_v48 = vld [vmem:[%s9528_s14 + $0x18] sm:$0xff] }
0x1270   :  { %v4955_v38 = vmul.f32 -1.442695, %v4292_v0  ;;  %v4687_v0 = vld [vmem:[%s9528_s14] sm:$0xff] }
0x1271   :  { %v4956_v43 = vmul.f32 -1.442695, %v4293_v24  ;;  %v4957_v23 = vmul.f32 -1.442695, %v4295_v31  ;;  %v4688_v24 = vld [vmem:[%s9528_s14 + $0x8] sm:$0xff] }
0x1272   :  { %6773 = vpow2.f32 %v4955_v38  ;;  %v6473_v38 = vpack.c.bf16 %v4688_v24, %v4687_v0 }
0x1273   :  { %6775 = vpow2.f32 %v4956_v43  ;;  %v4689_v43 = vld [vmem:[%s9528_s14 + $0x10] sm:$0xff] }
0x1274   :  { %6777 = vpow2.f32 %v4957_v23  ;;  %v6476_v31 = vpack.c.bf16 %v4690_v48, %v4689_v43  ;;  %v4692_v23 = vld [vmem:[%s9528_s14 + $0x28] sm:$0xff] }
0x1275   :  { %6779 = vtanh.f32 %v4294_v7  ;;  %v6479_v7 = vpack.c.bf16 %v4692_v23, %v4691_v41 }
0x127c   :  { %v6774_v45 = vpop.eup %6773 }
0x127d   :  { %v6776_v56 = vpop.eup %6775  ;;  %v4299_v51 = vadd.f32 1.0, %v6774_v45  ;;  %v4693_v45 = vld [vmem:[%s9528_s14 + $0x30] sm:$0xff] }
0x127e   :  { %v4305_v17 = vadd.f32 1.0, %v6776_v56  ;;  %v6778_v14 = vpop.eup %6777  ;;  %v4694_v56 = vld [vmem:[%s9528_s14 + $0x38] sm:$0xff] }
0x127f   :  { %6781 = vrcp.f32 %v4299_v51  ;;  %v6780_v32 = vpop.eup %6779  ;;  %v4312_v34 = vadd.f32 1.0, %v6778_v14  ;;  %v6482_v51 = vpack.c.bf16 %v4694_v56, %v4693_v45  ;;  %v4696_v14 = vld [vmem:[%s9528_s14 + $0x48] sm:$0xff]  ;;  %v4795_v45 = vld [vmem:[%s9530_s16 + $0x70] sm:$0xff]  ;;  %v4796_v56 = vld [vmem:[%s9530_s16 + $0x78] sm:$0xff] }
0x1280   :  { %6783 = vrcp.f32 %v4305_v17  ;;  %v4695_v17 = vld [vmem:[%s9528_s14 + $0x40] sm:$0xff] }
0x1281   :  { %6785 = vrcp.f32 %v4312_v34  ;;  %v4700_v34 = vld [vmem:[%s9528_s14 + $0x68] sm:$0xff] }
0x1289   :  { %v6782_v46 = vpop.eup %6781 }
0x128a   :  { %v6784_v52 = vpop.eup %6783  ;;  %v4319_v55 = vmul.f32 %v6782_v46, %v6780_v32  ;;  %v6485_v32 = vpack.c.bf16 %v4696_v14, %v4695_v17  ;;  %v4697_v46 = vld [vmem:[%s9528_s14 + $0x50] sm:$0xff] }
0x128b   :  { %v4318_v29 = vmul.f32 %v6784_v52, %v4316_v53  ;;  %v6786_v13 = vpop.eup %6785  ;;  %v4698_v53 = vld [vmem:[%s9528_s14 + $0x58] sm:$0xff]  ;;  %v4699_v52 = vld [vmem:[%s9528_s14 + $0x60] sm:$0xff] }
0x128d   :  { %v9334_v59 = vadd.f32 %v4319_v55, %v4318_v29  ;;  %v6488_v55 = vpack.c.bf16 %v4698_v53, %v4697_v46  ;;  %v6491_v29 = vpack.c.bf16 %v4700_v34, %v4699_v52  ;;  %v4965_v53 = vld [vmem:[%s9531_s17] ss:$0 sm:$0xff] }
0x128f   :  { %6787 = vtanh.f32 %v9334_v59 }
0x1299   :  { %v6788_v58 = vpop.eup %6787 }
0x129a   :  { %v4322_v61 = vmul.f32 %v6788_v58, %v6786_v13  ;;  %v4702_v13 = vld [vmem:[%s9528_s14 + $0x78] sm:$0xff] }
0x129c   :  { %v4324_v9 = vrot.slane %v4322_v61, 4  ;;  %v4782_v61 = vld [vmem:[%s9530_s16 + $0x8] sm:$0xff] }
0x129e   :  { %4391 = vmatmul.mubr.f32.vlgmr.msra.gmra.mrb[52].mxu0 %v4324_v9  ;;  %4462 = vmatmul.mubr.f32.vlgmr.msra.gmra.mrb[46].mxu1 %v4324_v9  ;;  %v4783_v9 = vld [vmem:[%s9530_s16 + $0x10] sm:$0xff] }
0x129f   :  { %6411 = vmatpush1.bf16.msra.mxu0 %v8885_v22  ;;  %6443 = vmatpush1.bf16.msra.mxu1 %v8887_v28  ;;  %v9582_v22 = vmov 0.0|0.0  }
0x12a0   :  { %6413 = vmatprep.subr.bf16.mxu0 %v8906_v54  ;;  %6445 = vmatprep.subr.bf16.mxu1 %v8908_v3 }
0x12a1   :  { %4578 = vmatprep.mubr.f32.mxu0 %v9568_v25  ;;  %4649 = vmatprep.mubr.f32.mxu1 %v9568_v25 }
0x12a3   :  { %6415 = vmatpush1.bf16.msra.mxu0 %v8926_v21  ;;  %6447 = vmatpush1.bf16.msra.mxu1 %v8928_v40 }
0x12a4   :  { %6417 = vmatprep.subr.bf16.mxu0 %v8936_v39  ;;  %6449 = vmatprep.subr.bf16.mxu1 %v8938_v63 }
0x12a7   :  { %6419 = vmatpush1.bf16.msra.mxu0 %v8965_v26  ;;  %6451 = vmatpush1.bf16.msra.mxu1 %v8967_v6 }
0x12a8   :  { %6421 = vmatprep.subr.bf16.mxu0 %v8977_v57  ;;  %6453 = vmatprep.subr.bf16.mxu1 %v8979_v60 }
0x12ab   :  { %6423 = vmatpush1.bf16.msra.mxu0 %v9003_v4  ;;  %6455 = vmatpush1.bf16.msra.mxu1 %v9005_v33 }
0x12ac   :  { %6425 = vmatprep.subr.bf16.mxu0 %v9015_v44  ;;  %6457 = vmatprep.subr.bf16.mxu1 %v9017_v12 }
0x12af   :  { %6427 = vmatpush1.bf16.msra.mxu0 %v9039_v16  ;;  %6459 = vmatpush1.bf16.msra.mxu1 %v9041_v47 }
0x12b0   :  { %6429 = vmatprep.subr.bf16.mxu0 %v9051_v37  ;;  %6461 = vmatprep.subr.bf16.mxu1 %v9053_v19 }
0x12b3   :  { %6431 = vmatpush1.bf16.msra.mxu0 %v9075_v62  ;;  %6463 = vmatpush1.bf16.msra.mxu1 %v9077_v8 }
0x12b4   :  { %6433 = vmatprep.subr.bf16.mxu0 %v9087_v30  ;;  %6465 = vmatprep.subr.bf16.mxu1 %v9089_v27  ;;  %v4504_v27 = vrot.slane %v9334_v59, 2  ;;  %v4701_v59 = vld [vmem:[%s9528_s14 + $0x70] sm:$0xff] }
0x12b5   :  { %v6494_v58 = vpack.c.bf16 %v4702_v13, %v4701_v59 }
0x12b7   :  { %6435 = vmatpush1.bf16.msra.mxu0 %v9111_v36  ;;  %6467 = vmatpush1.bf16.msra.mxu1 %v9113_v15 }
0x12b8   :  { %6437 = vmatprep.subr.bf16.mxu0 %v9120_v10  ;;  %6469 = vmatprep.subr.bf16.mxu1 %v9122_v20 }
0x12bb   :  { %6439 = vmatpush1.bf16.msra.mxu0 %v9135_v50  ;;  %6471 = vmatpush1.bf16.msra.mxu1 %v9137_v49 }
0x12bc   :  { %6472 = vmatprep.subr.bf16.mxu0 %v9582_v22  ;;  %6496 = vmatprep.subr.bf16.mxu1 %v9582_v22 }
0x1371   :  { %v4392_v28 = vpop.f32.mrb[52].mxu0  ;;  %v4463_v54 = vpop.f32.mrb[46].mxu1 }
0x1372   :  { %v4472_v3 = vrot.slane %v4392_v28, 6  ;;  %v4394_v21 = vpop.f32.mrb[53].mxu0  ;;  %v4465_v40 = vpop.f32.mrb[47].mxu1  ;;  %v4474_v33 = vrot.slane %v4463_v54, 6  ;;  %v4784_v54 = vld [vmem:[%s9530_s16 + $0x18] sm:$0xff] }
0x1373   :  { %v4473_v39 = vrot.slane %v4394_v21, 6  ;;  %v4475_v60 = vrot.slane %v4465_v40, 6  ;;  %v4785_v21 = vld [vmem:[%s9530_s16 + $0x20] sm:$0xff]  ;;  %v4786_v40 = vld [vmem:[%s9530_s16 + $0x28] sm:$0xff] }
0x1374   :  { %v4480_v63 = vadd.f32 %v4472_v3, %v9188_v1  ;;  %v4482_v12 = vadd.f32 %v4474_v33, %v9190_v18  ;;  %v6500_v3 = vpack.c.bf16 %v4784_v54, %v4783_v9  ;;  %v4791_v33 = vld [vmem:[%s9530_s16 + $0x50] sm:$0xff] }
0x1375   :  { %v4481_v26 = vadd.f32 %v4473_v39, %v9192_v2  ;;  %v4483_v4 = vadd.f32 %v4475_v60, %v9194_v5  ;;  %v6503_v39 = vpack.c.bf16 %v4786_v40, %v4785_v21  ;;  %v4790_v60 = vld [vmem:[%s9530_s16 + $0x48] sm:$0xff] }
0x1376   :  { %v4958_v6 = vmul.f32 -1.442695, %v4480_v63  ;;  %v4787_v63 = vld [vmem:[%s9530_s16 + $0x30] sm:$0xff] }
0x1377   :  { %v4959_v57 = vmul.f32 -1.442695, %v4481_v26  ;;  %v4960_v44 = vmul.f32 -1.442695, %v4483_v4  ;;  %v4788_v26 = vld [vmem:[%s9530_s16 + $0x38] sm:$0xff] }
0x1378   :  { %6789 = vpow2.f32 %v4958_v6  ;;  %v6506_v6 = vpack.c.bf16 %v4788_v26, %v4787_v63 }
0x1379   :  { %6791 = vpow2.f32 %v4959_v57  ;;  %v4789_v57 = vld [vmem:[%s9530_s16 + $0x40] sm:$0xff] }
0x137a   :  { %6793 = vpow2.f32 %v4960_v44  ;;  %v6509_v4 = vpack.c.bf16 %v4790_v60, %v4789_v57  ;;  %v4792_v44 = vld [vmem:[%s9530_s16 + $0x58] sm:$0xff] }
0x137b   :  { %6795 = vtanh.f32 %v4482_v12  ;;  %v6512_v12 = vpack.c.bf16 %v4792_v44, %v4791_v33 }
0x1382   :  { %v6790_v16 = vpop.eup %6789 }
0x1383   :  { %v6792_v47 = vpop.eup %6791  ;;  %v4487_v37 = vadd.f32 1.0, %v6790_v16  ;;  %v4793_v16 = vld [vmem:[%s9530_s16 + $0x60] sm:$0xff] }
0x1384   :  { %v4493_v19 = vadd.f32 1.0, %v6792_v47  ;;  %v6794_v62 = vpop.eup %6793  ;;  %v4794_v47 = vld [vmem:[%s9530_s16 + $0x68] sm:$0xff] }
0x1385   :  { %6797 = vrcp.f32 %v4487_v37  ;;  %v6796_v8 = vpop.eup %6795  ;;  %v4500_v10 = vadd.f32 1.0, %v6794_v62  ;;  %v6515_v37 = vpack.c.bf16 %v4794_v47, %v4793_v16 }
0x1386   :  { %6799 = vrcp.f32 %v4493_v19 }
0x1387   :  { %6801 = vrcp.f32 %v4500_v10 }
0x138f   :  { %v6798_v30 = vpop.eup %6797 }
0x1390   :  { %v6800_v36 = vpop.eup %6799  ;;  %v4507_v15 = vmul.f32 %v6798_v30, %v6796_v8 }
0x1391   :  { %v4506_v20 = vmul.f32 %v6800_v36, %v4504_v27  ;;  %v6802_v49 = vpop.eup %6801 }
0x1393   :  { %v9376_v50 = vadd.f32 %v4507_v15, %v4506_v20 }
0x1395   :  { %6803 = vtanh.f32 %v9376_v50 }
0x139f   :  { %v6804_v42 = vpop.eup %6803 }
0x13a0   :  { %v4510_v11 = vmul.f32 %v6804_v42, %v6802_v49 }
0x13a2   :  { %v4512_v35 = vrot.slane %v4510_v11, 2 }
0x13a4   :  { %4579 = vmatmul.mubr.f32.vlgmr.msra.gmra.mrb[54].mxu0 %v4512_v35  ;;  %4650 = vmatmul.mubr.f32.vlgmr.msra.gmra.mrb[48].mxu1 %v4512_v35 }
0x13a5   :  { %6474 = vmatpush3.bf16.msra.mxu0 %v6473_v38  ;;  %5048 = vmatprep.mubr.msk.f32.mxu0 %vm6851_vm11, %v9568_v25  ;;  %v4680_v38 = vrot.slane %v9376_v50, 2  ;;  %v6518_v50 = vpack.c.bf16 %v4796_v56, %v4795_v45 }
0x13a6   :  { %6475 = vmatprep.subr.bf16.mxu0 %v9582_v22  ;;  %5083 = vmatprep.mubr.msk.f32.mxu1 %vm6851_vm11, %v9568_v25  ;;  %v4781_v25 = vld [vmem:[%s9530_s16] sm:$0xff]  ;;  %s6821_s16 = scalar_lea.vmem %s4883_s0, 32 }
0x13a7   :  { %v6497_v28 = vpack.c.bf16 %v4782_v61, %v4781_v25  ;;  %p6822_p0 = scmp.ne.s32.totalorder %s4883_s0, %s6821_s16  ;;  %p6827_p2 = scmp.lt.s32.totalorder %s6821_s16, %s6821_s16 }
0x13a9   :  { %6477 = vmatpush3.bf16.msra.mxu0 %v6476_v31  ;;  %6498 = vmatpush3.bf16.msra.mxu1 %v6497_v28  ;;  %p6828_p3 = por %p6827_p2, %p6826_p1 }
0x13aa   :  { %6478 = vmatprep.subr.bf16.mxu0 %v9582_v22  ;;  %6499 = vmatprep.subr.bf16.mxu1 %v9582_v22 }
0x13ab   :  { %p6829_p4 = pnand %p6828_p3, %p6822_p0 }
0x13ad   :  { %6480 = vmatpush3.bf16.msra.mxu0 %v6479_v7  ;;  %6501 = vmatpush3.bf16.msra.mxu1 %v6500_v3 }
0x13ae   :  { %6481 = vmatprep.subr.bf16.mxu0 %v9582_v22  ;;  %6502 = vmatprep.subr.bf16.mxu1 %v9582_v22 }
0x13b1   :  { %6483 = vmatpush3.bf16.msra.mxu0 %v6482_v51  ;;  %6504 = vmatpush3.bf16.msra.mxu1 %v6503_v39  ;;  %v4964_v51 = vld [vmem:[%s9529_s15] ss:$0 sm:$0xff] }
0x13b2   :  { %6484 = vmatprep.subr.bf16.mxu0 %v9582_v22  ;;  %6505 = vmatprep.subr.bf16.mxu1 %v9582_v22 }
0x13b5   :  { %6486 = vmatpush3.bf16.msra.mxu0 %v6485_v32  ;;  %6507 = vmatpush3.bf16.msra.mxu1 %v6506_v6 }
0x13b6   :  { %6487 = vmatprep.subr.bf16.mxu0 %v9582_v22  ;;  %6508 = vmatprep.subr.bf16.mxu1 %v9582_v22 }
0x13b9   :  { %6489 = vmatpush3.bf16.msra.mxu0 %v6488_v55  ;;  %6510 = vmatpush3.bf16.msra.mxu1 %v6509_v4 }
0x13ba   :  { %6490 = vmatprep.subr.bf16.mxu0 %v9582_v22  ;;  %6511 = vmatprep.subr.bf16.mxu1 %v9582_v22 }
0x13bd   :  { %6492 = vmatpush3.bf16.msra.mxu0 %v6491_v29  ;;  %6513 = vmatpush3.bf16.msra.mxu1 %v6512_v12 }
0x13be   :  { %6493 = vmatprep.subr.bf16.mxu0 %v9582_v22  ;;  %6514 = vmatprep.subr.bf16.mxu1 %v9582_v22 }
0x13c1   :  { %6495 = vmatpush3.bf16.msra.mxu0 %v6494_v58  ;;  %6516 = vmatpush3.bf16.msra.mxu1 %v6515_v37 }
0x13c2   :  { %6517 = vmatprep.subr.bf16.mxu1 %v9582_v22 }
0x13c5   :  { %6519 = vmatpush3.bf16.msra.mxu1 %v6518_v50 }
0x1477   :  { %v4580_v19 = vpop.f32.mrb[54].mxu0  ;;  %v4651_v62 = vpop.f32.mrb[48].mxu1 }
0x1478   :  { %v4656_v8 = vadd.f32 %v4580_v19, %v9188_v1  ;;  %v4582_v30 = vpop.f32.mrb[55].mxu0  ;;  %v4653_v27 = vpop.f32.mrb[49].mxu1  ;;  %v4658_v42 = vadd.f32 %v4651_v62, %v9190_v18 }
0x1479   :  { %v4657_v36 = vadd.f32 %v4582_v30, %v9192_v2  ;;  %v4659_v20 = vadd.f32 %v4653_v27, %v9194_v5 }
0x147a   :  { %v4961_v15 = vmul.f32 -1.442695, %v4656_v8 }
0x147b   :  { %v4962_v10 = vmul.f32 -1.442695, %v4657_v36  ;;  %v4963_v49 = vmul.f32 -1.442695, %v4659_v20 }
0x147c   :  { %6805 = vpow2.f32 %v4961_v15 }
0x147d   :  { %6807 = vpow2.f32 %v4962_v10 }
0x147e   :  { %6809 = vpow2.f32 %v4963_v49 }
0x147f   :  { %6811 = vtanh.f32 %v4658_v42 }
0x1486   :  { %v6806_v11 = vpop.eup %6805 }
0x1487   :  { %v6808_v35 = vpop.eup %6807  ;;  %v4663_v22 = vadd.f32 1.0, %v6806_v11 }
0x1488   :  { %v4669_v0 = vadd.f32 1.0, %v6808_v35  ;;  %v6810_v1 = vpop.eup %6809 }
0x1489   :  { %6813 = vrcp.f32 %v4663_v22  ;;  %v6812_v24 = vpop.eup %6811  ;;  %v4676_v31 = vadd.f32 1.0, %v6810_v1 }
0x148a   :  { %6815 = vrcp.f32 %v4669_v0 }
0x148b   :  { %6817 = vrcp.f32 %v4676_v31 }
0x1493   :  { %v6814_v2 = vpop.eup %6813 }
0x1494   :  { %v6816_v43 = vpop.eup %6815  ;;  %v4683_v48 = vmul.f32 %v6814_v2, %v6812_v24 }
0x1495   :  { %v4682_v5 = vmul.f32 %v6816_v43, %v4680_v38  ;;  %v6818_v18 = vpop.eup %6817 }
0x1497   :  { %v4684_v41 = vadd.f32 %v4683_v48, %v4682_v5 }
0x1499   :  { %6819 = vtanh.f32 %v4684_v41 }
0x14a3   :  { %v6820_v23 = vpop.eup %6819 }
0x14a4   :  { %v4686_v7 = vmul.f32 %v6820_v23, %v6818_v18 }
0x14a6   :  { %5049 = vmatmul.mubr.f32.vlgmr.msra.gmra.mrb[56].mxu0 %v4686_v7 }
0x1579   :  { %v4776_v17 = vpop.f32.mrb[56].mxu0 }
0x157a   :  { %v4777_v14 = vadd.f32 %v4964_v51, %v4776_v17  ;;  %v5050_v32 = vpop.f32.mrb[57].mxu0 }
0x157c   :  { %v4780_v46 = vmax.f32 %v4777_v14, 0.0 }
0x157e   :  { %5084 = vmatmul.mubr.f32.vlgmr.msra.gmra.mrb[50].mxu1 %v4780_v46 }
0x1651   :  { %v4870_v52 = vpop.f32.mrb[50].mxu1 }
0x1652   :  { %v4871_v55 = vadd.f32 %v4965_v53, %v4870_v52  ;;  %v5085_v34 = vpop.f32.mrb[51].mxu1 }
0x1654   :  { %4875 = vst.msk [vmem:[#allocation2] sm:$0x3] %vm4874_vm12, %v4871_v55 }
0x1655   :  { %6832 = shalt.err (!%p6829_p4)
}
0x1656   :  { %s6833_s1 = scalar_lea.hbm %s9532_s18, 32 }
0x1657   :  { %p6834_p5 = scmp.ne.s32.totalorder %s9532_s18, %s6833_s1  ;;  %p6837_p6 = scmp.lt.u32.totalorder %s6833_s1, %s9532_s18 }
0x1659   :  { %p6839_p7 = pnand %p6837_p6, %p6834_p5 }
0x165b   :  { %6842 = shalt.err (!%p6839_p7)
}
0x165c   :  { %4885 = dma.vmem_to_hbm [thread:$0]  %s4883_s0, 32, %s9532_s18, [#allocation3]  }
0x165d   :  { %6843 = dma.done.wait [#allocation3], 32  }
0x165e   :  { %6844 = vsyncadd [#allocation3], 4294967264 }
0x165f   :  { %4889 = vsyncpa [#allocation3], 1 }

</bundles_post_ra>
